<compile_context>
chip_gen: v7x
topology: tpu7x:2x2x1
jax: 0.10.0
libtpu: 0.0.40
codegen_flags: <defaults>
</compile_context>

<pallas_src>
import functools
import math

import numpy as np
import jax
import jax.numpy as jnp
from jax.experimental import pallas as pl
from jax.experimental.pallas import tpu as pltpu


# ----------------------------------------------------------------------------
# In-kernel helpers
# ----------------------------------------------------------------------------
_SQRT2 = math.sqrt(2.0)


def _erf_approx(x):
    # Abramowitz & Stegun 7.1.26, |err| < 1.5e-7 (f32-accurate), only VPU/EUP ops.
    a1, a2, a3, a4, a5 = 0.254829592, -0.284496736, 1.421413741, -1.453152027, 1.061405429
    sgn = jnp.where(x >= 0.0, 1.0, -1.0)
    ax = jnp.abs(x)
    t = 1.0 / (1.0 + 0.3275911 * ax)
    poly = ((((a5 * t + a4) * t + a3) * t + a2) * t + a1) * t
    return sgn * (1.0 - poly * jnp.exp(-ax * ax))


def _gelu(x):
    # exact (erf-based) GELU, matching torch.nn.GELU default
    return 0.5 * x * (1.0 + _erf_approx(x / _SQRT2))


def _layernorm(v, w, b, eps=1e-5):
    mu = jnp.mean(v, axis=-1, keepdims=True)
    var = jnp.mean(jnp.square(v - mu), axis=-1, keepdims=True)
    return (v - mu) * jax.lax.rsqrt(var + eps) * w + b


# ----------------------------------------------------------------------------
# Generic fused matmul (+bias, +optional tanh) -- used for the 3x3 conv head
# ----------------------------------------------------------------------------
def _matmul_kernel(a_ref, b_ref, bias_ref, o_ref, *, activation):
    acc = jnp.dot(a_ref[...], b_ref[...], preferred_element_type=jnp.float32)
    acc = acc + bias_ref[...]
    if activation == "tanh":
        acc = jnp.tanh(acc)
    o_ref[...] = acc.astype(o_ref.dtype)


def _preferred_tile_m():
    # v5e and older (128-wide MXU passes) prefer 128-row tiles; v6e/v7x prefer 256.
    try:
        kind = jax.devices()[0].device_kind.lower()
    except Exception:
        kind = ""
    return 128 if any(v in kind for v in ("v2", "v3", "v4", "v5")) else 256


def pallas_matmul(a, b, bias, activation=None):
    """(M,K)@(K,N)+bias with optional fused tanh. bf16 operands, f32 accumulate.

    Tiles over M only (K/N are small for this model).
    TODO(synk): add K/N tiling + a VMEM f32 accumulator for production-size shapes.
    """
    M, K = a.shape
    K2, N = b.shape
    assert K == K2
    a = a.astype(jnp.bfloat16)
    b = b.astype(jnp.bfloat16)
    bias = bias.reshape(1, N).astype(jnp.float32)

    tm_pref = _preferred_tile_m()
    if M % tm_pref == 0:
        tm = tm_pref
    elif M % 128 == 0:
        tm = 128
    else:
        tm = M                                   # block == full dim (always legal)

    return pl.pallas_call(
        functools.partial(_matmul_kernel, activation=activation),
        out_shape=jax.ShapeDtypeStruct((M, N), jnp.float32),
        grid=(M // tm,),
        in_specs=[pl.BlockSpec((tm, K), lambda i: (i, 0)),
                  pl.BlockSpec((K, N), lambda i: (0, 0)),
                  pl.BlockSpec((1, N), lambda i: (0, 0))],
        out_specs=pl.BlockSpec((tm, N), lambda i: (i, 0)),
        compiler_params=pltpu.CompilerParams(dimension_semantics=("parallel",)),
    )(a, b, bias)


# ----------------------------------------------------------------------------
# Fully-fused ViT trunk kernel: patch embed + pos, all blocks, final LayerNorm
# ----------------------------------------------------------------------------
def _vit_kernel(xp_ref, pw_ref, pos_ref, gvec_ref, bvec_ref, qkvb_ref, fc1b_ref,
                qkvw_ref, projw_ref, fc1w_ref, fc2w_ref, rpb_ref, o_ref,
                *, depth, num_heads, batch, tokens, scale):
    C = pw_ref.shape[1]
    hd = C // num_heads
    G = batch * num_heads                        # (batch, head) pairs

    def split_heads(t):
        # (B*N, C) -> (B*H, N, hd): head-batched layout for one batched einsum.
        parts = [t[b * tokens:(b + 1) * tokens, hh * hd:(hh + 1) * hd]
                 for b in range(batch) for hh in range(num_heads)]
        return jnp.stack(parts, axis=0).astype(jnp.bfloat16)

    # Patch embed: im2col'd patches @ patch weight; conv bias + pos_embed pre-summed.
    x = jnp.dot(xp_ref[...], pw_ref[...], preferred_element_type=jnp.float32) + pos_ref[...]

    rpb_all = rpb_ref[...]                       # (depth*B*H, N, N) f32, batch-tiled

    for d in range(depth):                       # static unroll; residual stays in VMEM
        vec = bvec_ref[d]                        # (6, C) packed per-block vectors
        ln1_w, ln1_b = vec[0:1], vec[1:2]
        proj_b = vec[2:3]
        ln2_w, ln2_b = vec[3:4], vec[4:5]
        fc2_b = vec[5:6]

        # ---- attention (bf16 MXU matmuls, f32 accumulation) ----
        h = _layernorm(x, ln1_w, ln1_b).astype(jnp.bfloat16)
        qkv = jnp.dot(h, qkvw_ref[d], preferred_element_type=jnp.float32) + qkvb_ref[d]
        qh = split_heads(qkv[:, :C])
        kh = split_heads(qkv[:, C:2 * C])
        vh = split_heads(qkv[:, 2 * C:])
        logits = jnp.einsum('gqd,gkd->gqk', qh, kh,
                            preferred_element_type=jnp.float32)             # (G, N, N)
        logits = logits * scale + rpb_all[d * G:(d + 1) * G]
        logits = logits - jnp.max(logits, axis=-1, keepdims=True)
        p = jnp.exp(logits)
        p = p / jnp.sum(p, axis=-1, keepdims=True)                          # exact softmax
        ao = jnp.einsum('gqk,gkd->gqd', p.astype(jnp.bfloat16), vh,
                        preferred_element_type=jnp.float32)                 # (G, N, hd)
        # Re-pack head outputs at their natural lane positions -> ONE projection matmul.
        attn = jnp.concatenate(
            [jnp.concatenate([ao[b * num_heads + hh] for hh in range(num_heads)], axis=-1)
             for b in range(batch)], axis=0)                                # (B*N, C)
        x = x + jnp.dot(attn.astype(jnp.bfloat16), projw_ref[d],
                        preferred_element_type=jnp.float32) + proj_b

        # ---- MLP ----
        h2 = _layernorm(x, ln2_w, ln2_b).astype(jnp.bfloat16)
        h2 = jnp.dot(h2, fc1w_ref[d], preferred_element_type=jnp.float32) + fc1b_ref[d]
        h2 = _gelu(h2).astype(jnp.bfloat16)
        h2 = jnp.dot(h2, fc2w_ref[d], preferred_element_type=jnp.float32) + fc2_b
        x = x + h2

    # final model LayerNorm fused into the same kernel
    g = gvec_ref[...]
    y = _layernorm(x, g[0:1], g[1:2])
    o_ref[...] = y.astype(o_ref.dtype)           # bf16 writeback (halves HBM bytes)


def pallas_vit(xp, pos_full, rpb_full, params, cfg, batch):
    M, K = xp.shape
    E = cfg["embed_dim"]
    depth = cfg["depth"]
    H = cfg["num_heads"]
    ws = cfg["img_size"] // cfg["patch_size"]
    n_tok = ws * ws
    hidden = params["fc1_w"].shape[-1]
    hd = E // H
    scale = hd ** (-0.5)

    def full(shape):
        nd = len(shape)
        return pl.BlockSpec(shape, lambda i, nd=nd: (0,) * nd)

    return pl.pallas_call(
        functools.partial(_vit_kernel, depth=depth, num_heads=H, batch=batch,
                          tokens=n_tok, scale=scale),
        out_shape=jax.ShapeDtypeStruct((M, E), jnp.bfloat16),
        grid=(1,),                                           # everything fits VMEM; 1 step
        in_specs=[full((M, K)),                              # im2col patches (bf16)
                  full((K, E)),                              # patch weight (bf16)
                  full((M, E)),                              # pos_embed + conv bias (f32)
                  full((2, E)),                              # final norm w/b packed
                  full((depth, 6, E)),                       # per-block C-wide vectors
                  full((depth, 1, 3 * E)),                   # qkv bias
                  full((depth, 1, hidden)),                  # fc1 bias
                  full((depth, E, 3 * E)),                   # qkv weight (bf16)
                  full((depth, E, E)),                       # proj weight (bf16)
                  full((depth, E, hidden)),                  # fc1 weight (bf16)
                  full((depth, hidden, E)),                  # fc2 weight (bf16)
                  full((depth * batch * H, n_tok, n_tok))],  # rel-pos bias (f32, batch-tiled)
        out_specs=full((M, E)),
        compiler_params=pltpu.CompilerParams(
            dimension_semantics=("arbitrary",),
            vmem_limit_bytes=32 * 1024 * 1024),              # well under v7x's 64 MiB VMEM
    )(xp, params["patch_w"], pos_full, params["gvec"], params["vecs"],
      params["qkv_b"], params["fc1_b"], params["qkv_w"], params["proj_w"],
      params["fc1_w"], params["fc2_w"], rpb_full)


# ----------------------------------------------------------------------------
# Plain-JAX glue (reshapes, color conversions, interpolation, parameter setup)
# ----------------------------------------------------------------------------
def sinusoid_table(n_position, d_hid):
    pos = np.arange(n_position, dtype=np.float64)[:, None]
    j = np.arange(d_hid)[None, :]
    angle = pos / np.power(10000.0, 2.0 * (j // 2) / d_hid)
    table = np.zeros_like(angle)
    table[:, 0::2] = np.sin(angle[:, 0::2])
    table[:, 1::2] = np.cos(angle[:, 1::2])
    return jnp.asarray(table, dtype=jnp.float32)             # (n, d)


def compute_rel_pos_index(ws):
    coords = np.stack(np.meshgrid(np.arange(ws), np.arange(ws), indexing="ij"))
    flat = coords.reshape(2, -1)
    rel = flat[:, :, None] - flat[:, None, :]
    rel = rel.transpose(1, 2, 0).copy()
    rel[:, :, 0] += ws - 1
    rel[:, :, 1] += ws - 1
    rel[:, :, 0] *= 2 * ws - 1
    return rel.sum(-1)                                       # (ws*ws, ws*ws)


def interpolate_nearest(x, size):
    # matches F.interpolate(..., mode='nearest') (default mode)
    B, C, H, W = x.shape
    oh, ow = size
    ri = (jnp.arange(oh) * H) // oh
    ci = (jnp.arange(ow) * W) // ow
    return x[:, :, ri[:, None], ci[None, :]]


def rgba2lab(rgba):
    # TODO(synk): data.rgba2lab unavailable; standard sRGB->CIELAB + alpha passthrough.
    rgb = rgba[:, :3]
    alpha = rgba[:, 3]
    srgb_to_lin = lambda s: jnp.where(s <= 0.04045, s / 12.92, ((s + 0.055) / 1.055) ** 2.4)
    r, g, b = srgb_to_lin(rgb[:, 0]), srgb_to_lin(rgb[:, 1]), srgb_to_lin(rgb[:, 2])
    X = 0.4124564 * r + 0.3575761 * g + 0.1804375 * b
    Y = 0.2126729 * r + 0.7151522 * g + 0.0721750 * b
    Z = 0.0193339 * r + 0.1191920 * g + 0.9503041 * b
    xn, yn, zn = 0.95047, 1.0, 1.08883
    d = 6.0 / 29.0

    def f(t):
        return jnp.where(t > d ** 3, jnp.cbrt(t), t / (3 * d * d) + 4.0 / 29.0)

    fx, fy, fz = f(X / xn), f(Y / yn), f(Z / zn)
    L = 116.0 * fy - 16.0
    A = 500.0 * (fx - fy)
    Bc = 200.0 * (fy - fz)
    return jnp.stack([L, A, Bc, alpha], axis=1)


def lab2rgb(lab_l, lab_ab):
    # TODO(synk): data.Lab2rgb unavailable; standard CIELAB->sRGB, tanh ab scaled by 110.
    L = lab_l[:, 0]
    A = lab_ab[:, 0] * 110.0
    Bc = lab_ab[:, 1] * 110.0
    fy = (L + 16.0) / 116.0
    fx = fy + A / 500.0
    fz = fy - Bc / 200.0
    d = 6.0 / 29.0
    finv = lambda t: jnp.where(t > d, t ** 3, 3 * d * d * (t - 4.0 / 29.0))
    xn, yn, zn = 0.95047, 1.0, 1.08883
    X, Y, Z = xn * finv(fx), yn * finv(fy), zn * finv(fz)
    r = 3.2404542 * X - 1.5371385 * Y - 0.4985314 * Z
    g = -0.9692660 * X + 1.8760108 * Y + 0.0415560 * Z
    b = 0.0556434 * X - 0.2040259 * Y + 1.0572252 * Z
    lin_to_srgb = lambda c: jnp.where(
        c <= 0.0031308, 12.92 * c, 1.055 * jnp.maximum(c, 1e-12) ** (1.0 / 2.4) - 0.055)
    rgb = jnp.stack([lin_to_srgb(r), lin_to_srgb(g), lin_to_srgb(b)], axis=1)
    return jnp.clip(rgb, 0.0, 1.0)


def init_params(key, cfg):
    E = cfg["embed_dim"]; p = cfg["patch_size"]; Cin = cfg["in_chans"]
    H = cfg["num_heads"]; ws = cfg["img_size"] // p; n = ws * ws
    hidden = int(E * cfg["mlp_ratio"]); ncls = cfg["num_classes"]; depth = cfg["depth"]

    def nrm(k, shape):
        return 0.02 * jax.random.normal(k, shape, jnp.float32)

    keys = jax.random.split(key, 4 + depth)
    params = {}
    conv_w = nrm(keys[0], (E, Cin, p, p))                       # nn.Conv2d(Cin, E, p, p)
    params["patch_w"] = conv_w.reshape(E, Cin * p * p).T.astype(jnp.bfloat16)  # (Cin*p*p, E)
    params["patch_b"] = nrm(keys[1], (1, E))
    params["pos_embed"] = sinusoid_table(n, E)                  # (n, E) f32

    rpi = compute_rel_pos_index(ws)
    qkv_w_l, qkv_b_l, rpb_l, proj_w_l = [], [], [], []
    fc1_w_l, fc1_b_l, fc2_w_l, vecs_l = [], [], [], []
    for dblk in range(depth):
        bk = jax.random.split(keys[4 + dblk], 8)
        qkv_w = nrm(bk[0], (3 * E, E))                          # torch Linear weight (out,in)
        q_bias = nrm(bk[1], (E,))
        v_bias = nrm(bk[2], (E,))
        qkv_b = jnp.concatenate([q_bias, jnp.zeros((E,), jnp.float32), v_bias]).reshape(1, 3 * E)
        rpb_table = nrm(bk[3], ((2 * ws - 1) ** 2, H))
        rpb = rpb_table[rpi.reshape(-1)].reshape(n, n, H).transpose(2, 0, 1)   # (H, N, N)
        proj_w = nrm(bk[4], (E, E))                             # torch Linear weight (out,in)
        proj_b = nrm(bk[5], (E,))
        fc1_w = nrm(bk[6], (hidden, E))
        fc2_w = nrm(bk[7], (E, hidden))
        ln1_w = jnp.ones((E,), jnp.float32); ln1_b = jnp.zeros((E,), jnp.float32)
        ln2_w = jnp.ones((E,), jnp.float32); ln2_b = jnp.zeros((E,), jnp.float32)
        fc2_b = jnp.zeros((E,), jnp.float32)

        qkv_w_l.append(qkv_w.T)                                 # (E, 3E)
        qkv_b_l.append(qkv_b)
        rpb_l.append(rpb)                                       # f32 (no bf16 quantization)
        proj_w_l.append(proj_w.T)                               # (E, E)
        fc1_w_l.append(fc1_w.T)                                 # (E, hidden)
        fc1_b_l.append(jnp.zeros((1, hidden), jnp.float32))
        fc2_w_l.append(fc2_w.T)                                 # (hidden, E)
        vecs_l.append(jnp.stack([ln1_w, ln1_b, proj_b, ln2_w, ln2_b, fc2_b], axis=0))

    params["qkv_w"] = jnp.stack(qkv_w_l).astype(jnp.bfloat16)   # (depth, E, 3E)
    params["qkv_b"] = jnp.stack(qkv_b_l)                        # (depth, 1, 3E)  f32
    params["rpb"] = jnp.stack(rpb_l)                            # (depth, H, N, N) f32
    params["proj_w"] = jnp.stack(proj_w_l).astype(jnp.bfloat16)  # (depth, E, E)
    params["fc1_w"] = jnp.stack(fc1_w_l).astype(jnp.bfloat16)   # (depth, E, hidden)
    params["fc1_b"] = jnp.stack(fc1_b_l)                        # (depth, 1, hidden) f32
    params["fc2_w"] = jnp.stack(fc2_w_l).astype(jnp.bfloat16)   # (depth, hidden, E)
    params["vecs"] = jnp.stack(vecs_l)                          # (depth, 6, E) f32 packed
    params["gvec"] = jnp.stack([jnp.ones((E,), jnp.float32),
                                jnp.zeros((E,), jnp.float32)])  # (2, E) final LN w/b

    head_conv = nrm(keys[2], (ncls, E, 3, 3))                   # nn.Conv2d(E, ncls, 3, pad=1)
    # weight laid out to match NHWC im2col inner order (kh, kw, E)
    params["head_w"] = head_conv.transpose(0, 2, 3, 1).reshape(ncls, 9 * E).T.astype(jnp.bfloat16)
    params["head_b"] = nrm(keys[3], (1, ncls))
    return params


# ----------------------------------------------------------------------------
# Model forward
# ----------------------------------------------------------------------------
def forward_features(x, params, cfg):
    B = x.shape[0]
    p = cfg["patch_size"]; E = cfg["embed_dim"]; Cin = cfg["in_chans"]
    H = cfg["num_heads"]; depth = cfg["depth"]
    gs = cfg["img_size"] // p
    n = gs * gs
    # PatchEmbed conv (k=stride=p) == im2col + matmul; batch folded into the row axis.
    xp = x.reshape(B, Cin, gs, p, gs, p).transpose(0, 2, 4, 1, 3, 5)
    xp = xp.reshape(B * n, Cin * p * p).astype(jnp.bfloat16)
    pos_full = jnp.tile(params["pos_embed"], (B, 1)) + params["patch_b"]   # (B*n, E) f32
    rpb_full = jnp.tile(params["rpb"], (1, B, 1, 1)).reshape(depth * B * H, n, n)
    tok = pallas_vit(xp, pos_full, rpb_full, params, cfg, B)               # (B*n, E) bf16
    return tok.reshape(B, n, E)


def cnn_head(feats, params, cfg):
    B, n, E = feats.shape
    ws = cfg["img_size"] // cfg["patch_size"]
    # NHWC im2col of the 3x3 reflect-pad conv (no NCHW / output transposes).
    x = feats.reshape(B, ws, ws, E)
    xpad = jnp.pad(x, ((0, 0), (1, 1), (1, 1), (0, 0)), mode="reflect")
    cols = [xpad[:, kh:kh + ws, kw:kw + ws, :] for kh in range(3) for kw in range(3)]
    col = jnp.concatenate(cols, axis=-1).reshape(B * ws * ws, 9 * E)       # (kh,kw,E) inner
    # 3x3 conv as matmul, tanh fused; output is lane-dense (num_classes = 128)
    out = pallas_matmul(col, params["head_w"], params["head_b"], activation="tanh")
    return out.reshape(B, ws * ws, cfg["num_classes"])


def colour_forward(rgba, params, cfg):
    B, C, H, W = rgba.shape
    lab = rgba2lab(rgba)                                           # (B, 4, H, W)
    lab_l = lab[:, 0:1]
    lab_rs = interpolate_nearest(lab, (cfg["img_size"], cfg["img_size"]))
    feats = forward_features(lab_rs, params, cfg)                  # (B, n, E)
    out = cnn_head(feats, params, cfg)                             # (B, ws*ws, 2*p*p), tanh'd
    p = cfg["patch_size"]; ws = cfg["img_size"] // p
    # P: 'b n (p1 p2 c) -> b n (p1 p2) c'
    out = out.reshape(B, ws * ws, p * p, 2)
    # Q: 'b (h w) (p1 p2) c -> b c (h p1) (w p2)'
    out = out.reshape(B, ws, ws, p, p, 2).transpose(0, 5, 1, 3, 2, 4)
    out = out.reshape(B, 2, ws * p, ws * p)
    lab_ab = interpolate_nearest(out, (H, W))
    return lab2rgb(lab_l, lab_ab)                                  # (B, 3, H, W)


# ----------------------------------------------------------------------------
if __name__ == "__main__":
    # small config consistent with the module (num_classes == 2 * patch_size**2)
    cfg = dict(img_size=32, patch_size=8, in_chans=4, num_classes=128,
               embed_dim=64, depth=2, num_heads=4, mlp_ratio=4.0)
    assert cfg["num_classes"] == 2 * cfg["patch_size"] ** 2

    key = jax.random.PRNGKey(0)
    kp, kx = jax.random.split(key)
    params = init_params(kp, cfg)
    rgba = jax.random.uniform(kx, (2, 4, 16, 16), dtype=jnp.float32)

    fwd = jax.jit(lambda im, prm: colour_forward(im, prm, cfg))
    out = fwd(rgba, params)
    jax.block_until_ready(out)
    assert out.shape == (2, 3, 16, 16)
    print("KERNEL_OK")
</pallas_src>

<mosaic_0001>
module attributes {stable_mosaic.version = 11 : i64} {
  func.func @_vit_kernel(%arg0: i32, %arg1: memref<32x256xbf16, #tpu.memory_space<vmem>>, %arg2: memref<256x64xbf16, #tpu.memory_space<vmem>>, %arg3: memref<32x64xf32, #tpu.memory_space<vmem>>, %arg4: memref<2x64xf32, #tpu.memory_space<vmem>>, %arg5: memref<2x6x64xf32, #tpu.memory_space<vmem>>, %arg6: memref<2x1x192xf32, #tpu.memory_space<vmem>>, %arg7: memref<2x1x256xf32, #tpu.memory_space<vmem>>, %arg8: memref<2x64x192xbf16, #tpu.memory_space<vmem>>, %arg9: memref<2x64x64xbf16, #tpu.memory_space<vmem>>, %arg10: memref<2x64x256xbf16, #tpu.memory_space<vmem>>, %arg11: memref<2x256x64xbf16, #tpu.memory_space<vmem>>, %arg12: memref<16x16x16xf32, #tpu.memory_space<vmem>>, %arg13: memref<32x64xbf16, #tpu.memory_space<vmem>>) attributes {dimension_semantics = [#tpu.dimension_semantics<arbitrary>], iteration_bounds = array<i64: 1>, scalar_prefetch = 0 : i64, scratch_operands = 0 : i64, tpu.core_type = #tpu.core_type<tc>, window_params = [{pipeline_mode = #tpu.pipeline_mode<synchronous>, transform_indices = @transform_0, window_bounds = array<i64: 32, 256>}, {pipeline_mode = #tpu.pipeline_mode<synchronous>, transform_indices = @transform_1, window_bounds = array<i64: 256, 64>}, {pipeline_mode = #tpu.pipeline_mode<synchronous>, transform_indices = @transform_2, window_bounds = array<i64: 32, 64>}, {pipeline_mode = #tpu.pipeline_mode<synchronous>, transform_indices = @transform_3, window_bounds = array<i64: 2, 64>}, {pipeline_mode = #tpu.pipeline_mode<synchronous>, transform_indices = @transform_4, window_bounds = array<i64: 2, 6, 64>}, {pipeline_mode = #tpu.pipeline_mode<synchronous>, transform_indices = @transform_5, window_bounds = array<i64: 2, 1, 192>}, {pipeline_mode = #tpu.pipeline_mode<synchronous>, transform_indices = @transform_6, window_bounds = array<i64: 2, 1, 256>}, {pipeline_mode = #tpu.pipeline_mode<synchronous>, transform_indices = @transform_7, window_bounds = array<i64: 2, 64, 192>}, {pipeline_mode = #tpu.pipeline_mode<synchronous>, transform_indices = @transform_8, window_bounds = array<i64: 2, 64, 64>}, {pipeline_mode = #tpu.pipeline_mode<synchronous>, transform_indices = @transform_9, window_bounds = array<i64: 2, 64, 256>}, {pipeline_mode = #tpu.pipeline_mode<synchronous>, transform_indices = @transform_10, window_bounds = array<i64: 2, 256, 64>}, {pipeline_mode = #tpu.pipeline_mode<synchronous>, transform_indices = @transform_11, window_bounds = array<i64: 16, 16, 16>}, {pipeline_mode = #tpu.pipeline_mode<synchronous>, transform_indices = @transform_12, window_bounds = array<i64: 32, 64>}]} {
    %c0 = arith.constant 0 : index
    %c0_0 = arith.constant 0 : index
    %0 = vector.load %arg1[%c0, %c0_0] : memref<32x256xbf16, #tpu.memory_space<vmem>>, vector<32x256xbf16>
    %c0_1 = arith.constant 0 : index
    %c0_2 = arith.constant 0 : index
    %1 = vector.load %arg2[%c0_1, %c0_2] : memref<256x64xbf16, #tpu.memory_space<vmem>>, vector<256x64xbf16>
    %cst = arith.constant dense<0.000000e+00> : vector<32x64xf32>
    %2 = tpu.matmul %0, %1, %cst {dimension_numbers = #tpu.dot_dimension_numbers<[1], [0], [0], [1], [0, 0, 1, 1], [], []>} : vector<32x256xbf16>, vector<256x64xbf16>, vector<32x64xf32> -> vector<32x64xf32>
    %c0_3 = arith.constant 0 : index
    %c0_4 = arith.constant 0 : index
    %3 = vector.load %arg3[%c0_3, %c0_4] : memref<32x64xf32, #tpu.memory_space<vmem>>, vector<32x64xf32>
    %4 = arith.addf %2, %3 : vector<32x64xf32>
    %c0_5 = arith.constant 0 : index
    %c0_6 = arith.constant 0 : index
    %c0_7 = arith.constant 0 : index
    %5 = vector.load %arg12[%c0_5, %c0_6, %c0_7] : memref<16x16x16xf32, #tpu.memory_space<vmem>>, vector<16x16x16xf32>
    %c0_8 = arith.constant 0 : index
    %c0_9 = arith.constant 0 : index
    %c0_10 = arith.constant 0 : index
    %6 = vector.load %arg5[%c0_8, %c0_9, %c0_10] : memref<2x6x64xf32, #tpu.memory_space<vmem>>, vector<1x6x64xf32>
    %7 = vector.shape_cast %6 : vector<1x6x64xf32> to vector<6x64xf32>
    %8 = vector.extract_strided_slice %7 {offsets = [0, 0], sizes = [1, 64], strides = [1, 1]} : vector<6x64xf32> to vector<1x64xf32>
    %9 = vector.extract_strided_slice %7 {offsets = [1, 0], sizes = [1, 64], strides = [1, 1]} : vector<6x64xf32> to vector<1x64xf32>
    %10 = vector.extract_strided_slice %7 {offsets = [2, 0], sizes = [1, 64], strides = [1, 1]} : vector<6x64xf32> to vector<1x64xf32>
    %11 = vector.extract_strided_slice %7 {offsets = [3, 0], sizes = [1, 64], strides = [1, 1]} : vector<6x64xf32> to vector<1x64xf32>
    %12 = vector.extract_strided_slice %7 {offsets = [4, 0], sizes = [1, 64], strides = [1, 1]} : vector<6x64xf32> to vector<1x64xf32>
    %13 = vector.extract_strided_slice %7 {offsets = [5, 0], sizes = [1, 64], strides = [1, 1]} : vector<6x64xf32> to vector<1x64xf32>
    %cst_11 = arith.constant dense<0.000000e+00> : vector<32xf32>
    %14 = vector.multi_reduction <add>, %4, %cst_11 [1] : vector<32x64xf32> to vector<32xf32>
    %15 = vector.shape_cast %14 : vector<32xf32> to vector<32x1xf32>
    %cst_12 = arith.constant 6.400000e+01 : f32
    %16 = vector.broadcast %cst_12 : f32 to vector<32x1xf32>
    %17 = arith.divf %15, %16 : vector<32x1xf32>
    %18 = vector.broadcast %17 : vector<32x1xf32> to vector<32x64xf32>
    %19 = arith.subf %4, %18 : vector<32x64xf32>
    %20 = arith.mulf %19, %19 : vector<32x64xf32>
    %cst_13 = arith.constant dense<0.000000e+00> : vector<32xf32>
    %21 = vector.multi_reduction <add>, %20, %cst_13 [1] : vector<32x64xf32> to vector<32xf32>
    %22 = vector.shape_cast %21 : vector<32xf32> to vector<32x1xf32>
    %cst_14 = arith.constant 6.400000e+01 : f32
    %23 = vector.broadcast %cst_14 : f32 to vector<32x1xf32>
    %24 = arith.divf %22, %23 : vector<32x1xf32>
    %25 = vector.broadcast %17 : vector<32x1xf32> to vector<32x64xf32>
    %26 = arith.subf %4, %25 : vector<32x64xf32>
    %cst_15 = arith.constant 9.99999974E-6 : f32
    %27 = vector.broadcast %cst_15 : f32 to vector<32x1xf32>
    %28 = arith.addf %24, %27 : vector<32x1xf32>
    %29 = math.rsqrt %28 : vector<32x1xf32>
    %30 = vector.broadcast %29 : vector<32x1xf32> to vector<32x64xf32>
    %31 = arith.mulf %26, %30 : vector<32x64xf32>
    %32 = vector.broadcast %8 : vector<1x64xf32> to vector<32x64xf32>
    %33 = arith.mulf %31, %32 : vector<32x64xf32>
    %34 = vector.broadcast %9 : vector<1x64xf32> to vector<32x64xf32>
    %35 = arith.addf %33, %34 : vector<32x64xf32>
    %36 = arith.truncf %35 : vector<32x64xf32> to vector<32x64xbf16>
    %c0_16 = arith.constant 0 : index
    %c0_17 = arith.constant 0 : index
    %c0_18 = arith.constant 0 : index
    %37 = vector.load %arg8[%c0_16, %c0_17, %c0_18] : memref<2x64x192xbf16, #tpu.memory_space<vmem>>, vector<1x64x192xbf16>
    %38 = vector.shape_cast %37 : vector<1x64x192xbf16> to vector<64x192xbf16>
    %cst_19 = arith.constant dense<0.000000e+00> : vector<32x192xf32>
    %39 = tpu.matmul %36, %38, %cst_19 {dimension_numbers = #tpu.dot_dimension_numbers<[1], [0], [0], [1], [0, 0, 1, 1], [], []>} : vector<32x64xbf16>, vector<64x192xbf16>, vector<32x192xf32> -> vector<32x192xf32>
    %c0_20 = arith.constant 0 : index
    %c0_21 = arith.constant 0 : index
    %c0_22 = arith.constant 0 : index
    %40 = vector.load %arg6[%c0_20, %c0_21, %c0_22] : memref<2x1x192xf32, #tpu.memory_space<vmem>>, vector<1x1x192xf32>
    %41 = vector.shape_cast %40 : vector<1x1x192xf32> to vector<1x192xf32>
    %42 = vector.broadcast %41 : vector<1x192xf32> to vector<32x192xf32>
    %43 = arith.addf %39, %42 : vector<32x192xf32>
    %44 = vector.extract_strided_slice %43 {offsets = [0, 0], sizes = [32, 64], strides = [1, 1]} : vector<32x192xf32> to vector<32x64xf32>
    %45 = vector.extract_strided_slice %44 {offsets = [0, 0], sizes = [16, 16], strides = [1, 1]} : vector<32x64xf32> to vector<16x16xf32>
    %46 = vector.extract_strided_slice %44 {offsets = [0, 16], sizes = [16, 16], strides = [1, 1]} : vector<32x64xf32> to vector<16x16xf32>
    %47 = vector.extract_strided_slice %44 {offsets = [0, 32], sizes = [16, 16], strides = [1, 1]} : vector<32x64xf32> to vector<16x16xf32>
    %48 = vector.extract_strided_slice %44 {offsets = [0, 48], sizes = [16, 16], strides = [1, 1]} : vector<32x64xf32> to vector<16x16xf32>
    %49 = vector.extract_strided_slice %44 {offsets = [16, 0], sizes = [16, 16], strides = [1, 1]} : vector<32x64xf32> to vector<16x16xf32>
    %50 = vector.extract_strided_slice %44 {offsets = [16, 16], sizes = [16, 16], strides = [1, 1]} : vector<32x64xf32> to vector<16x16xf32>
    %51 = vector.extract_strided_slice %44 {offsets = [16, 32], sizes = [16, 16], strides = [1, 1]} : vector<32x64xf32> to vector<16x16xf32>
    %52 = vector.extract_strided_slice %44 {offsets = [16, 48], sizes = [16, 16], strides = [1, 1]} : vector<32x64xf32> to vector<16x16xf32>
    %53 = vector.shape_cast %45 : vector<16x16xf32> to vector<1x16x16xf32>
    %54 = vector.shape_cast %46 : vector<16x16xf32> to vector<1x16x16xf32>
    %55 = vector.shape_cast %47 : vector<16x16xf32> to vector<1x16x16xf32>
    %56 = vector.shape_cast %48 : vector<16x16xf32> to vector<1x16x16xf32>
    %57 = vector.shape_cast %49 : vector<16x16xf32> to vector<1x16x16xf32>
    %58 = vector.shape_cast %50 : vector<16x16xf32> to vector<1x16x16xf32>
    %59 = vector.shape_cast %51 : vector<16x16xf32> to vector<1x16x16xf32>
    %60 = vector.shape_cast %52 : vector<16x16xf32> to vector<1x16x16xf32>
    %61 = tpu.concatenate %53, %54, %55, %56, %57, %58, %59, %60 in 0 : vector<1x16x16xf32>, vector<1x16x16xf32>, vector<1x16x16xf32>, vector<1x16x16xf32>, vector<1x16x16xf32>, vector<1x16x16xf32>, vector<1x16x16xf32>, vector<1x16x16xf32> -> vector<8x16x16xf32>
    %62 = arith.truncf %61 : vector<8x16x16xf32> to vector<8x16x16xbf16>
    %63 = vector.extract_strided_slice %43 {offsets = [0, 64], sizes = [32, 64], strides = [1, 1]} : vector<32x192xf32> to vector<32x64xf32>
    %64 = vector.extract_strided_slice %63 {offsets = [0, 0], sizes = [16, 16], strides = [1, 1]} : vector<32x64xf32> to vector<16x16xf32>
    %65 = vector.extract_strided_slice %63 {offsets = [0, 16], sizes = [16, 16], strides = [1, 1]} : vector<32x64xf32> to vector<16x16xf32>
    %66 = vector.extract_strided_slice %63 {offsets = [0, 32], sizes = [16, 16], strides = [1, 1]} : vector<32x64xf32> to vector<16x16xf32>
    %67 = vector.extract_strided_slice %63 {offsets = [0, 48], sizes = [16, 16], strides = [1, 1]} : vector<32x64xf32> to vector<16x16xf32>
    %68 = vector.extract_strided_slice %63 {offsets = [16, 0], sizes = [16, 16], strides = [1, 1]} : vector<32x64xf32> to vector<16x16xf32>
    %69 = vector.extract_strided_slice %63 {offsets = [16, 16], sizes = [16, 16], strides = [1, 1]} : vector<32x64xf32> to vector<16x16xf32>
    %70 = vector.extract_strided_slice %63 {offsets = [16, 32], sizes = [16, 16], strides = [1, 1]} : vector<32x64xf32> to vector<16x16xf32>
    %71 = vector.extract_strided_slice %63 {offsets = [16, 48], sizes = [16, 16], strides = [1, 1]} : vector<32x64xf32> to vector<16x16xf32>
    %72 = vector.shape_cast %64 : vector<16x16xf32> to vector<1x16x16xf32>
    %73 = vector.shape_cast %65 : vector<16x16xf32> to vector<1x16x16xf32>
    %74 = vector.shape_cast %66 : vector<16x16xf32> to vector<1x16x16xf32>
    %75 = vector.shape_cast %67 : vector<16x16xf32> to vector<1x16x16xf32>
    %76 = vector.shape_cast %68 : vector<16x16xf32> to vector<1x16x16xf32>
    %77 = vector.shape_cast %69 : vector<16x16xf32> to vector<1x16x16xf32>
    %78 = vector.shape_cast %70 : vector<16x16xf32> to vector<1x16x16xf32>
    %79 = vector.shape_cast %71 : vector<16x16xf32> to vector<1x16x16xf32>
    %80 = tpu.concatenate %72, %73, %74, %75, %76, %77, %78, %79 in 0 : vector<1x16x16xf32>, vector<1x16x16xf32>, vector<1x16x16xf32>, vector<1x16x16xf32>, vector<1x16x16xf32>, vector<1x16x16xf32>, vector<1x16x16xf32>, vector<1x16x16xf32> -> vector<8x16x16xf32>
    %81 = arith.truncf %80 : vector<8x16x16xf32> to vector<8x16x16xbf16>
    %82 = vector.extract_strided_slice %43 {offsets = [0, 128], sizes = [32, 64], strides = [1, 1]} : vector<32x192xf32> to vector<32x64xf32>
    %83 = vector.extract_strided_slice %82 {offsets = [0, 0], sizes = [16, 16], strides = [1, 1]} : vector<32x64xf32> to vector<16x16xf32>
    %84 = vector.extract_strided_slice %82 {offsets = [0, 16], sizes = [16, 16], strides = [1, 1]} : vector<32x64xf32> to vector<16x16xf32>
    %85 = vector.extract_strided_slice %82 {offsets = [0, 32], sizes = [16, 16], strides = [1, 1]} : vector<32x64xf32> to vector<16x16xf32>
    %86 = vector.extract_strided_slice %82 {offsets = [0, 48], sizes = [16, 16], strides = [1, 1]} : vector<32x64xf32> to vector<16x16xf32>
    %87 = vector.extract_strided_slice %82 {offsets = [16, 0], sizes = [16, 16], strides = [1, 1]} : vector<32x64xf32> to vector<16x16xf32>
    %88 = vector.extract_strided_slice %82 {offsets = [16, 16], sizes = [16, 16], strides = [1, 1]} : vector<32x64xf32> to vector<16x16xf32>
    %89 = vector.extract_strided_slice %82 {offsets = [16, 32], sizes = [16, 16], strides = [1, 1]} : vector<32x64xf32> to vector<16x16xf32>
    %90 = vector.extract_strided_slice %82 {offsets = [16, 48], sizes = [16, 16], strides = [1, 1]} : vector<32x64xf32> to vector<16x16xf32>
    %91 = vector.shape_cast %83 : vector<16x16xf32> to vector<1x16x16xf32>
    %92 = vector.shape_cast %84 : vector<16x16xf32> to vector<1x16x16xf32>
    %93 = vector.shape_cast %85 : vector<16x16xf32> to vector<1x16x16xf32>
    %94 = vector.shape_cast %86 : vector<16x16xf32> to vector<1x16x16xf32>
    %95 = vector.shape_cast %87 : vector<16x16xf32> to vector<1x16x16xf32>
    %96 = vector.shape_cast %88 : vector<16x16xf32> to vector<1x16x16xf32>
    %97 = vector.shape_cast %89 : vector<16x16xf32> to vector<1x16x16xf32>
    %98 = vector.shape_cast %90 : vector<16x16xf32> to vector<1x16x16xf32>
    %99 = tpu.concatenate %91, %92, %93, %94, %95, %96, %97, %98 in 0 : vector<1x16x16xf32>, vector<1x16x16xf32>, vector<1x16x16xf32>, vector<1x16x16xf32>, vector<1x16x16xf32>, vector<1x16x16xf32>, vector<1x16x16xf32>, vector<1x16x16xf32> -> vector<8x16x16xf32>
    %100 = arith.truncf %99 : vector<8x16x16xf32> to vector<8x16x16xbf16>
    "tpu.trace_start"() <{level = 10 : i32, message = "gqd,gkd->gqk"}> : () -> ()
    %cst_23 = arith.constant dense<0.000000e+00> : vector<8x16x16xf32>
    %101 = tpu.matmul %62, %81, %cst_23 {dimension_numbers = #tpu.dot_dimension_numbers<[2], [2], [1], [1], [0, 0, 0, 1, 1, 1], [0], [0]>} : vector<8x16x16xbf16>, vector<8x16x16xbf16>, vector<8x16x16xf32> -> vector<8x16x16xf32>
    "tpu.trace_stop"() : () -> ()
    %cst_24 = arith.constant 2.500000e-01 : f32
    %102 = vector.broadcast %cst_24 : f32 to vector<8x16x16xf32>
    %103 = arith.mulf %101, %102 : vector<8x16x16xf32>
    %104 = vector.extract_strided_slice %5 {offsets = [0, 0, 0], sizes = [8, 16, 16], strides = [1, 1, 1]} : vector<16x16x16xf32> to vector<8x16x16xf32>
    %105 = arith.addf %103, %104 : vector<8x16x16xf32>
    %cst_25 = arith.constant dense<0xFF800000> : vector<8x16xf32>
    %106 = vector.multi_reduction <maximumf>, %105, %cst_25 [2] : vector<8x16x16xf32> to vector<8x16xf32>
    %107 = vector.shape_cast %106 : vector<8x16xf32> to vector<8x16x1xf32>
    %108 = vector.broadcast %107 : vector<8x16x1xf32> to vector<8x16x16xf32>
    %109 = arith.subf %105, %108 : vector<8x16x16xf32>
    %110 = math.exp %109 : vector<8x16x16xf32>
    %cst_26 = arith.constant dense<0.000000e+00> : vector<8x16xf32>
    %111 = vector.multi_reduction <add>, %110, %cst_26 [2] : vector<8x16x16xf32> to vector<8x16xf32>
    %112 = vector.shape_cast %111 : vector<8x16xf32> to vector<8x16x1xf32>
    %113 = vector.broadcast %112 : vector<8x16x1xf32> to vector<8x16x16xf32>
    %114 = arith.divf %110, %113 : vector<8x16x16xf32>
    %115 = arith.truncf %114 : vector<8x16x16xf32> to vector<8x16x16xbf16>
    "tpu.trace_start"() <{level = 10 : i32, message = "gqk,gkd->gqd"}> : () -> ()
    %cst_27 = arith.constant dense<0.000000e+00> : vector<8x16x16xf32>
    %116 = tpu.matmul %115, %100, %cst_27 {dimension_numbers = #tpu.dot_dimension_numbers<[2], [1], [1], [2], [0, 0, 0, 1, 1, 2], [0], [0]>} : vector<8x16x16xbf16>, vector<8x16x16xbf16>, vector<8x16x16xf32> -> vector<8x16x16xf32>
    "tpu.trace_stop"() : () -> ()
    %117 = vector.extract_strided_slice %116 {offsets = [0, 0, 0], sizes = [1, 16, 16], strides = [1, 1, 1]} : vector<8x16x16xf32> to vector<1x16x16xf32>
    %118 = vector.shape_cast %117 : vector<1x16x16xf32> to vector<16x16xf32>
    %119 = vector.extract_strided_slice %116 {offsets = [1, 0, 0], sizes = [1, 16, 16], strides = [1, 1, 1]} : vector<8x16x16xf32> to vector<1x16x16xf32>
    %120 = vector.shape_cast %119 : vector<1x16x16xf32> to vector<16x16xf32>
    %121 = vector.extract_strided_slice %116 {offsets = [2, 0, 0], sizes = [1, 16, 16], strides = [1, 1, 1]} : vector<8x16x16xf32> to vector<1x16x16xf32>
    %122 = vector.shape_cast %121 : vector<1x16x16xf32> to vector<16x16xf32>
    %123 = vector.extract_strided_slice %116 {offsets = [3, 0, 0], sizes = [1, 16, 16], strides = [1, 1, 1]} : vector<8x16x16xf32> to vector<1x16x16xf32>
    %124 = vector.shape_cast %123 : vector<1x16x16xf32> to vector<16x16xf32>
    %125 = tpu.concatenate %118, %120, %122, %124 in 1 : vector<16x16xf32>, vector<16x16xf32>, vector<16x16xf32>, vector<16x16xf32> -> vector<16x64xf32>
    %126 = vector.extract_strided_slice %116 {offsets = [4, 0, 0], sizes = [1, 16, 16], strides = [1, 1, 1]} : vector<8x16x16xf32> to vector<1x16x16xf32>
    %127 = vector.shape_cast %126 : vector<1x16x16xf32> to vector<16x16xf32>
    %128 = vector.extract_strided_slice %116 {offsets = [5, 0, 0], sizes = [1, 16, 16], strides = [1, 1, 1]} : vector<8x16x16xf32> to vector<1x16x16xf32>
    %129 = vector.shape_cast %128 : vector<1x16x16xf32> to vector<16x16xf32>
    %130 = vector.extract_strided_slice %116 {offsets = [6, 0, 0], sizes = [1, 16, 16], strides = [1, 1, 1]} : vector<8x16x16xf32> to vector<1x16x16xf32>
    %131 = vector.shape_cast %130 : vector<1x16x16xf32> to vector<16x16xf32>
    %132 = vector.extract_strided_slice %116 {offsets = [7, 0, 0], sizes = [1, 16, 16], strides = [1, 1, 1]} : vector<8x16x16xf32> to vector<1x16x16xf32>
    %133 = vector.shape_cast %132 : vector<1x16x16xf32> to vector<16x16xf32>
    %134 = tpu.concatenate %127, %129, %131, %133 in 1 : vector<16x16xf32>, vector<16x16xf32>, vector<16x16xf32>, vector<16x16xf32> -> vector<16x64xf32>
    %135 = tpu.concatenate %125, %134 in 0 : vector<16x64xf32>, vector<16x64xf32> -> vector<32x64xf32>
    %136 = arith.truncf %135 : vector<32x64xf32> to vector<32x64xbf16>
    %c0_28 = arith.constant 0 : index
    %c0_29 = arith.constant 0 : index
    %c0_30 = arith.constant 0 : index
    %137 = vector.load %arg9[%c0_28, %c0_29, %c0_30] : memref<2x64x64xbf16, #tpu.memory_space<vmem>>, vector<1x64x64xbf16>
    %138 = vector.shape_cast %137 : vector<1x64x64xbf16> to vector<64x64xbf16>
    %cst_31 = arith.constant dense<0.000000e+00> : vector<32x64xf32>
    %139 = tpu.matmul %136, %138, %cst_31 {dimension_numbers = #tpu.dot_dimension_numbers<[1], [0], [0], [1], [0, 0, 1, 1], [], []>} : vector<32x64xbf16>, vector<64x64xbf16>, vector<32x64xf32> -> vector<32x64xf32>
    %140 = arith.addf %4, %139 : vector<32x64xf32>
    %141 = vector.broadcast %10 : vector<1x64xf32> to vector<32x64xf32>
    %142 = arith.addf %140, %141 : vector<32x64xf32>
    %cst_32 = arith.constant dense<0.000000e+00> : vector<32xf32>
    %143 = vector.multi_reduction <add>, %142, %cst_32 [1] : vector<32x64xf32> to vector<32xf32>
    %144 = vector.shape_cast %143 : vector<32xf32> to vector<32x1xf32>
    %cst_33 = arith.constant 6.400000e+01 : f32
    %145 = vector.broadcast %cst_33 : f32 to vector<32x1xf32>
    %146 = arith.divf %144, %145 : vector<32x1xf32>
    %147 = vector.broadcast %146 : vector<32x1xf32> to vector<32x64xf32>
    %148 = arith.subf %142, %147 : vector<32x64xf32>
    %149 = arith.mulf %148, %148 : vector<32x64xf32>
    %cst_34 = arith.constant dense<0.000000e+00> : vector<32xf32>
    %150 = vector.multi_reduction <add>, %149, %cst_34 [1] : vector<32x64xf32> to vector<32xf32>
    %151 = vector.shape_cast %150 : vector<32xf32> to vector<32x1xf32>
    %cst_35 = arith.constant 6.400000e+01 : f32
    %152 = vector.broadcast %cst_35 : f32 to vector<32x1xf32>
    %153 = arith.divf %151, %152 : vector<32x1xf32>
    %154 = vector.broadcast %146 : vector<32x1xf32> to vector<32x64xf32>
    %155 = arith.subf %142, %154 : vector<32x64xf32>
    %cst_36 = arith.constant 9.99999974E-6 : f32
    %156 = vector.broadcast %cst_36 : f32 to vector<32x1xf32>
    %157 = arith.addf %153, %156 : vector<32x1xf32>
    %158 = math.rsqrt %157 : vector<32x1xf32>
    %159 = vector.broadcast %158 : vector<32x1xf32> to vector<32x64xf32>
    %160 = arith.mulf %155, %159 : vector<32x64xf32>
    %161 = vector.broadcast %11 : vector<1x64xf32> to vector<32x64xf32>
    %162 = arith.mulf %160, %161 : vector<32x64xf32>
    %163 = vector.broadcast %12 : vector<1x64xf32> to vector<32x64xf32>
    %164 = arith.addf %162, %163 : vector<32x64xf32>
    %165 = arith.truncf %164 : vector<32x64xf32> to vector<32x64xbf16>
    %c0_37 = arith.constant 0 : index
    %c0_38 = arith.constant 0 : index
    %c0_39 = arith.constant 0 : index
    %166 = vector.load %arg10[%c0_37, %c0_38, %c0_39] : memref<2x64x256xbf16, #tpu.memory_space<vmem>>, vector<1x64x256xbf16>
    %167 = vector.shape_cast %166 : vector<1x64x256xbf16> to vector<64x256xbf16>
    %cst_40 = arith.constant dense<0.000000e+00> : vector<32x256xf32>
    %168 = tpu.matmul %165, %167, %cst_40 {dimension_numbers = #tpu.dot_dimension_numbers<[1], [0], [0], [1], [0, 0, 1, 1], [], []>} : vector<32x64xbf16>, vector<64x256xbf16>, vector<32x256xf32> -> vector<32x256xf32>
    %c0_41 = arith.constant 0 : index
    %c0_42 = arith.constant 0 : index
    %c0_43 = arith.constant 0 : index
    %169 = vector.load %arg7[%c0_41, %c0_42, %c0_43] : memref<2x1x256xf32, #tpu.memory_space<vmem>>, vector<1x1x256xf32>
    %170 = vector.shape_cast %169 : vector<1x1x256xf32> to vector<1x256xf32>
    %171 = vector.broadcast %170 : vector<1x256xf32> to vector<32x256xf32>
    %172 = arith.addf %168, %171 : vector<32x256xf32>
    %cst_44 = arith.constant 5.000000e-01 : f32
    %173 = vector.broadcast %cst_44 : f32 to vector<32x256xf32>
    %174 = arith.mulf %173, %172 : vector<32x256xf32>
    %cst_45 = arith.constant 1.41421354 : f32
    %175 = vector.broadcast %cst_45 : f32 to vector<32x256xf32>
    %176 = arith.divf %172, %175 : vector<32x256xf32>
    %cst_46 = arith.constant 0.000000e+00 : f32
    %177 = vector.broadcast %cst_46 : f32 to vector<32x256xf32>
    %178 = arith.cmpf oge, %176, %177 : vector<32x256xf32>
    %cst_47 = arith.constant 1.000000e+00 : f32
    %cst_48 = arith.constant -1.000000e+00 : f32
    %179 = vector.broadcast %cst_47 : f32 to vector<32x256xf32>
    %180 = vector.broadcast %cst_48 : f32 to vector<32x256xf32>
    %181 = arith.select %178, %179, %180 : vector<32x256xi1>, vector<32x256xf32>
    %182 = math.absf %176 : vector<32x256xf32>
    %cst_49 = arith.constant 0.327591091 : f32
    %183 = vector.broadcast %cst_49 : f32 to vector<32x256xf32>
    %184 = arith.mulf %183, %182 : vector<32x256xf32>
    %cst_50 = arith.constant 1.000000e+00 : f32
    %185 = vector.broadcast %cst_50 : f32 to vector<32x256xf32>
    %186 = arith.addf %185, %184 : vector<32x256xf32>
    %cst_51 = arith.constant 1.000000e+00 : f32
    %187 = vector.broadcast %cst_51 : f32 to vector<32x256xf32>
    %188 = arith.divf %187, %186 : vector<32x256xf32>
    %cst_52 = arith.constant 1.06140542 : f32
    %189 = vector.broadcast %cst_52 : f32 to vector<32x256xf32>
    %190 = arith.mulf %189, %188 : vector<32x256xf32>
    %cst_53 = arith.constant -1.45315206 : f32
    %191 = vector.broadcast %cst_53 : f32 to vector<32x256xf32>
    %192 = arith.addf %190, %191 : vector<32x256xf32>
    %193 = arith.mulf %192, %188 : vector<32x256xf32>
    %cst_54 = arith.constant 1.42141378 : f32
    %194 = vector.broadcast %cst_54 : f32 to vector<32x256xf32>
    %195 = arith.addf %193, %194 : vector<32x256xf32>
    %196 = arith.mulf %195, %188 : vector<32x256xf32>
    %cst_55 = arith.constant -0.284496725 : f32
    %197 = vector.broadcast %cst_55 : f32 to vector<32x256xf32>
    %198 = arith.addf %196, %197 : vector<32x256xf32>
    %199 = arith.mulf %198, %188 : vector<32x256xf32>
    %cst_56 = arith.constant 0.254829586 : f32
    %200 = vector.broadcast %cst_56 : f32 to vector<32x256xf32>
    %201 = arith.addf %199, %200 : vector<32x256xf32>
    %202 = arith.mulf %201, %188 : vector<32x256xf32>
    %cst_57 = arith.constant 0.000000e+00 : f32
    %203 = vector.broadcast %cst_57 : f32 to vector<32x256xf32>
    %204 = arith.subf %203, %182 : vector<32x256xf32>
    %205 = arith.mulf %204, %182 : vector<32x256xf32>
    %206 = math.exp %205 : vector<32x256xf32>
    %207 = arith.mulf %202, %206 : vector<32x256xf32>
    %cst_58 = arith.constant 1.000000e+00 : f32
    %208 = vector.broadcast %cst_58 : f32 to vector<32x256xf32>
    %209 = arith.subf %208, %207 : vector<32x256xf32>
    %210 = arith.mulf %181, %209 : vector<32x256xf32>
    %cst_59 = arith.constant 1.000000e+00 : f32
    %211 = vector.broadcast %cst_59 : f32 to vector<32x256xf32>
    %212 = arith.addf %211, %210 : vector<32x256xf32>
    %213 = arith.mulf %174, %212 : vector<32x256xf32>
    %214 = arith.truncf %213 : vector<32x256xf32> to vector<32x256xbf16>
    %c0_60 = arith.constant 0 : index
    %c0_61 = arith.constant 0 : index
    %c0_62 = arith.constant 0 : index
    %215 = vector.load %arg11[%c0_60, %c0_61, %c0_62] : memref<2x256x64xbf16, #tpu.memory_space<vmem>>, vector<1x256x64xbf16>
    %216 = vector.shape_cast %215 : vector<1x256x64xbf16> to vector<256x64xbf16>
    %cst_63 = arith.constant dense<0.000000e+00> : vector<32x64xf32>
    %217 = tpu.matmul %214, %216, %cst_63 {dimension_numbers = #tpu.dot_dimension_numbers<[1], [0], [0], [1], [0, 0, 1, 1], [], []>} : vector<32x256xbf16>, vector<256x64xbf16>, vector<32x64xf32> -> vector<32x64xf32>
    %218 = vector.broadcast %13 : vector<1x64xf32> to vector<32x64xf32>
    %219 = arith.addf %217, %218 : vector<32x64xf32>
    %220 = arith.addf %142, %219 : vector<32x64xf32>
    %c1 = arith.constant 1 : index
    %c0_64 = arith.constant 0 : index
    %c0_65 = arith.constant 0 : index
    %221 = vector.load %arg5[%c1, %c0_64, %c0_65] : memref<2x6x64xf32, #tpu.memory_space<vmem>>, vector<1x6x64xf32>
    %222 = vector.shape_cast %221 : vector<1x6x64xf32> to vector<6x64xf32>
    %223 = vector.extract_strided_slice %222 {offsets = [0, 0], sizes = [1, 64], strides = [1, 1]} : vector<6x64xf32> to vector<1x64xf32>
    %224 = vector.extract_strided_slice %222 {offsets = [1, 0], sizes = [1, 64], strides = [1, 1]} : vector<6x64xf32> to vector<1x64xf32>
    %225 = vector.extract_strided_slice %222 {offsets = [2, 0], sizes = [1, 64], strides = [1, 1]} : vector<6x64xf32> to vector<1x64xf32>
    %226 = vector.extract_strided_slice %222 {offsets = [3, 0], sizes = [1, 64], strides = [1, 1]} : vector<6x64xf32> to vector<1x64xf32>
    %227 = vector.extract_strided_slice %222 {offsets = [4, 0], sizes = [1, 64], strides = [1, 1]} : vector<6x64xf32> to vector<1x64xf32>
    %228 = vector.extract_strided_slice %222 {offsets = [5, 0], sizes = [1, 64], strides = [1, 1]} : vector<6x64xf32> to vector<1x64xf32>
    %cst_66 = arith.constant dense<0.000000e+00> : vector<32xf32>
    %229 = vector.multi_reduction <add>, %220, %cst_66 [1] : vector<32x64xf32> to vector<32xf32>
    %230 = vector.shape_cast %229 : vector<32xf32> to vector<32x1xf32>
    %cst_67 = arith.constant 6.400000e+01 : f32
    %231 = vector.broadcast %cst_67 : f32 to vector<32x1xf32>
    %232 = arith.divf %230, %231 : vector<32x1xf32>
    %233 = vector.broadcast %232 : vector<32x1xf32> to vector<32x64xf32>
    %234 = arith.subf %220, %233 : vector<32x64xf32>
    %235 = arith.mulf %234, %234 : vector<32x64xf32>
    %cst_68 = arith.constant dense<0.000000e+00> : vector<32xf32>
    %236 = vector.multi_reduction <add>, %235, %cst_68 [1] : vector<32x64xf32> to vector<32xf32>
    %237 = vector.shape_cast %236 : vector<32xf32> to vector<32x1xf32>
    %cst_69 = arith.constant 6.400000e+01 : f32
    %238 = vector.broadcast %cst_69 : f32 to vector<32x1xf32>
    %239 = arith.divf %237, %238 : vector<32x1xf32>
    %240 = vector.broadcast %232 : vector<32x1xf32> to vector<32x64xf32>
    %241 = arith.subf %220, %240 : vector<32x64xf32>
    %cst_70 = arith.constant 9.99999974E-6 : f32
    %242 = vector.broadcast %cst_70 : f32 to vector<32x1xf32>
    %243 = arith.addf %239, %242 : vector<32x1xf32>
    %244 = math.rsqrt %243 : vector<32x1xf32>
    %245 = vector.broadcast %244 : vector<32x1xf32> to vector<32x64xf32>
    %246 = arith.mulf %241, %245 : vector<32x64xf32>
    %247 = vector.broadcast %223 : vector<1x64xf32> to vector<32x64xf32>
    %248 = arith.mulf %246, %247 : vector<32x64xf32>
    %249 = vector.broadcast %224 : vector<1x64xf32> to vector<32x64xf32>
    %250 = arith.addf %248, %249 : vector<32x64xf32>
    %251 = arith.truncf %250 : vector<32x64xf32> to vector<32x64xbf16>
    %c1_71 = arith.constant 1 : index
    %c0_72 = arith.constant 0 : index
    %c0_73 = arith.constant 0 : index
    %252 = vector.load %arg8[%c1_71, %c0_72, %c0_73] : memref<2x64x192xbf16, #tpu.memory_space<vmem>>, vector<1x64x192xbf16>
    %253 = vector.shape_cast %252 : vector<1x64x192xbf16> to vector<64x192xbf16>
    %cst_74 = arith.constant dense<0.000000e+00> : vector<32x192xf32>
    %254 = tpu.matmul %251, %253, %cst_74 {dimension_numbers = #tpu.dot_dimension_numbers<[1], [0], [0], [1], [0, 0, 1, 1], [], []>} : vector<32x64xbf16>, vector<64x192xbf16>, vector<32x192xf32> -> vector<32x192xf32>
    %c1_75 = arith.constant 1 : index
    %c0_76 = arith.constant 0 : index
    %c0_77 = arith.constant 0 : index
    %255 = vector.load %arg6[%c1_75, %c0_76, %c0_77] : memref<2x1x192xf32, #tpu.memory_space<vmem>>, vector<1x1x192xf32>
    %256 = vector.shape_cast %255 : vector<1x1x192xf32> to vector<1x192xf32>
    %257 = vector.broadcast %256 : vector<1x192xf32> to vector<32x192xf32>
    %258 = arith.addf %254, %257 : vector<32x192xf32>
    %259 = vector.extract_strided_slice %258 {offsets = [0, 0], sizes = [32, 64], strides = [1, 1]} : vector<32x192xf32> to vector<32x64xf32>
    %260 = vector.extract_strided_slice %259 {offsets = [0, 0], sizes = [16, 16], strides = [1, 1]} : vector<32x64xf32> to vector<16x16xf32>
    %261 = vector.extract_strided_slice %259 {offsets = [0, 16], sizes = [16, 16], strides = [1, 1]} : vector<32x64xf32> to vector<16x16xf32>
    %262 = vector.extract_strided_slice %259 {offsets = [0, 32], sizes = [16, 16], strides = [1, 1]} : vector<32x64xf32> to vector<16x16xf32>
    %263 = vector.extract_strided_slice %259 {offsets = [0, 48], sizes = [16, 16], strides = [1, 1]} : vector<32x64xf32> to vector<16x16xf32>
    %264 = vector.extract_strided_slice %259 {offsets = [16, 0], sizes = [16, 16], strides = [1, 1]} : vector<32x64xf32> to vector<16x16xf32>
    %265 = vector.extract_strided_slice %259 {offsets = [16, 16], sizes = [16, 16], strides = [1, 1]} : vector<32x64xf32> to vector<16x16xf32>
    %266 = vector.extract_strided_slice %259 {offsets = [16, 32], sizes = [16, 16], strides = [1, 1]} : vector<32x64xf32> to vector<16x16xf32>
    %267 = vector.extract_strided_slice %259 {offsets = [16, 48], sizes = [16, 16], strides = [1, 1]} : vector<32x64xf32> to vector<16x16xf32>
    %268 = vector.shape_cast %260 : vector<16x16xf32> to vector<1x16x16xf32>
    %269 = vector.shape_cast %261 : vector<16x16xf32> to vector<1x16x16xf32>
    %270 = vector.shape_cast %262 : vector<16x16xf32> to vector<1x16x16xf32>
    %271 = vector.shape_cast %263 : vector<16x16xf32> to vector<1x16x16xf32>
    %272 = vector.shape_cast %264 : vector<16x16xf32> to vector<1x16x16xf32>
    %273 = vector.shape_cast %265 : vector<16x16xf32> to vector<1x16x16xf32>
    %274 = vector.shape_cast %266 : vector<16x16xf32> to vector<1x16x16xf32>
    %275 = vector.shape_cast %267 : vector<16x16xf32> to vector<1x16x16xf32>
    %276 = tpu.concatenate %268, %269, %270, %271, %272, %273, %274, %275 in 0 : vector<1x16x16xf32>, vector<1x16x16xf32>, vector<1x16x16xf32>, vector<1x16x16xf32>, vector<1x16x16xf32>, vector<1x16x16xf32>, vector<1x16x16xf32>, vector<1x16x16xf32> -> vector<8x16x16xf32>
    %277 = arith.truncf %276 : vector<8x16x16xf32> to vector<8x16x16xbf16>
    %278 = vector.extract_strided_slice %258 {offsets = [0, 64], sizes = [32, 64], strides = [1, 1]} : vector<32x192xf32> to vector<32x64xf32>
    %279 = vector.extract_strided_slice %278 {offsets = [0, 0], sizes = [16, 16], strides = [1, 1]} : vector<32x64xf32> to vector<16x16xf32>
    %280 = vector.extract_strided_slice %278 {offsets = [0, 16], sizes = [16, 16], strides = [1, 1]} : vector<32x64xf32> to vector<16x16xf32>
    %281 = vector.extract_strided_slice %278 {offsets = [0, 32], sizes = [16, 16], strides = [1, 1]} : vector<32x64xf32> to vector<16x16xf32>
    %282 = vector.extract_strided_slice %278 {offsets = [0, 48], sizes = [16, 16], strides = [1, 1]} : vector<32x64xf32> to vector<16x16xf32>
    %283 = vector.extract_strided_slice %278 {offsets = [16, 0], sizes = [16, 16], strides = [1, 1]} : vector<32x64xf32> to vector<16x16xf32>
    %284 = vector.extract_strided_slice %278 {offsets = [16, 16], sizes = [16, 16], strides = [1, 1]} : vector<32x64xf32> to vector<16x16xf32>
    %285 = vector.extract_strided_slice %278 {offsets = [16, 32], sizes = [16, 16], strides = [1, 1]} : vector<32x64xf32> to vector<16x16xf32>
    %286 = vector.extract_strided_slice %278 {offsets = [16, 48], sizes = [16, 16], strides = [1, 1]} : vector<32x64xf32> to vector<16x16xf32>
    %287 = vector.shape_cast %279 : vector<16x16xf32> to vector<1x16x16xf32>
    %288 = vector.shape_cast %280 : vector<16x16xf32> to vector<1x16x16xf32>
    %289 = vector.shape_cast %281 : vector<16x16xf32> to vector<1x16x16xf32>
    %290 = vector.shape_cast %282 : vector<16x16xf32> to vector<1x16x16xf32>
    %291 = vector.shape_cast %283 : vector<16x16xf32> to vector<1x16x16xf32>
    %292 = vector.shape_cast %284 : vector<16x16xf32> to vector<1x16x16xf32>
    %293 = vector.shape_cast %285 : vector<16x16xf32> to vector<1x16x16xf32>
    %294 = vector.shape_cast %286 : vector<16x16xf32> to vector<1x16x16xf32>
    %295 = tpu.concatenate %287, %288, %289, %290, %291, %292, %293, %294 in 0 : vector<1x16x16xf32>, vector<1x16x16xf32>, vector<1x16x16xf32>, vector<1x16x16xf32>, vector<1x16x16xf32>, vector<1x16x16xf32>, vector<1x16x16xf32>, vector<1x16x16xf32> -> vector<8x16x16xf32>
    %296 = arith.truncf %295 : vector<8x16x16xf32> to vector<8x16x16xbf16>
    %297 = vector.extract_strided_slice %258 {offsets = [0, 128], sizes = [32, 64], strides = [1, 1]} : vector<32x192xf32> to vector<32x64xf32>
    %298 = vector.extract_strided_slice %297 {offsets = [0, 0], sizes = [16, 16], strides = [1, 1]} : vector<32x64xf32> to vector<16x16xf32>
    %299 = vector.extract_strided_slice %297 {offsets = [0, 16], sizes = [16, 16], strides = [1, 1]} : vector<32x64xf32> to vector<16x16xf32>
    %300 = vector.extract_strided_slice %297 {offsets = [0, 32], sizes = [16, 16], strides = [1, 1]} : vector<32x64xf32> to vector<16x16xf32>
    %301 = vector.extract_strided_slice %297 {offsets = [0, 48], sizes = [16, 16], strides = [1, 1]} : vector<32x64xf32> to vector<16x16xf32>
    %302 = vector.extract_strided_slice %297 {offsets = [16, 0], sizes = [16, 16], strides = [1, 1]} : vector<32x64xf32> to vector<16x16xf32>
    %303 = vector.extract_strided_slice %297 {offsets = [16, 16], sizes = [16, 16], strides = [1, 1]} : vector<32x64xf32> to vector<16x16xf32>
    %304 = vector.extract_strided_slice %297 {offsets = [16, 32], sizes = [16, 16], strides = [1, 1]} : vector<32x64xf32> to vector<16x16xf32>
    %305 = vector.extract_strided_slice %297 {offsets = [16, 48], sizes = [16, 16], strides = [1, 1]} : vector<32x64xf32> to vector<16x16xf32>
    %306 = vector.shape_cast %298 : vector<16x16xf32> to vector<1x16x16xf32>
    %307 = vector.shape_cast %299 : vector<16x16xf32> to vector<1x16x16xf32>
    %308 = vector.shape_cast %300 : vector<16x16xf32> to vector<1x16x16xf32>
    %309 = vector.shape_cast %301 : vector<16x16xf32> to vector<1x16x16xf32>
    %310 = vector.shape_cast %302 : vector<16x16xf32> to vector<1x16x16xf32>
    %311 = vector.shape_cast %303 : vector<16x16xf32> to vector<1x16x16xf32>
    %312 = vector.shape_cast %304 : vector<16x16xf32> to vector<1x16x16xf32>
    %313 = vector.shape_cast %305 : vector<16x16xf32> to vector<1x16x16xf32>
    %314 = tpu.concatenate %306, %307, %308, %309, %310, %311, %312, %313 in 0 : vector<1x16x16xf32>, vector<1x16x16xf32>, vector<1x16x16xf32>, vector<1x16x16xf32>, vector<1x16x16xf32>, vector<1x16x16xf32>, vector<1x16x16xf32>, vector<1x16x16xf32> -> vector<8x16x16xf32>
    %315 = arith.truncf %314 : vector<8x16x16xf32> to vector<8x16x16xbf16>
    "tpu.trace_start"() <{level = 10 : i32, message = "gqd,gkd->gqk"}> : () -> ()
    %cst_78 = arith.constant dense<0.000000e+00> : vector<8x16x16xf32>
    %316 = tpu.matmul %277, %296, %cst_78 {dimension_numbers = #tpu.dot_dimension_numbers<[2], [2], [1], [1], [0, 0, 0, 1, 1, 1], [0], [0]>} : vector<8x16x16xbf16>, vector<8x16x16xbf16>, vector<8x16x16xf32> -> vector<8x16x16xf32>
    "tpu.trace_stop"() : () -> ()
    %cst_79 = arith.constant 2.500000e-01 : f32
    %317 = vector.broadcast %cst_79 : f32 to vector<8x16x16xf32>
    %318 = arith.mulf %316, %317 : vector<8x16x16xf32>
    %319 = vector.extract_strided_slice %5 {offsets = [8, 0, 0], sizes = [8, 16, 16], strides = [1, 1, 1]} : vector<16x16x16xf32> to vector<8x16x16xf32>
    %320 = arith.addf %318, %319 : vector<8x16x16xf32>
    %cst_80 = arith.constant dense<0xFF800000> : vector<8x16xf32>
    %321 = vector.multi_reduction <maximumf>, %320, %cst_80 [2] : vector<8x16x16xf32> to vector<8x16xf32>
    %322 = vector.shape_cast %321 : vector<8x16xf32> to vector<8x16x1xf32>
    %323 = vector.broadcast %322 : vector<8x16x1xf32> to vector<8x16x16xf32>
    %324 = arith.subf %320, %323 : vector<8x16x16xf32>
    %325 = math.exp %324 : vector<8x16x16xf32>
    %cst_81 = arith.constant dense<0.000000e+00> : vector<8x16xf32>
    %326 = vector.multi_reduction <add>, %325, %cst_81 [2] : vector<8x16x16xf32> to vector<8x16xf32>
    %327 = vector.shape_cast %326 : vector<8x16xf32> to vector<8x16x1xf32>
    %328 = vector.broadcast %327 : vector<8x16x1xf32> to vector<8x16x16xf32>
    %329 = arith.divf %325, %328 : vector<8x16x16xf32>
    %330 = arith.truncf %329 : vector<8x16x16xf32> to vector<8x16x16xbf16>
    "tpu.trace_start"() <{level = 10 : i32, message = "gqk,gkd->gqd"}> : () -> ()
    %cst_82 = arith.constant dense<0.000000e+00> : vector<8x16x16xf32>
    %331 = tpu.matmul %330, %315, %cst_82 {dimension_numbers = #tpu.dot_dimension_numbers<[2], [1], [1], [2], [0, 0, 0, 1, 1, 2], [0], [0]>} : vector<8x16x16xbf16>, vector<8x16x16xbf16>, vector<8x16x16xf32> -> vector<8x16x16xf32>
    "tpu.trace_stop"() : () -> ()
    %332 = vector.extract_strided_slice %331 {offsets = [0, 0, 0], sizes = [1, 16, 16], strides = [1, 1, 1]} : vector<8x16x16xf32> to vector<1x16x16xf32>
    %333 = vector.shape_cast %332 : vector<1x16x16xf32> to vector<16x16xf32>
    %334 = vector.extract_strided_slice %331 {offsets = [1, 0, 0], sizes = [1, 16, 16], strides = [1, 1, 1]} : vector<8x16x16xf32> to vector<1x16x16xf32>
    %335 = vector.shape_cast %334 : vector<1x16x16xf32> to vector<16x16xf32>
    %336 = vector.extract_strided_slice %331 {offsets = [2, 0, 0], sizes = [1, 16, 16], strides = [1, 1, 1]} : vector<8x16x16xf32> to vector<1x16x16xf32>
    %337 = vector.shape_cast %336 : vector<1x16x16xf32> to vector<16x16xf32>
    %338 = vector.extract_strided_slice %331 {offsets = [3, 0, 0], sizes = [1, 16, 16], strides = [1, 1, 1]} : vector<8x16x16xf32> to vector<1x16x16xf32>
    %339 = vector.shape_cast %338 : vector<1x16x16xf32> to vector<16x16xf32>
    %340 = tpu.concatenate %333, %335, %337, %339 in 1 : vector<16x16xf32>, vector<16x16xf32>, vector<16x16xf32>, vector<16x16xf32> -> vector<16x64xf32>
    %341 = vector.extract_strided_slice %331 {offsets = [4, 0, 0], sizes = [1, 16, 16], strides = [1, 1, 1]} : vector<8x16x16xf32> to vector<1x16x16xf32>
    %342 = vector.shape_cast %341 : vector<1x16x16xf32> to vector<16x16xf32>
    %343 = vector.extract_strided_slice %331 {offsets = [5, 0, 0], sizes = [1, 16, 16], strides = [1, 1, 1]} : vector<8x16x16xf32> to vector<1x16x16xf32>
    %344 = vector.shape_cast %343 : vector<1x16x16xf32> to vector<16x16xf32>
    %345 = vector.extract_strided_slice %331 {offsets = [6, 0, 0], sizes = [1, 16, 16], strides = [1, 1, 1]} : vector<8x16x16xf32> to vector<1x16x16xf32>
    %346 = vector.shape_cast %345 : vector<1x16x16xf32> to vector<16x16xf32>
    %347 = vector.extract_strided_slice %331 {offsets = [7, 0, 0], sizes = [1, 16, 16], strides = [1, 1, 1]} : vector<8x16x16xf32> to vector<1x16x16xf32>
    %348 = vector.shape_cast %347 : vector<1x16x16xf32> to vector<16x16xf32>
    %349 = tpu.concatenate %342, %344, %346, %348 in 1 : vector<16x16xf32>, vector<16x16xf32>, vector<16x16xf32>, vector<16x16xf32> -> vector<16x64xf32>
    %350 = tpu.concatenate %340, %349 in 0 : vector<16x64xf32>, vector<16x64xf32> -> vector<32x64xf32>
    %351 = arith.truncf %350 : vector<32x64xf32> to vector<32x64xbf16>
    %c1_83 = arith.constant 1 : index
    %c0_84 = arith.constant 0 : index
    %c0_85 = arith.constant 0 : index
    %352 = vector.load %arg9[%c1_83, %c0_84, %c0_85] : memref<2x64x64xbf16, #tpu.memory_space<vmem>>, vector<1x64x64xbf16>
    %353 = vector.shape_cast %352 : vector<1x64x64xbf16> to vector<64x64xbf16>
    %cst_86 = arith.constant dense<0.000000e+00> : vector<32x64xf32>
    %354 = tpu.matmul %351, %353, %cst_86 {dimension_numbers = #tpu.dot_dimension_numbers<[1], [0], [0], [1], [0, 0, 1, 1], [], []>} : vector<32x64xbf16>, vector<64x64xbf16>, vector<32x64xf32> -> vector<32x64xf32>
    %355 = arith.addf %220, %354 : vector<32x64xf32>
    %356 = vector.broadcast %225 : vector<1x64xf32> to vector<32x64xf32>
    %357 = arith.addf %355, %356 : vector<32x64xf32>
    %cst_87 = arith.constant dense<0.000000e+00> : vector<32xf32>
    %358 = vector.multi_reduction <add>, %357, %cst_87 [1] : vector<32x64xf32> to vector<32xf32>
    %359 = vector.shape_cast %358 : vector<32xf32> to vector<32x1xf32>
    %cst_88 = arith.constant 6.400000e+01 : f32
    %360 = vector.broadcast %cst_88 : f32 to vector<32x1xf32>
    %361 = arith.divf %359, %360 : vector<32x1xf32>
    %362 = vector.broadcast %361 : vector<32x1xf32> to vector<32x64xf32>
    %363 = arith.subf %357, %362 : vector<32x64xf32>
    %364 = arith.mulf %363, %363 : vector<32x64xf32>
    %cst_89 = arith.constant dense<0.000000e+00> : vector<32xf32>
    %365 = vector.multi_reduction <add>, %364, %cst_89 [1] : vector<32x64xf32> to vector<32xf32>
    %366 = vector.shape_cast %365 : vector<32xf32> to vector<32x1xf32>
    %cst_90 = arith.constant 6.400000e+01 : f32
    %367 = vector.broadcast %cst_90 : f32 to vector<32x1xf32>
    %368 = arith.divf %366, %367 : vector<32x1xf32>
    %369 = vector.broadcast %361 : vector<32x1xf32> to vector<32x64xf32>
    %370 = arith.subf %357, %369 : vector<32x64xf32>
    %cst_91 = arith.constant 9.99999974E-6 : f32
    %371 = vector.broadcast %cst_91 : f32 to vector<32x1xf32>
    %372 = arith.addf %368, %371 : vector<32x1xf32>
    %373 = math.rsqrt %372 : vector<32x1xf32>
    %374 = vector.broadcast %373 : vector<32x1xf32> to vector<32x64xf32>
    %375 = arith.mulf %370, %374 : vector<32x64xf32>
    %376 = vector.broadcast %226 : vector<1x64xf32> to vector<32x64xf32>
    %377 = arith.mulf %375, %376 : vector<32x64xf32>
    %378 = vector.broadcast %227 : vector<1x64xf32> to vector<32x64xf32>
    %379 = arith.addf %377, %378 : vector<32x64xf32>
    %380 = arith.truncf %379 : vector<32x64xf32> to vector<32x64xbf16>
    %c1_92 = arith.constant 1 : index
    %c0_93 = arith.constant 0 : index
    %c0_94 = arith.constant 0 : index
    %381 = vector.load %arg10[%c1_92, %c0_93, %c0_94] : memref<2x64x256xbf16, #tpu.memory_space<vmem>>, vector<1x64x256xbf16>
    %382 = vector.shape_cast %381 : vector<1x64x256xbf16> to vector<64x256xbf16>
    %cst_95 = arith.constant dense<0.000000e+00> : vector<32x256xf32>
    %383 = tpu.matmul %380, %382, %cst_95 {dimension_numbers = #tpu.dot_dimension_numbers<[1], [0], [0], [1], [0, 0, 1, 1], [], []>} : vector<32x64xbf16>, vector<64x256xbf16>, vector<32x256xf32> -> vector<32x256xf32>
    %c1_96 = arith.constant 1 : index
    %c0_97 = arith.constant 0 : index
    %c0_98 = arith.constant 0 : index
    %384 = vector.load %arg7[%c1_96, %c0_97, %c0_98] : memref<2x1x256xf32, #tpu.memory_space<vmem>>, vector<1x1x256xf32>
    %385 = vector.shape_cast %384 : vector<1x1x256xf32> to vector<1x256xf32>
    %386 = vector.broadcast %385 : vector<1x256xf32> to vector<32x256xf32>
    %387 = arith.addf %383, %386 : vector<32x256xf32>
    %cst_99 = arith.constant 5.000000e-01 : f32
    %388 = vector.broadcast %cst_99 : f32 to vector<32x256xf32>
    %389 = arith.mulf %388, %387 : vector<32x256xf32>
    %cst_100 = arith.constant 1.41421354 : f32
    %390 = vector.broadcast %cst_100 : f32 to vector<32x256xf32>
    %391 = arith.divf %387, %390 : vector<32x256xf32>
    %cst_101 = arith.constant 0.000000e+00 : f32
    %392 = vector.broadcast %cst_101 : f32 to vector<32x256xf32>
    %393 = arith.cmpf oge, %391, %392 : vector<32x256xf32>
    %cst_102 = arith.constant 1.000000e+00 : f32
    %cst_103 = arith.constant -1.000000e+00 : f32
    %394 = vector.broadcast %cst_102 : f32 to vector<32x256xf32>
    %395 = vector.broadcast %cst_103 : f32 to vector<32x256xf32>
    %396 = arith.select %393, %394, %395 : vector<32x256xi1>, vector<32x256xf32>
    %397 = math.absf %391 : vector<32x256xf32>
    %cst_104 = arith.constant 0.327591091 : f32
    %398 = vector.broadcast %cst_104 : f32 to vector<32x256xf32>
    %399 = arith.mulf %398, %397 : vector<32x256xf32>
    %cst_105 = arith.constant 1.000000e+00 : f32
    %400 = vector.broadcast %cst_105 : f32 to vector<32x256xf32>
    %401 = arith.addf %400, %399 : vector<32x256xf32>
    %cst_106 = arith.constant 1.000000e+00 : f32
    %402 = vector.broadcast %cst_106 : f32 to vector<32x256xf32>
    %403 = arith.divf %402, %401 : vector<32x256xf32>
    %cst_107 = arith.constant 1.06140542 : f32
    %404 = vector.broadcast %cst_107 : f32 to vector<32x256xf32>
    %405 = arith.mulf %404, %403 : vector<32x256xf32>
    %cst_108 = arith.constant -1.45315206 : f32
    %406 = vector.broadcast %cst_108 : f32 to vector<32x256xf32>
    %407 = arith.addf %405, %406 : vector<32x256xf32>
    %408 = arith.mulf %407, %403 : vector<32x256xf32>
    %cst_109 = arith.constant 1.42141378 : f32
    %409 = vector.broadcast %cst_109 : f32 to vector<32x256xf32>
    %410 = arith.addf %408, %409 : vector<32x256xf32>
    %411 = arith.mulf %410, %403 : vector<32x256xf32>
    %cst_110 = arith.constant -0.284496725 : f32
    %412 = vector.broadcast %cst_110 : f32 to vector<32x256xf32>
    %413 = arith.addf %411, %412 : vector<32x256xf32>
    %414 = arith.mulf %413, %403 : vector<32x256xf32>
    %cst_111 = arith.constant 0.254829586 : f32
    %415 = vector.broadcast %cst_111 : f32 to vector<32x256xf32>
    %416 = arith.addf %414, %415 : vector<32x256xf32>
    %417 = arith.mulf %416, %403 : vector<32x256xf32>
    %cst_112 = arith.constant 0.000000e+00 : f32
    %418 = vector.broadcast %cst_112 : f32 to vector<32x256xf32>
    %419 = arith.subf %418, %397 : vector<32x256xf32>
    %420 = arith.mulf %419, %397 : vector<32x256xf32>
    %421 = math.exp %420 : vector<32x256xf32>
    %422 = arith.mulf %417, %421 : vector<32x256xf32>
    %cst_113 = arith.constant 1.000000e+00 : f32
    %423 = vector.broadcast %cst_113 : f32 to vector<32x256xf32>
    %424 = arith.subf %423, %422 : vector<32x256xf32>
    %425 = arith.mulf %396, %424 : vector<32x256xf32>
    %cst_114 = arith.constant 1.000000e+00 : f32
    %426 = vector.broadcast %cst_114 : f32 to vector<32x256xf32>
    %427 = arith.addf %426, %425 : vector<32x256xf32>
    %428 = arith.mulf %389, %427 : vector<32x256xf32>
    %429 = arith.truncf %428 : vector<32x256xf32> to vector<32x256xbf16>
    %c1_115 = arith.constant 1 : index
    %c0_116 = arith.constant 0 : index
    %c0_117 = arith.constant 0 : index
    %430 = vector.load %arg11[%c1_115, %c0_116, %c0_117] : memref<2x256x64xbf16, #tpu.memory_space<vmem>>, vector<1x256x64xbf16>
    %431 = vector.shape_cast %430 : vector<1x256x64xbf16> to vector<256x64xbf16>
    %cst_118 = arith.constant dense<0.000000e+00> : vector<32x64xf32>
    %432 = tpu.matmul %429, %431, %cst_118 {dimension_numbers = #tpu.dot_dimension_numbers<[1], [0], [0], [1], [0, 0, 1, 1], [], []>} : vector<32x256xbf16>, vector<256x64xbf16>, vector<32x64xf32> -> vector<32x64xf32>
    %433 = vector.broadcast %228 : vector<1x64xf32> to vector<32x64xf32>
    %434 = arith.addf %432, %433 : vector<32x64xf32>
    %435 = arith.addf %357, %434 : vector<32x64xf32>
    %c0_119 = arith.constant 0 : index
    %c0_120 = arith.constant 0 : index
    %436 = vector.load %arg4[%c0_119, %c0_120] : memref<2x64xf32, #tpu.memory_space<vmem>>, vector<2x64xf32>
    %437 = vector.extract_strided_slice %436 {offsets = [0, 0], sizes = [1, 64], strides = [1, 1]} : vector<2x64xf32> to vector<1x64xf32>
    %438 = vector.extract_strided_slice %436 {offsets = [1, 0], sizes = [1, 64], strides = [1, 1]} : vector<2x64xf32> to vector<1x64xf32>
    %cst_121 = arith.constant dense<0.000000e+00> : vector<32xf32>
    %439 = vector.multi_reduction <add>, %435, %cst_121 [1] : vector<32x64xf32> to vector<32xf32>
    %440 = vector.shape_cast %439 : vector<32xf32> to vector<32x1xf32>
    %cst_122 = arith.constant 6.400000e+01 : f32
    %441 = vector.broadcast %cst_122 : f32 to vector<32x1xf32>
    %442 = arith.divf %440, %441 : vector<32x1xf32>
    %443 = vector.broadcast %442 : vector<32x1xf32> to vector<32x64xf32>
    %444 = arith.subf %435, %443 : vector<32x64xf32>
    %445 = arith.mulf %444, %444 : vector<32x64xf32>
    %cst_123 = arith.constant dense<0.000000e+00> : vector<32xf32>
    %446 = vector.multi_reduction <add>, %445, %cst_123 [1] : vector<32x64xf32> to vector<32xf32>
    %447 = vector.shape_cast %446 : vector<32xf32> to vector<32x1xf32>
    %cst_124 = arith.constant 6.400000e+01 : f32
    %448 = vector.broadcast %cst_124 : f32 to vector<32x1xf32>
    %449 = arith.divf %447, %448 : vector<32x1xf32>
    %450 = vector.broadcast %442 : vector<32x1xf32> to vector<32x64xf32>
    %451 = arith.subf %435, %450 : vector<32x64xf32>
    %cst_125 = arith.constant 9.99999974E-6 : f32
    %452 = vector.broadcast %cst_125 : f32 to vector<32x1xf32>
    %453 = arith.addf %449, %452 : vector<32x1xf32>
    %454 = math.rsqrt %453 : vector<32x1xf32>
    %455 = vector.broadcast %454 : vector<32x1xf32> to vector<32x64xf32>
    %456 = arith.mulf %451, %455 : vector<32x64xf32>
    %457 = vector.broadcast %437 : vector<1x64xf32> to vector<32x64xf32>
    %458 = arith.mulf %456, %457 : vector<32x64xf32>
    %459 = vector.broadcast %438 : vector<1x64xf32> to vector<32x64xf32>
    %460 = arith.addf %458, %459 : vector<32x64xf32>
    %461 = arith.truncf %460 : vector<32x64xf32> to vector<32x64xbf16>
    %c0_126 = arith.constant 0 : index
    %c0_127 = arith.constant 0 : index
    %462 = vector.load %arg13[%c0_126, %c0_127] : memref<32x64xbf16, #tpu.memory_space<vmem>>, vector<32x64xbf16>
    tpu.vector_store %arg13[%c0_126, %c0_127], %461 {strides = array<i32>} : memref<32x64xbf16, #tpu.memory_space<vmem>>, vector<32x64xbf16>,
    return
  }
  func.func @transform_0(%arg0: i32) -> (i32, i32) {
    %c0_i32 = arith.constant 0 : i32
    %c0_i32_0 = arith.constant 0 : i32
    %c0_i32_1 = arith.constant 0 : i32
    return %c0_i32, %c0_i32_0 : i32, i32
  }
  func.func @transform_1(%arg0: i32) -> (i32, i32) {
    %c0_i32 = arith.constant 0 : i32
    %c0_i32_0 = arith.constant 0 : i32
    %c0_i32_1 = arith.constant 0 : i32
    return %c0_i32, %c0_i32_0 : i32, i32
  }
  func.func @transform_2(%arg0: i32) -> (i32, i32) {
    %c0_i32 = arith.constant 0 : i32
    %c0_i32_0 = arith.constant 0 : i32
    %c0_i32_1 = arith.constant 0 : i32
    return %c0_i32, %c0_i32_0 : i32, i32
  }
  func.func @transform_3(%arg0: i32) -> (i32, i32) {
    %c0_i32 = arith.constant 0 : i32
    %c0_i32_0 = arith.constant 0 : i32
    %c0_i32_1 = arith.constant 0 : i32
    return %c0_i32, %c0_i32_0 : i32, i32
  }
  func.func @transform_4(%arg0: i32) -> (i32, i32, i32) {
    %c0_i32 = arith.constant 0 : i32
    %c0_i32_0 = arith.constant 0 : i32
    %c0_i32_1 = arith.constant 0 : i32
    %c0_i32_2 = arith.constant 0 : i32
    return %c0_i32, %c0_i32_0, %c0_i32_1 : i32, i32, i32
  }
  func.func @transform_5(%arg0: i32) -> (i32, i32, i32) {
    %c0_i32 = arith.constant 0 : i32
    %c0_i32_0 = arith.constant 0 : i32
    %c0_i32_1 = arith.constant 0 : i32
    %c0_i32_2 = arith.constant 0 : i32
    return %c0_i32, %c0_i32_0, %c0_i32_1 : i32, i32, i32
  }
  func.func @transform_6(%arg0: i32) -> (i32, i32, i32) {
    %c0_i32 = arith.constant 0 : i32
    %c0_i32_0 = arith.constant 0 : i32
    %c0_i32_1 = arith.constant 0 : i32
    %c0_i32_2 = arith.constant 0 : i32
    return %c0_i32, %c0_i32_0, %c0_i32_1 : i32, i32, i32
  }
  func.func @transform_7(%arg0: i32) -> (i32, i32, i32) {
    %c0_i32 = arith.constant 0 : i32
    %c0_i32_0 = arith.constant 0 : i32
    %c0_i32_1 = arith.constant 0 : i32
    %c0_i32_2 = arith.constant 0 : i32
    return %c0_i32, %c0_i32_0, %c0_i32_1 : i32, i32, i32
  }
  func.func @transform_8(%arg0: i32) -> (i32, i32, i32) {
    %c0_i32 = arith.constant 0 : i32
    %c0_i32_0 = arith.constant 0 : i32
    %c0_i32_1 = arith.constant 0 : i32
    %c0_i32_2 = arith.constant 0 : i32
    return %c0_i32, %c0_i32_0, %c0_i32_1 : i32, i32, i32
  }
  func.func @transform_9(%arg0: i32) -> (i32, i32, i32) {
    %c0_i32 = arith.constant 0 : i32
    %c0_i32_0 = arith.constant 0 : i32
    %c0_i32_1 = arith.constant 0 : i32
    %c0_i32_2 = arith.constant 0 : i32
    return %c0_i32, %c0_i32_0, %c0_i32_1 : i32, i32, i32
  }
  func.func @transform_10(%arg0: i32) -> (i32, i32, i32) {
    %c0_i32 = arith.constant 0 : i32
    %c0_i32_0 = arith.constant 0 : i32
    %c0_i32_1 = arith.constant 0 : i32
    %c0_i32_2 = arith.constant 0 : i32
    return %c0_i32, %c0_i32_0, %c0_i32_1 : i32, i32, i32
  }
  func.func @transform_11(%arg0: i32) -> (i32, i32, i32) {
    %c0_i32 = arith.constant 0 : i32
    %c0_i32_0 = arith.constant 0 : i32
    %c0_i32_1 = arith.constant 0 : i32
    %c0_i32_2 = arith.constant 0 : i32
    return %c0_i32, %c0_i32_0, %c0_i32_1 : i32, i32, i32
  }
  func.func @transform_12(%arg0: i32) -> (i32, i32) {
    %c0_i32 = arith.constant 0 : i32
    %c0_i32_0 = arith.constant 0 : i32
    %c0_i32_1 = arith.constant 0 : i32
    return %c0_i32, %c0_i32_0 : i32, i32
  }
}

module attributes {stable_mosaic.version = 11 : i64} {
  func.func @_matmul_kernel(%arg0: i32, %arg1: memref<32x576xbf16, #tpu.memory_space<vmem>>, %arg2: memref<576x128xbf16, #tpu.memory_space<vmem>>, %arg3: memref<1x128xf32, #tpu.memory_space<vmem>>, %arg4: memref<32x128xf32, #tpu.memory_space<vmem>>) attributes {dimension_semantics = [#tpu.dimension_semantics<parallel>], iteration_bounds = array<i64: 1>, scalar_prefetch = 0 : i64, scratch_operands = 0 : i64, tpu.core_type = #tpu.core_type<tc>, window_params = [{transform_indices = @transform_0, window_bounds = array<i64: 32, 576>}, {pipeline_mode = #tpu.pipeline_mode<synchronous>, transform_indices = @transform_1, window_bounds = array<i64: 576, 128>}, {pipeline_mode = #tpu.pipeline_mode<synchronous>, transform_indices = @transform_2, window_bounds = array<i64: 1, 128>}, {transform_indices = @transform_3, window_bounds = array<i64: 32, 128>}]} {
    %c0 = arith.constant 0 : index
    %c0_0 = arith.constant 0 : index
    %0 = vector.load %arg1[%c0, %c0_0] : memref<32x576xbf16, #tpu.memory_space<vmem>>, vector<32x576xbf16>
    %c0_1 = arith.constant 0 : index
    %c0_2 = arith.constant 0 : index
    %1 = vector.load %arg2[%c0_1, %c0_2] : memref<576x128xbf16, #tpu.memory_space<vmem>>, vector<576x128xbf16>
    %cst = arith.constant dense<0.000000e+00> : vector<32x128xf32>
    %2 = tpu.matmul %0, %1, %cst {dimension_numbers = #tpu.dot_dimension_numbers<[1], [0], [0], [1], [0, 0, 1, 1], [], []>} : vector<32x576xbf16>, vector<576x128xbf16>, vector<32x128xf32> -> vector<32x128xf32>
    %c0_3 = arith.constant 0 : index
    %c0_4 = arith.constant 0 : index
    %3 = vector.load %arg3[%c0_3, %c0_4] : memref<1x128xf32, #tpu.memory_space<vmem>>, vector<1x128xf32>
    %4 = vector.broadcast %3 : vector<1x128xf32> to vector<32x128xf32>
    %5 = arith.addf %2, %4 : vector<32x128xf32>
    %6 = math.tanh %5 : vector<32x128xf32>
    %c0_5 = arith.constant 0 : index
    %c0_6 = arith.constant 0 : index
    %7 = vector.load %arg4[%c0_5, %c0_6] : memref<32x128xf32, #tpu.memory_space<vmem>>, vector<32x128xf32>
    tpu.vector_store %arg4[%c0_5, %c0_6], %6 {strides = array<i32>} : memref<32x128xf32, #tpu.memory_space<vmem>>, vector<32x128xf32>,
    return
  }
  func.func @transform_0(%arg0: i32) -> (i32, i32) {
    %c0_i32 = arith.constant 0 : i32
    %c0_i32_0 = arith.constant 0 : i32
    return %arg0, %c0_i32 : i32, i32
  }
  func.func @transform_1(%arg0: i32) -> (i32, i32) {
    %c0_i32 = arith.constant 0 : i32
    %c0_i32_0 = arith.constant 0 : i32
    %c0_i32_1 = arith.constant 0 : i32
    return %c0_i32, %c0_i32_0 : i32, i32
  }
  func.func @transform_2(%arg0: i32) -> (i32, i32) {
    %c0_i32 = arith.constant 0 : i32
    %c0_i32_0 = arith.constant 0 : i32
    %c0_i32_1 = arith.constant 0 : i32
    return %c0_i32, %c0_i32_0 : i32, i32
  }
  func.func @transform_3(%arg0: i32) -> (i32, i32) {
    %c0_i32 = arith.constant 0 : i32
    %c0_i32_0 = arith.constant 0 : i32
    return %arg0, %c0_i32 : i32, i32
  }
}

</mosaic_0001>

<bundles_post_ra>
// kernel: _lambda_.3
= control target key start
LH: loop header
LB: loop body
LE: loop exit
PB: predicated region body
PF: predicated region fallthrough
CT: control target
= control target key end

     0   :  { %vm372_vm0 = vcmask 523264   ;;  %s892_s1 = inlined_call_operand.vmem [shape: bf16[576,128], index: 1, kind: input, shape index: {}]   ;;  %s893_s0 = inlined_call_operand.vmem [shape: bf16[32,576], index: 0, kind: input, shape index: {}]   ;;  %s894_s2 = inlined_call_operand.vmem [shape: f32[1,128], index: 2, kind: input, shape index: {}]   ;;  %s895_s3 = inlined_call_operand.vmem [shape: f32[32,128], index: 3, kind: output, shape index: {}]  }
   0x1   :  { %v661_v0 = vld [vmem:[%s892_s1 + $0x40] sm:$0xff]   ;;  %v665_v4 = vld [vmem:[%s892_s1 + $0x48] sm:$0xff]   ;;  %v669_v8 = vld [vmem:[%s892_s1 + $0x50] sm:$0xff]  }
   0x2   :  { %v662_v1 = vld [vmem:[%s892_s1] sm:$0xff]   ;;  %587 = vmatprep.subr.bf16.mxu0 %v661_v0  ;;  %v666_v5 = vld [vmem:[%s892_s1 + $0x8] sm:$0xff]   ;;  %v670_v9 = vld [vmem:[%s892_s1 + $0x10] sm:$0xff]  }
   0x3   :  { %v663_v2 = vld [vmem:[%s892_s1 + $0xc0] sm:$0xff]   ;;  %588 = vmatpush3.bf16.msra.mxu0 %v662_v1  ;;  %v667_v6 = vld [vmem:[%s892_s1 + $0xc8] sm:$0xff]   ;;  %v671_v10 = vld [vmem:[%s892_s1 + $0xd0] sm:$0xff]  }
   0x4   :  { %v664_v3 = vld [vmem:[%s892_s1 + $0x80] sm:$0xff]   ;;  %615 = vmatprep.subr.bf16.mxu1 %v663_v2  ;;  %589 = vmatprep.subr.bf16.mxu0 %v665_v4  ;;  %v668_v7 = vld [vmem:[%s892_s1 + $0x88] sm:$0xff]   ;;  %v672_v11 = vld [vmem:[%s892_s1 + $0x90] sm:$0xff]  }
   0x5   :  { %616 = vmatpush3.bf16.msra.mxu1 %v664_v3  ;;  %v673_v12 = vld [vmem:[%s892_s1 + $0x58] sm:$0xff]   ;;  %v677_v16 = vld [vmem:[%s892_s1 + $0x60] sm:$0xff]   ;;  %v681_v20 = vld [vmem:[%s892_s1 + $0x68] sm:$0xff]  }
   0x6   :  { %617 = vmatprep.subr.bf16.mxu1 %v667_v6  ;;  %v674_v13 = vld [vmem:[%s892_s1 + $0x18] sm:$0xff]   ;;  %v678_v17 = vld [vmem:[%s892_s1 + $0x20] sm:$0xff]   ;;  %v682_v21 = vld [vmem:[%s892_s1 + $0x28] sm:$0xff]  }
   0x7   :  { %590 = vmatpush3.bf16.msra.mxu0 %v666_v5  ;;  %v675_v14 = vld [vmem:[%s892_s1 + $0xd8] sm:$0xff]   ;;  %v679_v18 = vld [vmem:[%s892_s1 + $0xe0] sm:$0xff]   ;;  %v683_v22 = vld [vmem:[%s892_s1 + $0xe8] sm:$0xff]  }
   0x8   :  { %591 = vmatprep.subr.bf16.mxu0 %v669_v8  ;;  %v676_v15 = vld [vmem:[%s892_s1 + $0x98] sm:$0xff]   ;;  %v680_v19 = vld [vmem:[%s892_s1 + $0xa0] sm:$0xff]   ;;  %v684_v23 = vld [vmem:[%s892_s1 + $0xa8] sm:$0xff]  }
   0x9   :  { %618 = vmatpush3.bf16.msra.mxu1 %v668_v7  ;;  %v685_v24 = vld [vmem:[%s892_s1 + $0x70] sm:$0xff]   ;;  %v689_v28 = vld [vmem:[%s892_s1 + $0x78] sm:$0xff]   ;;  %v696_v34 = vld [vmem:[%s892_s1 + $0x100] sm:$0xff]  }
   0xa   :  { %619 = vmatprep.subr.bf16.mxu1 %v671_v10  ;;  %v686_v25 = vld [vmem:[%s892_s1 + $0x30] sm:$0xff]   ;;  %v690_v29 = vld [vmem:[%s892_s1 + $0x38] sm:$0xff]   ;;  %v699_v36 = vld [vmem:[%s893_s0 + $0xc] ss:$20 sps:$4 sm:$0xff]  }
   0xb   :  { %592 = vmatpush3.bf16.msra.mxu0 %v670_v9  ;;  %v687_v26 = vld [vmem:[%s892_s1 + $0xf0] sm:$0xff]   ;;  %v691_v30 = vld [vmem:[%s892_s1 + $0xf8] sm:$0xff]   ;;  %v700_v37 = vld [vmem:[%s892_s1 + $0x108] sm:$0xff]   ;;  %460 = vmatprep.mubr.bf16.mxu1 %v699_v36 }
   0xc   :  { %593 = vmatprep.subr.bf16.mxu0 %v673_v12  ;;  %v688_v27 = vld [vmem:[%s892_s1 + $0xb0] sm:$0xff]   ;;  %v694_v32 = vld [vmem:[%s893_s0 + $0x4] ss:$20 sps:$4 sm:$0xff]   ;;  %v697_v35 = vld [vmem:[%s893_s0 + $0x8] ss:$20 sps:$4 sm:$0xff]  }
   0xd   :  { %620 = vmatpush3.bf16.msra.mxu1 %v672_v11  ;;  %v692_v31 = vld [vmem:[%s893_s0] ss:$20 sps:$4 sm:$0xff]   ;;  %v695_v33 = vld [vmem:[%s892_s1 + $0xb8] sm:$0xff]   ;;  %411 = vmatprep.mubr.bf16.mxu0 %v694_v32  ;;  %v707_v42 = vld [vmem:[%s893_s0 + $0x30] ss:$20 sps:$4 sm:$0xff]  }
   0xe   :  { %621 = vmatprep.subr.bf16.mxu1 %v675_v14  ;;  %v701_v38 = vld [vmem:[%s893_s0 + $0x2c] ss:$20 sps:$4 sm:$0xff]   ;;  %v703_v39 = vld [vmem:[%s893_s0 + $0x28] ss:$20 sps:$4 sm:$0xff]   ;;  %v704_v40 = vld [vmem:[%s892_s1 + $0x110] sm:$0xff]  }
   0xf   :  { %594 = vmatpush3.bf16.msra.mxu0 %v674_v13  ;;  %v705_v41 = vld [vmem:[%s893_s0 + $0x34] ss:$20 sps:$4 sm:$0xff]   ;;  %v708_v43 = vld [vmem:[%s892_s1 + $0x118] sm:$0xff]   ;;  %v709_v44 = vld [vmem:[%s893_s0 + $0x10] ss:$20 sps:$4 sm:$0xff]  }
  0x10   :  { %595 = vmatprep.subr.bf16.mxu0 %v677_v16  ;;  %v710_v45 = vld [vmem:[%s893_s0 + $0x38] ss:$20 sps:$4 sm:$0xff]   ;;  %v538_v47 = vld [vmem:[%s894_s2] ss:$0 sm:$0xff] }
  0x11   :  { %622 = vmatpush3.bf16.msra.mxu1 %v676_v15 }
  0x12   :  { %623 = vmatprep.subr.bf16.mxu1 %v679_v18 }
  0x13   :  { %596 = vmatpush3.bf16.msra.mxu0 %v678_v17 }
  0x14   :  { %597 = vmatprep.subr.bf16.mxu0 %v681_v20 }
  0x15   :  { %624 = vmatpush3.bf16.msra.mxu1 %v680_v19 }
  0x16   :  { %625 = vmatprep.subr.bf16.mxu1 %v683_v22 }
  0x17   :  { %598 = vmatpush3.bf16.msra.mxu0 %v682_v21 }
  0x18   :  { %599 = vmatprep.subr.bf16.mxu0 %v685_v24 }
  0x19   :  { %626 = vmatpush3.bf16.msra.mxu1 %v684_v23 }
  0x1a   :  { %627 = vmatprep.subr.bf16.mxu1 %v687_v26 }
  0x1b   :  { %600 = vmatpush3.bf16.msra.mxu0 %v686_v25 }
  0x1c   :  { %601 = vmatprep.subr.bf16.mxu0 %v689_v28 }
  0x1d   :  { %628 = vmatpush3.bf16.msra.mxu1 %v688_v27 }
  0x1e   :  { %629 = vmatprep.subr.bf16.mxu1 %v691_v30 }
  0x1f   :  { %602 = vmatpush3.bf16.msra.mxu0 %v690_v29 }
  0x20   :  { %649 = vmatprep.subr.bf16.mxu0 %v696_v34 }
  0x21   :  { %630 = vmatpush3.bf16.msra.mxu1 %v695_v33 }
  0x22   :  { %412 = vmatmul.mubr.bf16.vlgmr.msra.gmra.mrb[0].mxu0 %v692_v31 }
  0x23   :  { %650 = vmatpush3.bf16.msra.mxu0 %v696_v34  ;;  %419 = vmatprep.mubr.bf16.mxu0 %v701_v38 }
  0x24   :  { %461 = vmatmul.mubr.bf16.vlgmr.msra.gmra.mrb[0].mxu1 %v697_v35  ;;  %651 = vmatprep.subr.bf16.mxu0 %v700_v37 }
  0x25   :  { %468 = vmatprep.mubr.bf16.mxu1 %v705_v41 }
  0x27   :  { %652 = vmatpush3.bf16.msra.mxu0 %v700_v37 }
  0x28   :  { %653 = vmatprep.subr.bf16.mxu0 %v704_v40 }
  0x2a   :  { %420 = vmatmul.mubr.bf16.gmra.mrb[4].mxu0 %v703_v39 }
  0x2b   :  { %657 = vmatprep.mubr.msk.bf16.mxu0 %vm372_vm0, %v709_v44  ;;  %654 = vmatpush3.bf16.msra.mxu0 %v704_v40 }
  0x2c   :  { %469 = vmatmul.mubr.bf16.gmra.mrb[4].mxu1 %v707_v42  ;;  %655 = vmatprep.subr.bf16.mxu0 %v708_v43 }
  0x2f   :  { %656 = vmatpush3.bf16.msra.mxu0 %v708_v43 }
  0x32   :  { %658 = vmatmul.mubr.msk.bf16.vlgmr.msra.gmra.mrb[8].mxu0 %vm372_vm0, %v710_v45 }
  0xf5   :  { %v603_v46 = vpop.f32.mrb[0].mxu0 }
  0xf6   :  { %v604_v48 = vpop.f32.mrb[1].mxu0 }
  0xf7   :  { %v605_v49 = vadd.f32 %v604_v48, %v603_v46  ;;  %v606_v50 = vpop.f32.mrb[2].mxu0  ;;  %v631_v51 = vpop.f32.mrb[0].mxu1 }
  0xf8   :  { %v607_v52 = vpop.f32.mrb[3].mxu0  ;;  %v632_v55 = vpop.f32.mrb[1].mxu1 }
  0xf9   :  { %v414_v53 = vadd.f32 %v605_v49, %v538_v47  ;;  %v608_v54 = vadd.f32 %v607_v52, %v606_v50  ;;  %v633_v56 = vadd.f32 %v632_v55, %v631_v51  ;;  %v634_v57 = vpop.f32.mrb[2].mxu1 }
  0xfa   :  { %v635_v59 = vpop.f32.mrb[3].mxu1 }
  0xfb   :  { %v417_v58 = vadd.f32 %v608_v54, %v538_v47  ;;  %v636_v60 = vadd.f32 %v635_v59, %v634_v57  ;;  %v463_v61 = vadd.f32 %v633_v56, %v414_v53 }
  0xfd   :  { %v609_v62 = vpop.f32.mrb[4].mxu0  ;;  %v466_v0 = vadd.f32 %v636_v60, %v417_v58 }
  0xfe   :  { %v610_v63 = vpop.f32.mrb[5].mxu0 }
  0xff   :  { %v611_v1 = vadd.f32 %v610_v63, %v609_v62  ;;  %v612_v2 = vpop.f32.mrb[6].mxu0  ;;  %v637_v3 = vpop.f32.mrb[4].mxu1 }
 0x100   :  { %v613_v4 = vpop.f32.mrb[7].mxu0  ;;  %v638_v7 = vpop.f32.mrb[5].mxu1 }
 0x101   :  { %v422_v5 = vadd.f32 %v611_v1, %v538_v47  ;;  %v614_v6 = vadd.f32 %v613_v4, %v612_v2  ;;  %v639_v8 = vadd.f32 %v638_v7, %v637_v3  ;;  %v640_v9 = vpop.f32.mrb[6].mxu1 }
 0x102   :  { %v641_v11 = vpop.f32.mrb[7].mxu1 }
 0x103   :  { %v425_v10 = vadd.f32 %v614_v6, %v538_v47  ;;  %v642_v12 = vadd.f32 %v641_v11, %v640_v9  ;;  %v471_v13 = vadd.f32 %v639_v8, %v422_v5 }
 0x105   :  { %v659_v14 = vpop.f32.mrb[8].mxu0  ;;  %v474_v15 = vadd.f32 %v642_v12, %v425_v10 }
 0x106   :  { %v520_v16 = vadd.f32 %v659_v14, %v471_v13  ;;  %v511_v17 = vpop.f32.mrb[9].mxu0 }
 0x107   :  { %v512_v18 = vadd.f32 %v511_v17, %v463_v61  ;;  %v660_v19 = vpop.f32.mrb[10].mxu0 }
 0x108   :  { %711 = vtanh.f32 %v520_v16  ;;  %v523_v20 = vadd.f32 %v660_v19, %v474_v15  ;;  %v514_v21 = vpop.f32.mrb[11].mxu0 }
 0x109   :  { %713 = vtanh.f32 %v512_v18  ;;  %v515_v22 = vadd.f32 %v514_v21, %v466_v0 }
 0x10a   :  { %715 = vtanh.f32 %v523_v20 }
 0x10b   :  { %717 = vtanh.f32 %v515_v22 }
 0x112   :  { %v712_v23 = vpop.eup %711 }
 0x113   :  { %v714_v24 = vpop.eup %713  ;;  %532 = vst [vmem:[%s895_s3 + $0x10] sm:$0xff] %v712_v23 }
 0x114   :  { %v716_v25 = vpop.eup %715  ;;  %530 = vst [vmem:[%s895_s3] sm:$0xff] %v714_v24 }
 0x115   :  { %v718_v26 = vpop.eup %717  ;;  %533 = vst [vmem:[%s895_s3 + $0x18] sm:$0xff] %v716_v25 }
 0x116   :  { %531 = vst [vmem:[%s895_s3 + $0x8] sm:$0xff] %v718_v26 }

// kernel: _lambda_.2
= control target key start
LH: loop header
LB: loop body
LE: loop exit
PB: predicated region body
PF: predicated region fallthrough
CT: control target
= control target key end

     0   :  { %vm280_vm0 = vcmask 523264   ;;  %s5519_s30 = smov 96   ;;  %s5522_s13 = smov 80   ;;  %vm5523_vm1 = vmmov 0   ;;  %vm570_vm2 = vcmask 130048   ;;  %vm1562_vm3 = vcmask 261120   ;;  %s7151_s1 = inlined_call_operand.vmem [shape: bf16[256,64], index: 1, kind: input, shape index: {}]   ;;  %s7152_s0 = inlined_call_operand.vmem [shape: bf16[32,256], index: 0, kind: input, shape index: {}]   ;;  %s7153_s2 = inlined_call_operand.vmem [shape: f32[32,64], index: 2, kind: input, shape index: {}]   ;;  %s7154_s7 = inlined_call_operand.vmem [shape: bf16[2,64,192], index: 7, kind: input, shape index: {}]   ;;  %s7155_s4 = inlined_call_operand.vmem [shape: f32[2,6,64], index: 4, kind: input, shape index: {}]   ;;  %s7156_s5 = inlined_call_operand.vmem [shape: f32[2,1,192], index: 5, kind: input, shape index: {}]   ;;  %s7157_s11 = inlined_call_operand.vmem [shape: f32[16,16,16], index: 11, kind: input, shape index: {}]   ;;  %s7158_s8 = inlined_call_operand.vmem [shape: bf16[2,64,64], index: 8, kind: input, shape index: {}]   ;;  %s7159_s9 = inlined_call_operand.vmem [shape: bf16[2,64,256], index: 9, kind: input, shape index: {}]   ;;  %s7160_s10 = inlined_call_operand.vmem [shape: bf16[2,256,64], index: 10, kind: input, shape index: {}]   ;;  %s7161_s6 = inlined_call_operand.vmem [shape: f32[2,1,256], index: 6, kind: input, shape index: {}]   ;;  %s7162_s3 = inlined_call_operand.vmem [shape: f32[2,64], index: 3, kind: input, shape index: {}]   ;;  %s7163_s12 = inlined_call_operand.vmem [shape: bf16[32,64], index: 12, kind: output, shape index: {}]  }
   0x1   :  { %v5174_v0 = vld [vmem:[%s7151_s1 + $0x40] sm:$0xff]   ;;  %v5176_v2 = vld [vmem:[%s7151_s1 + $0x48] sm:$0xff]   ;;  %v5178_v4 = vld [vmem:[%s7151_s1 + $0x50] sm:$0xff]   ;;  %s5524_s14 = smov 64   ;;  %s5525_s28 = smov 16   ;;  %vm1565_vm4 = vcmask 392192  }
   0x2   :  { %v5175_v1 = vld [vmem:[%s7151_s1] sm:$0xff]   ;;  %4607 = vmatprep.subr.bf16.mxu0 %v5174_v0  ;;  %v5177_v3 = vld [vmem:[%s7151_s1 + $0x8] sm:$0xff]   ;;  %v5179_v5 = vld [vmem:[%s7151_s1 + $0x10] sm:$0xff]   ;;  %s5526_s29 = smov 32   ;;  %s5527_s15 = smov 48  }
   0x3   :  { %4608 = vmatpush3.bf16.msra.mxu0 %v5175_v1  ;;  %v5180_v6 = vld [vmem:[%s7151_s1 + $0x58] sm:$0xff]   ;;  %v5182_v8 = vld [vmem:[%s7151_s1 + $0x60] sm:$0xff]   ;;  %v5184_v10 = vld [vmem:[%s7151_s1 + $0x68] sm:$0xff]  }
   0x4   :  { %4609 = vmatprep.subr.bf16.mxu0 %v5176_v2  ;;  %v5181_v7 = vld [vmem:[%s7151_s1 + $0x18] sm:$0xff]   ;;  %v5183_v9 = vld [vmem:[%s7151_s1 + $0x20] sm:$0xff]   ;;  %v5185_v12 = vld [vmem:[%s7151_s1 + $0x28] sm:$0xff]  }
   0x5   :  { %v5192_v11 = vld [vmem:[%s7152_s0 + $0x4] ss:$8 sps:$4 sm:$0xff]   ;;  %v5186_v13 = vld [vmem:[%s7151_s1 + $0x70] sm:$0xff]   ;;  %v5188_v15 = vld [vmem:[%s7151_s1 + $0x78] sm:$0xff]  }
   0x6   :  { %230 = vmatprep.mubr.bf16.mxu0 %v5192_v11  ;;  %v5187_v14 = vld [vmem:[%s7151_s1 + $0x30] sm:$0xff]   ;;  %v5189_v16 = vld [vmem:[%s7151_s1 + $0x38] sm:$0xff]   ;;  %v5190_v17 = vld [vmem:[%s7152_s0] ss:$8 sps:$4 sm:$0xff]  }
   0x7   :  { %4610 = vmatpush3.bf16.msra.mxu0 %v5177_v3  ;;  %v5193_v18 = vld [vmem:[%s7152_s0 + $0x14] ss:$8 sps:$4 sm:$0xff]   ;;  %v5195_v19 = vld [vmem:[%s7152_s0 + $0x10] ss:$8 sps:$4 sm:$0xff]   ;;  %v78_v21 = vld [vmem:[%s7153_s2] sm:$0xff] }
   0x8   :  { %4611 = vmatprep.subr.bf16.mxu0 %v5178_v4  ;;  %v79_v25 = vld [vmem:[%s7153_s2 + $0x8] sm:$0xff]  ;;  %v80_v32 = vld [vmem:[%s7153_s2 + $0x10] sm:$0xff]  ;;  %v81_v37 = vld [vmem:[%s7153_s2 + $0x18] sm:$0xff]  ;;  %s5520_s2 = smov 112  }
   0x9   :  { %v5196_v0 = vld [vmem:[%s7154_s7 + $0x4] ss:$8 sps:$4 sm:$0xff]   ;;  %v5198_v1 = vld [vmem:[%s7154_s7] ss:$8 sps:$4 sm:$0xff]   ;;  %v5199_v2 = vld [vmem:[%s7154_s7 + $0x14] ss:$8 sps:$4 sm:$0xff]  }
   0xa   :  { %418 = vmatprep.subr.bf16.mxu1 %v5196_v0  ;;  %v5201_v3 = vld [vmem:[%s7154_s7 + $0x10] ss:$8 sps:$4 sm:$0xff]   ;;  %v5202_v4 = vld [vmem:[%s7154_s7 + $0x24] ss:$8 sps:$4 sm:$0xff]  }
   0xb   :  { %4612 = vmatpush3.bf16.msra.mxu0 %v5179_v5  ;;  %419 = vmatpush1.bf16.msra.mxu1 %v5198_v1  ;;  %v5204_v5 = vld [vmem:[%s7154_s7 + $0x20] ss:$8 sps:$4 sm:$0xff]  }
   0xc   :  { %4613 = vmatprep.subr.bf16.mxu0 %v5180_v6  ;;  %420 = vmatprep.subr.bf16.mxu1 %v5199_v2  ;;  %v5205_v6 = vld [vmem:[%s7154_s7 + $0x34] ss:$8 sps:$4 sm:$0xff]   ;;  %v5521_v2 = vmov 0.0  }
   0xf   :  { %4614 = vmatpush3.bf16.msra.mxu0 %v5181_v7  ;;  %421 = vmatpush1.bf16.msra.mxu1 %v5201_v3  ;;  %v5518_v7 = vmov 0  }
  0x10   :  { %4615 = vmatprep.subr.bf16.mxu0 %v5182_v8  ;;  %422 = vmatprep.subr.bf16.mxu1 %v5202_v4  ;;  %v5207_v8 = vld [vmem:[%s7154_s7 + $0x30] ss:$8 sps:$4 sm:$0xff]  }
  0x11   :  { %450 = vmatprep.mubr.bf16.mxu1 %v5518_v7 }
  0x13   :  { %4616 = vmatpush3.bf16.msra.mxu0 %v5183_v9  ;;  %423 = vmatpush1.bf16.msra.mxu1 %v5204_v5 }
  0x14   :  { %4617 = vmatprep.subr.bf16.mxu0 %v5184_v10  ;;  %424 = vmatprep.subr.bf16.mxu1 %v5205_v6 }
  0x17   :  { %4618 = vmatpush3.bf16.msra.mxu0 %v5185_v12  ;;  %425 = vmatpush1.bf16.msra.mxu1 %v5207_v8 }
  0x18   :  { %4619 = vmatprep.subr.bf16.mxu0 %v5186_v13  ;;  %v334_v13 = vlaneseq  ;;  %4767 = vmatprep.subr.bf16.mxu1 %v5521_v2 }
  0x1b   :  { %4620 = vmatpush3.bf16.msra.mxu0 %v5187_v14 }
  0x1c   :  { %4621 = vmatprep.subr.bf16.mxu0 %v5188_v15 }
  0x1f   :  { %4622 = vmatpush3.bf16.msra.mxu0 %v5189_v16 }
  0x20   :  { %4779 = vmatprep.subr.bf16.mxu0 %v5521_v2 }
  0x22   :  { %231 = vmatmul.mubr.bf16.vlgmr.msra.gmra.mrb[0].mxu0 %v5190_v17  ;;  %v5723_v17 = vshrl.u32 %v334_v13, 7 }
  0x23   :  { %238 = vmatprep.mubr.bf16.mxu0 %v5193_v18 }
  0x2a   :  { %239 = vmatmul.mubr.bf16.gmra.mrb[4].mxu0 %v5195_v19 }
  0x2b   :  { %4781 = vmatprep.mubr.msk.bf16.mxu0 %vm5523_vm1, %v5521_v2 }
  0xf5   :  { %v4623_v20 = vpop.f32.mrb[0].mxu0 }
  0xf6   :  { %v4624_v22 = vpop.f32.mrb[1].mxu0 }
  0xf7   :  { %v4625_v23 = vadd.f32 %v4624_v22, %v4623_v20  ;;  %v4626_v24 = vpop.f32.mrb[2].mxu0 }
  0xf8   :  { %v4627_v26 = vpop.f32.mrb[3].mxu0 }
  0xf9   :  { %v5660_v27 = vadd.f32 %v4625_v23, %v78_v21  ;;  %v4628_v28 = vadd.f32 %v4627_v26, %v4626_v24  ;;  %v5726_v21 = vsub.s32 0, %v5723_v17  ;;  %v279_v23 = vld [vmem:[%s7155_s4] sm:$0x3f] }
  0xfb   :  { %v5662_v29 = vadd.f32 %v4628_v28, %v79_v25  ;;  %v281_v30 = vsel %vm280_vm0, %v5660_v27, 0.0  ;;  %v337_v28 = vrot.slane %v279_v23, %v5726_v21 }
  0xfc   :  { %282 = vadd.xlane.f32.xlu0 %v281_v30  ;;  %v5733_v30 = vsub.s32 1, %v5723_v17 }
  0xfd   :  { %v4629_v31 = vpop.f32.mrb[4].mxu0  ;;  %v284_v35 = vsel %vm280_vm0, %v5662_v29, 0.0 }
  0xfe   :  { %v4630_v33 = vpop.f32.mrb[5].mxu0 }
  0xff   :  { %v4631_v34 = vadd.f32 %v4630_v33, %v4629_v31  ;;  %v4632_v36 = vpop.f32.mrb[6].mxu0 }
 0x100   :  { %285 = vadd.xlane.f32.xlu0 %v284_v35  ;;  %v4633_v38 = vpop.f32.mrb[7].mxu0 }
 0x101   :  { %v5674_v39 = vadd.f32 %v4631_v34, %v80_v32  ;;  %v4634_v40 = vadd.f32 %v4633_v38, %v4632_v36  ;;  %v345_v34 = vrot.slane %v279_v23, %v5733_v30 }
 0x103   :  { %v5676_v41 = vadd.f32 %v4634_v40, %v81_v37  ;;  %v287_v42 = vsel %vm280_vm0, %v5674_v39, 0.0 }
 0x104   :  { %288 = vadd.xlane.f32.xlu1 %v287_v42 }
 0x105   :  { %v290_v43 = vsel %vm280_vm0, %v5676_v41, 0.0 }
 0x108   :  { %291 = vadd.xlane.f32.xlu1 %v290_v43 }
 0x189   :  { %v283_v44 = vpop.xlane.xlu0 %282 }
 0x18a   :  { %v294_v45 = vmul.f32 0.015625, %v283_v44 }
 0x18c   :  { %v298_v46 = vsub.f32 %v5660_v27, %v294_v45 }
 0x18d   :  { %v286_v47 = vpop.xlane.xlu0 %285 }
 0x18e   :  { %v295_v48 = vmul.f32 0.015625, %v286_v47  ;;  %v302_v49 = vmul.f32 %v298_v46, %v298_v46 }
 0x190   :  { %v5684_v50 = vsub.f32 %v5662_v29, %v295_v48  ;;  %v306_v51 = vsel %vm280_vm0, %v302_v49, 0.0 }
 0x191   :  { %v289_v52 = vpop.xlane.xlu1 %288  ;;  %307 = vadd.xlane.f32.xlu0 %v306_v51 }
 0x192   :  { %v296_v53 = vmul.f32 0.015625, %v289_v52  ;;  %v303_v54 = vmul.f32 %v5684_v50, %v5684_v50 }
 0x194   :  { %v5690_v55 = vsub.f32 %v5674_v39, %v296_v53  ;;  %v309_v56 = vsel %vm280_vm0, %v303_v54, 0.0 }
 0x195   :  { %v292_v57 = vpop.xlane.xlu1 %291  ;;  %310 = vadd.xlane.f32.xlu1 %v309_v56 }
 0x196   :  { %v297_v58 = vmul.f32 0.015625, %v292_v57  ;;  %v304_v59 = vmul.f32 %v5690_v55, %v5690_v55 }
 0x198   :  { %v301_v60 = vsub.f32 %v5676_v41, %v297_v58  ;;  %v312_v61 = vsel %vm280_vm0, %v304_v59, 0.0 }
 0x199   :  { %313 = vadd.xlane.f32.xlu0 %v312_v61 }
 0x19a   :  { %v305_v62 = vmul.f32 %v301_v60, %v301_v60 }
 0x19c   :  { %v315_v63 = vsel %vm280_vm0, %v305_v62, 0.0 }
 0x19d   :  { %316 = vadd.xlane.f32.xlu1 %v315_v63 }
 0x21e   :  { %v308_v9 = vpop.xlane.xlu0 %307 }
 0x21f   :  { %v318_v10 = vmul.f32 0.015625, %v308_v9 }
 0x221   :  { %v322_v11 = vadd.f32 1e-05, %v318_v10 }
 0x222   :  { %v311_v12 = vpop.xlane.xlu1 %310 }
 0x223   :  { %5284 = vrsqrt.f32 %v322_v11  ;;  %v319_v14 = vmul.f32 0.015625, %v311_v12 }
 0x225   :  { %v323_v15 = vadd.f32 1e-05, %v319_v14 }
 0x226   :  { %v314_v16 = vpop.xlane.xlu0 %313 }
 0x227   :  { %5286 = vrsqrt.f32 %v323_v15  ;;  %v320_v18 = vmul.f32 0.015625, %v314_v16 }
 0x229   :  { %v324_v19 = vadd.f32 1e-05, %v320_v18 }
 0x22a   :  { %v317_v20 = vpop.xlane.xlu1 %316 }
 0x22b   :  { %5288 = vrsqrt.f32 %v324_v19  ;;  %v321_v22 = vmul.f32 0.015625, %v317_v20 }
 0x22d   :  { %v5285_v24 = vpop.eup %5284  ;;  %v325_v25 = vadd.f32 1e-05, %v321_v22 }
 0x22e   :  { %v330_v26 = vmul.f32 %v5285_v24, %v298_v46 }
 0x22f   :  { %5290 = vrsqrt.f32 %v325_v25 }
 0x230   :  { %v338_v33 = vmul.f32 %v337_v28, %v330_v26 }
 0x231   :  { %v5287_v31 = vpop.eup %5286 }
 0x232   :  { %v331_v32 = vmul.f32 %v5287_v31, %v5684_v50  ;;  %v346_v37 = vadd.f32 %v345_v34, %v338_v33  ;;  %v360_v50 = vld [vmem:[%s7156_s5] sm:$0x3] }
 0x233   :  { %v365_v51 = vrot.slane %v360_v50, %v5726_v21  ;;  %v369_v53 = vrot.slane %v360_v50, %v5733_v30 }
 0x234   :  { %v339_v35 = vmul.f32 %v337_v28, %v331_v32 }
 0x235   :  { %v5289_v36 = vpop.eup %5288 }
 0x236   :  { %v347_v38 = vadd.f32 %v345_v34, %v339_v35  ;;  %v332_v40 = vmul.f32 %v5289_v36, %v5690_v55 }
 0x238   :  { %v350_v42 = vpack.c.bf16 %v347_v38, %v346_v37  ;;  %v340_v45 = vmul.f32 %v337_v28, %v332_v40 }
 0x239   :  { %v5291_v43 = vpop.eup %5290 }
 0x23a   :  { %4432 = vmatmul.mubr.msk.bf16.vlgmr.msra.gmra.mrb[0].mxu1 %vm280_vm0, %v350_v42  ;;  %v333_v44 = vmul.f32 %v5291_v43, %v301_v60  ;;  %v348_v47 = vadd.f32 %v345_v34, %v340_v45 }
 0x23b   :  { %460 = vmatprep.mubr.bf16.mxu1 %v5518_v7 }
 0x23c   :  { %v341_v46 = vmul.f32 %v337_v28, %v333_v44 }
 0x23e   :  { %v349_v48 = vadd.f32 %v345_v34, %v341_v46 }
 0x240   :  { %v351_v49 = vpack.c.bf16 %v349_v48, %v348_v47 }
 0x242   :  { %4433 = vmatmul.mubr.msk.bf16.gmra.mrb[4].mxu1 %vm280_vm0, %v351_v49 }
 0x243   :  { %4769 = vmatprep.mubr.msk.bf16.mxu1 %vm5523_vm1, %v5521_v2 }
 0x30d   :  { %v452_v52 = vpop.f32.mrb[0].mxu1 }
 0x30e   :  { %v454_v54 = vpop.f32.mrb[1].mxu1  ;;  %v453_v56 = vadd.f32 %v452_v52, %v365_v51 }
 0x30f   :  { %v456_v55 = vpop.f32.mrb[2].mxu1  ;;  %v5746_v59 = vadd.f32 %v454_v54, %v369_v53 }
 0x310   :  { %v457_v57 = vadd.f32 %v456_v55, %v365_v51  ;;  %v458_v58 = vpop.f32.mrb[3].mxu1 }
 0x311   :  { %v5748_v60 = vadd.f32 %v458_v58, %v369_v53 }
 0x312   :  { %v4999_v61 = vpack.i.bf16 %v457_v57, %v453_v56  ;;  %v5750_v62 = vpack.c.bf16 %v457_v57, %v453_v56 }
 0x313   :  { %v559_v63 = vpack.c.bf16 %v5748_v60, %v5746_v59  ;;  %v5756_v0 = vpack.i.bf16 %v5748_v60, %v5746_v59  ;;  %v247_v59 = vld [vmem:[%s7157_s11] sm:$0xff] }
 0x314   :  { %5000 = vrot.lane.b32.xlu1 %v4999_v61, %s5519_s30  ;;  %4995 = vrot.lane.b32.xlu0 %v4999_v61, %s5520_s2 }
 0x315   :  { %v462_v1 = vpop.f32.mrb[4].mxu1 }
 0x316   :  { %v464_v3 = vpop.f32.mrb[5].mxu1  ;;  %v463_v6 = vadd.f32 %v462_v1, %v365_v51 }
 0x317   :  { %v5762_v4 = vadd.f32 %v464_v3, %v369_v53  ;;  %v466_v5 = vpop.f32.mrb[6].mxu1 }
 0x318   :  { %v467_v8 = vadd.f32 %v466_v5, %v365_v51  ;;  %5005 = vrot.lane.b32.xlu1 %v4999_v61, %s5522_s13  ;;  %v468_v9 = vpop.f32.mrb[7].mxu1 }
 0x319   :  { %v5767_v10 = vadd.f32 %v468_v9, %v369_v53 }
 0x31a   :  { %v5014_v11 = vpack.i.bf16 %v467_v8, %v463_v6  ;;  %v5771_v12 = vpack.c.bf16 %v467_v8, %v463_v6  ;;  %v248_v6 = vld [vmem:[%s7157_s11 + $0x8] sm:$0xff] }
 0x31b   :  { %v5775_v13 = vpack.i.bf16 %v5767_v10, %v5762_v4  ;;  %v563_v14 = vpack.c.bf16 %v5767_v10, %v5762_v4 }
 0x31c   :  { %5015 = vrot.lane.b32.xlu0 %v5014_v11, %s5519_s30  ;;  %5010 = vrot.lane.b32.xlu1 %v5014_v11, %s5520_s2 }
 0x320   :  { %568 = vrot.lane.b32.xlu0 %v5750_v62, %s5524_s14  ;;  %5020 = vrot.lane.b32.xlu1 %v5014_v11, %s5522_s13 }
 0x386   :  { %v5001_v15 = vpop.permute.xlu1 %5000  ;;  %v4996_v16 = vpop.permute.xlu0 %4995 }
 0x387   :  { %v5003_v18 = vunpack.i.h.bf16 %v5001_v15  ;;  %v5002_v19 = vunpack.i.l.bf16 %v5001_v15  ;;  %v4998_v20 = vunpack.i.h.bf16 %v4996_v16  ;;  %v4997_v22 = vunpack.i.l.bf16 %v4996_v16 }
 0x389   :  { %v513_v23 = vpack.c.bf16 %v5003_v18, %v5002_v19  ;;  %v512_v24 = vpack.c.bf16 %v4998_v20, %v4997_v22  ;;  %v249_v20 = vld [vmem:[%s7157_s11 + $0x10] sm:$0xff] }
 0x38a   :  { %v5006_v25 = vpop.permute.xlu1 %5005 }
 0x38b   :  { %v5008_v26 = vunpack.i.h.bf16 %v5006_v25  ;;  %v5007_v28 = vunpack.i.l.bf16 %v5006_v25  ;;  %669 = vrot.lane.b32.xlu0 %v513_v23, %s5524_s14  ;;  %619 = vrot.lane.b32.xlu1 %v512_v24, %s5524_s14 }
 0x38d   :  { %v514_v31 = vpack.c.bf16 %v5008_v26, %v5007_v28  ;;  %v252_v28 = vld [vmem:[%s7157_s11 + $0x28] sm:$0xff] }
 0x38e   :  { %v5011_v32 = vpop.permute.xlu1 %5010  ;;  %v5016_v33 = vpop.permute.xlu0 %5015 }
 0x38f   :  { %v5013_v34 = vunpack.i.h.bf16 %v5011_v32  ;;  %v5012_v35 = vunpack.i.l.bf16 %v5011_v32  ;;  %v5018_v36 = vunpack.i.h.bf16 %v5016_v33  ;;  %v5017_v37 = vunpack.i.l.bf16 %v5016_v33  ;;  %769 = vrot.lane.b32.xlu0 %v5771_v12, %s5524_s14  ;;  %719 = vrot.lane.b32.xlu1 %v514_v31, %s5524_s14 }
 0x391   :  { %v517_v38 = vpack.c.bf16 %v5018_v36, %v5017_v37  ;;  %v516_v40 = vpack.c.bf16 %v5013_v34, %v5012_v35 }
 0x392   :  { %v5021_v42 = vpop.permute.xlu1 %5020  ;;  %v569_v43 = vpop.permute.xlu0 %568 }
 0x393   :  { %v5023_v44 = vunpack.i.h.bf16 %v5021_v42  ;;  %v5022_v45 = vunpack.i.l.bf16 %v5021_v42  ;;  %v575_v46 = vsel %vm570_vm2, %v569_v43, 0  ;;  %869 = vrot.lane.b32.xlu0 %v517_v38, %s5524_s14  ;;  %819 = vrot.lane.b32.xlu1 %v516_v40, %s5524_s14  ;;  %v251_v43 = vld [vmem:[%s7157_s11 + $0x20] sm:$0xff] }
 0x394   :  { %4768 = vmatpush3.bf16.xpose.msra.mxu1 %v575_v46 }
 0x395   :  { %v518_v47 = vpack.c.bf16 %v5023_v44, %v5022_v45  ;;  %4773 = vmatprep.subr.bf16.mxu1 %v5521_v2 }
 0x397   :  { %919 = vrot.lane.b32.xlu1 %v518_v47, %s5524_s14 }
 0x39b   :  { %4770 = vmatmul.mubr.msk.bf16.vlgmr.msra.gmra.mrb[8].mxu1 %vm570_vm2, %v5750_v62 }
 0x39c   :  { %4775 = vmatprep.mubr.msk.bf16.mxu1 %vm5523_vm1, %v5521_v2 }
 0x3fd   :  { %v670_v48 = vpop.permute.xlu0 %669  ;;  %v620_v49 = vpop.permute.xlu1 %619 }
 0x3fe   :  { %v675_v50 = vsel %vm570_vm2, %v670_v48, 0  ;;  %v625_v51 = vsel %vm570_vm2, %v620_v49, 0 }
 0x3ff   :  { %4774 = vmatpush3.bf16.xpose.msra.mxu1 %v625_v51  ;;  %4780 = vmatpush3.bf16.xpose.msra.mxu0 %v675_v50 }
 0x400   :  { %4785 = vmatprep.subr.bf16.mxu1 %v5521_v2  ;;  %4791 = vmatprep.subr.bf16.mxu0 %v5521_v2 }
 0x401   :  { %v770_v52 = vpop.permute.xlu0 %769  ;;  %v720_v53 = vpop.permute.xlu1 %719 }
 0x402   :  { %v775_v54 = vsel %vm570_vm2, %v770_v52, 0  ;;  %v725_v55 = vsel %vm570_vm2, %v720_v53, 0 }
 0x405   :  { %v870_v56 = vpop.permute.xlu0 %869  ;;  %v820_v57 = vpop.permute.xlu1 %819 }
 0x406   :  { %4776 = vmatmul.mubr.msk.bf16.vlgmr.msra.gmra.mrb[12].mxu1 %vm570_vm2, %v512_v24  ;;  %4782 = vmatmul.mubr.msk.bf16.vlgmr.msra.gmra.mrb[8].mxu0 %vm570_vm2, %v513_v23  ;;  %v875_v58 = vsel %vm570_vm2, %v870_v56, 0  ;;  %v825_v61 = vsel %vm570_vm2, %v820_v57, 0 }
 0x407   :  { %4786 = vmatpush3.bf16.xpose.msra.mxu1 %v725_v55  ;;  %4792 = vmatpush3.bf16.xpose.msra.mxu0 %v775_v54  ;;  %v254_v54 = vld [vmem:[%s7157_s11 + $0x38] sm:$0xff]  ;;  %v253_v55 = vld [vmem:[%s7157_s11 + $0x30] sm:$0xff] }
 0x408   :  { %4787 = vmatprep.mubr.msk.bf16.mxu1 %vm5523_vm1, %v5521_v2  ;;  %4793 = vmatprep.mubr.msk.bf16.mxu0 %vm5523_vm1, %v5521_v2 }
 0x409   :  { %4797 = vmatprep.subr.bf16.mxu1 %v5521_v2  ;;  %4803 = vmatprep.subr.bf16.mxu0 %v5521_v2  ;;  %v920_v62 = vpop.permute.xlu1 %919 }
 0x40a   :  { %v925_v1 = vsel %vm570_vm2, %v920_v62, 0  ;;  %v256_v62 = vld [vmem:[%s7157_s11 + $0x48] sm:$0xff] }
 0x40e   :  { %4788 = vmatmul.mubr.msk.bf16.vlgmr.msra.gmra.mrb[16].mxu1 %vm570_vm2, %v514_v31  ;;  %4794 = vmatmul.mubr.msk.bf16.vlgmr.msra.gmra.mrb[12].mxu0 %vm570_vm2, %v5771_v12  ;;  %v250_v31 = vld [vmem:[%s7157_s11 + $0x18] sm:$0xff] }
 0x40f   :  { %4798 = vmatpush3.bf16.xpose.msra.mxu1 %v825_v61  ;;  %4804 = vmatpush3.bf16.xpose.msra.mxu0 %v875_v58 }
 0x410   :  { %4799 = vmatprep.mubr.msk.bf16.mxu1 %vm5523_vm1, %v5521_v2  ;;  %4805 = vmatprep.mubr.msk.bf16.mxu0 %vm5523_vm1, %v5521_v2 }
 0x411   :  { %4809 = vmatprep.subr.bf16.mxu1 %v5521_v2  ;;  %4815 = vmatprep.subr.bf16.mxu0 %v5521_v2 }
 0x416   :  { %4800 = vmatmul.mubr.msk.bf16.vlgmr.msra.gmra.mrb[20].mxu1 %vm570_vm2, %v516_v40  ;;  %4806 = vmatmul.mubr.msk.bf16.vlgmr.msra.gmra.mrb[16].mxu0 %vm570_vm2, %v517_v38 }
 0x417   :  { %4810 = vmatpush3.bf16.xpose.msra.mxu1 %v925_v1  ;;  %4816 = vmatpush3.bf16.msra.mxu0 %v559_v63 }
 0x418   :  { %4811 = vmatprep.mubr.msk.bf16.mxu1 %vm5523_vm1, %v5521_v2  ;;  %4821 = vmatprep.subr.bf16.mxu1 %v5521_v2 }
 0x419   :  { %4817 = vmatprep.mubr.msk.bf16.mxu0 %vm5523_vm1, %v5521_v2  ;;  %4827 = vmatprep.subr.bf16.mxu0 %v5521_v2 }
 0x41e   :  { %4812 = vmatmul.mubr.msk.bf16.vlgmr.msra.gmra.mrb[24].mxu1 %vm570_vm2, %v518_v47 }
 0x41f   :  { %4823 = vmatprep.mubr.msk.bf16.mxu1 %vm5523_vm1, %v5521_v2 }
 0x46e   :  { %v611_v3 = vpop.f32.mrb[8].mxu1 }
 0x46f   :  { %v968_v60 = vmul.f32 0.25, %v611_v3  ;;  %v4771_v63 = vpop.f32.mrb[9].mxu1 }
 0x470   :  { %v614_v5 = vpop.f32.mrb[10].mxu1  ;;  %v255_v63 = vld [vmem:[%s7157_s11 + $0x40] sm:$0xff] }
 0x471   :  { %v969_v8 = vmul.f32 0.25, %v614_v5  ;;  %v4772_v9 = vpop.f32.mrb[11].mxu1  ;;  %v5844_v11 = vadd.f32 %v968_v60, %v247_v59 }
 0x473   :  { %v1000_v12 = vsel %vm570_vm2, %v5844_v11, -inf  ;;  %v5848_v15 = vadd.f32 %v969_v8, %v248_v6 }
 0x474   :  { %1001 = vmax.xlane.f32.xlu0 %v1000_v12 }
 0x475   :  { %v1003_v16 = vsel %vm570_vm2, %v5848_v15, -inf }
 0x476   :  { %1004 = vmax.xlane.f32.xlu1 %v1003_v16 }
 0x4d9   :  { %v661_v18 = vpop.f32.mrb[12].mxu1  ;;  %v711_v19 = vpop.f32.mrb[8].mxu0 }
 0x4da   :  { %v970_v22 = vmul.f32 0.25, %v661_v18  ;;  %v4777_v23 = vpop.f32.mrb[13].mxu1  ;;  %v4783_v24 = vpop.f32.mrb[9].mxu0  ;;  %v972_v37 = vmul.f32 0.25, %v711_v19 }
 0x4db   :  { %v664_v25 = vpop.f32.mrb[14].mxu1  ;;  %v714_v26 = vpop.f32.mrb[10].mxu0  ;;  %v258_v24 = vld [vmem:[%s7157_s11 + $0x58] sm:$0xff] }
 0x4dc   :  { %v971_v32 = vmul.f32 0.25, %v664_v25  ;;  %v973_v33 = vmul.f32 0.25, %v714_v26  ;;  %v4778_v34 = vpop.f32.mrb[15].mxu1  ;;  %v4784_v35 = vpop.f32.mrb[11].mxu0  ;;  %v5861_v36 = vadd.f32 %v970_v22, %v249_v20  ;;  %v5876_v51 = vadd.f32 %v972_v37, %v251_v43  ;;  %v257_v25 = vld [vmem:[%s7157_s11 + $0x50] sm:$0xff] }
 0x4dd   :  { %v260_v34 = vld [vmem:[%s7157_s11 + $0x68] sm:$0xff] }
 0x4de   :  { %v1006_v38 = vsel %vm570_vm2, %v5861_v36, -inf  ;;  %v5865_v40 = vadd.f32 %v973_v33, %v252_v28  ;;  %v5867_v42 = vadd.f32 %v971_v32, %v250_v31  ;;  %v1012_v3 = vsel %vm570_vm2, %v5876_v51, -inf }
 0x4df   :  { %1007 = vmax.xlane.f32.xlu0 %v1006_v38 }
 0x4e0   :  { %v1015_v44 = vsel %vm570_vm2, %v5865_v40, -inf  ;;  %v1009_v50 = vsel %vm570_vm2, %v5867_v42, -inf }
 0x4e1   :  { %v811_v45 = vpop.f32.mrb[12].mxu0  ;;  %1016 = vmax.xlane.f32.xlu1 %v1015_v44  ;;  %v761_v46 = vpop.f32.mrb[16].mxu1  ;;  %v259_v44 = vld [vmem:[%s7157_s11 + $0x60] sm:$0xff] }
 0x4e2   :  { %v974_v47 = vmul.f32 0.25, %v761_v46  ;;  %v4789_v48 = vpop.f32.mrb[17].mxu1  ;;  %v4795_v49 = vpop.f32.mrb[13].mxu0  ;;  %v976_v1 = vmul.f32 0.25, %v811_v45 }
 0x4e3   :  { %v814_v52 = vpop.f32.mrb[14].mxu0  ;;  %1010 = vmax.xlane.f32.xlu0 %v1009_v50  ;;  %v764_v53 = vpop.f32.mrb[18].mxu1 }
 0x4e4   :  { %v977_v56 = vmul.f32 0.25, %v814_v52  ;;  %v975_v57 = vmul.f32 0.25, %v764_v53  ;;  %v4790_v58 = vpop.f32.mrb[19].mxu1  ;;  %v4796_v61 = vpop.f32.mrb[15].mxu0  ;;  %v5891_v60 = vadd.f32 %v974_v47, %v253_v55  ;;  %v5902_v20 = vadd.f32 %v976_v1, %v255_v63 }
 0x4e6   :  { %v5889_v59 = vadd.f32 %v975_v57, %v254_v54  ;;  %v5898_v6 = vadd.f32 %v977_v56, %v256_v62  ;;  %v1018_v19 = vsel %vm570_vm2, %v5891_v60, -inf  ;;  %v1024_v37 = vsel %vm570_vm2, %v5902_v20, -inf  ;;  %v261_v54 = vld [vmem:[%s7157_s11 + $0x70] sm:$0xff] }
 0x4e7   :  { %1013 = vmax.xlane.f32.xlu0 %v1012_v3 }
 0x4e8   :  { %v1021_v5 = vsel %vm570_vm2, %v5889_v59, -inf  ;;  %v1027_v33 = vsel %vm570_vm2, %v5898_v6, -inf }
 0x4e9   :  { %v911_v8 = vpop.f32.mrb[16].mxu0  ;;  %1022 = vmax.xlane.f32.xlu1 %v1021_v5  ;;  %v861_v9 = vpop.f32.mrb[20].mxu1  ;;  %v262_v5 = vld [vmem:[%s7157_s11 + $0x78] sm:$0xff] }
 0x4ea   :  { %v978_v12 = vmul.f32 0.25, %v861_v9  ;;  %v4801_v16 = vpop.f32.mrb[21].mxu1  ;;  %v4807_v18 = vpop.f32.mrb[17].mxu0  ;;  %v980_v35 = vmul.f32 0.25, %v911_v8 }
 0x4eb   :  { %v914_v22 = vpop.f32.mrb[18].mxu0  ;;  %1019 = vmax.xlane.f32.xlu0 %v1018_v19  ;;  %v864_v23 = vpop.f32.mrb[22].mxu1 }
 0x4ec   :  { %v981_v26 = vmul.f32 0.25, %v914_v22  ;;  %v979_v28 = vmul.f32 0.25, %v864_v23  ;;  %v4802_v31 = vpop.f32.mrb[23].mxu1  ;;  %v4808_v32 = vpop.f32.mrb[19].mxu0  ;;  %v5919_v43 = vadd.f32 %v978_v12, %v257_v25  ;;  %v5930_v52 = vadd.f32 %v980_v35, %v259_v44 }
 0x4ed   :  { %1028 = vmax.xlane.f32.xlu1 %v1027_v33 }
 0x4ee   :  { %v5917_v38 = vadd.f32 %v979_v28, %v258_v24  ;;  %v5926_v46 = vadd.f32 %v981_v26, %v260_v34  ;;  %v1030_v50 = vsel %vm570_vm2, %v5919_v43, -inf  ;;  %v1036_v57 = vsel %vm570_vm2, %v5930_v52, -inf }
 0x4ef   :  { %1025 = vmax.xlane.f32.xlu0 %v1024_v37 }
 0x4f0   :  { %v1033_v45 = vsel %vm570_vm2, %v5917_v38, -inf  ;;  %v1039_v56 = vsel %vm570_vm2, %v5926_v46, -inf }
 0x4f1   :  { %1034 = vmax.xlane.f32.xlu1 %v1033_v45  ;;  %v961_v47 = vpop.f32.mrb[24].mxu1 }
 0x4f2   :  { %v982_v48 = vmul.f32 0.25, %v961_v47  ;;  %v4813_v49 = vpop.f32.mrb[25].mxu1 }
 0x4f3   :  { %1031 = vmax.xlane.f32.xlu0 %v1030_v50  ;;  %v964_v53 = vpop.f32.mrb[26].mxu1 }
 0x4f4   :  { %v4814_v55 = vpop.f32.mrb[27].mxu1  ;;  %v5939_v58 = vadd.f32 %v982_v48, %v261_v54  ;;  %v983_v3 = vmul.f32 0.25, %v964_v53 }
 0x4f5   :  { %1040 = vmax.xlane.f32.xlu1 %v1039_v56 }
 0x4f6   :  { %v1042_v61 = vsel %vm570_vm2, %v5939_v58, -inf  ;;  %v5953_v8 = vadd.f32 %v983_v3, %v262_v5 }
 0x4f7   :  { %1037 = vmax.xlane.f32.xlu0 %v1036_v57 }
 0x4f8   :  { %v1045_v9 = vsel %vm570_vm2, %v5953_v8, -inf }
 0x4fb   :  { %1043 = vmax.xlane.f32.xlu0 %v1042_v61 }
 0x501   :  { %v1002_v62 = vpop.xlane.xlu0 %1001 }
 0x502   :  { %v1048_v1 = vsub.f32 %v5844_v11, %v1002_v62 }
 0x503   :  { %v1005_v11 = vpop.xlane.xlu1 %1004 }
 0x504   :  { %v1064_v63 = vmul.f32 1.442695, %v1048_v1  ;;  %v1049_v16 = vsub.f32 %v5848_v15, %v1005_v11 }
 0x506   :  { %5030 = vrot.lane.b32.xlu1 %v5756_v0, %s5519_s30  ;;  %5292 = vpow2.f32 %v1064_v63  ;;  %v1066_v18 = vmul.f32 1.442695, %v1049_v16 }
 0x508   :  { %5294 = vpow2.f32 %v1066_v18 }
 0x510   :  { %v5957_v12 = vpop.eup %5292 }
 0x511   :  { %5025 = vrot.lane.b32.xlu0 %v5756_v0, %s5520_s2 }
 0x512   :  { %v5964_v19 = vpop.eup %5294 }
 0x513   :  { %v1099_v22 = vsel %vm570_vm2, %v5964_v19, 0.0 }
 0x515   :  { %5035 = vrot.lane.b32.xlu0 %v5756_v0, %s5522_s13  ;;  %v1096_v0 = vsel %vm570_vm2, %v5957_v12, 0.0 }
 0x52a   :  { %1046 = vmax.xlane.f32.xlu1 %v1045_v9 }
 0x534   :  { %1097 = vadd.xlane.f32.xlu0 %v1096_v0 }
 0x53b   :  { %5040 = vrot.lane.b32.xlu1 %v5775_v13, %s5520_s2 }
 0x55f   :  { %1100 = vadd.xlane.f32.xlu1 %v1099_v22 }
 0x56c   :  { %v1008_v23 = vpop.xlane.xlu0 %1007 }
 0x56d   :  { %v1050_v24 = vsub.f32 %v5861_v36, %v1008_v23 }
 0x56e   :  { %v1017_v25 = vpop.xlane.xlu1 %1016 }
 0x56f   :  { %v1068_v26 = vmul.f32 1.442695, %v1050_v24  ;;  %v1053_v28 = vsub.f32 %v5865_v40, %v1017_v25 }
 0x570   :  { %v1011_v31 = vpop.xlane.xlu0 %1010 }
 0x571   :  { %5296 = vpow2.f32 %v1068_v26  ;;  %v1051_v32 = vsub.f32 %v5867_v42, %v1011_v31  ;;  %v1074_v15 = vmul.f32 1.442695, %v1053_v28 }
 0x573   :  { %v1070_v33 = vmul.f32 1.442695, %v1051_v32 }
 0x574   :  { %v1014_v34 = vpop.xlane.xlu0 %1013 }
 0x575   :  { %5298 = vpow2.f32 %v1070_v33  ;;  %v1052_v35 = vsub.f32 %v5876_v51, %v1014_v34 }
 0x576   :  { %v1023_v37 = vpop.xlane.xlu1 %1022  ;;  %5300 = vpow2.f32 %v1074_v15 }
 0x577   :  { %v1072_v44 = vmul.f32 1.442695, %v1052_v35  ;;  %v1055_v45 = vsub.f32 %v5889_v59, %v1023_v37 }
 0x578   :  { %v1020_v36 = vpop.xlane.xlu0 %1019 }
 0x579   :  { %5302 = vpow2.f32 %v1072_v44  ;;  %v1078_v47 = vmul.f32 1.442695, %v1055_v45  ;;  %v1054_v40 = vsub.f32 %v5891_v60, %v1020_v36 }
 0x57a   :  { %v1029_v48 = vpop.xlane.xlu1 %1028 }
 0x57b   :  { %v5974_v49 = vpop.eup %5296  ;;  %5304 = vpow2.f32 %v1078_v47  ;;  %v1076_v42 = vmul.f32 1.442695, %v1054_v40  ;;  %v1057_v50 = vsub.f32 %v5898_v6, %v1029_v48 }
 0x57c   :  { %v1026_v53 = vpop.xlane.xlu0 %1025  ;;  %v1102_v51 = vsel %vm570_vm2, %v5974_v49, 0.0 }
 0x57d   :  { %5306 = vpow2.f32 %v1076_v42  ;;  %v1082_v54 = vmul.f32 1.442695, %v1057_v50  ;;  %v1056_v59 = vsub.f32 %v5902_v20, %v1026_v53  ;;  %1103 = vadd.xlane.f32.xlu0 %v1102_v51 }
 0x57e   :  { %v1035_v55 = vpop.xlane.xlu1 %1034 }
 0x57f   :  { %v5980_v56 = vpop.eup %5298  ;;  %5308 = vpow2.f32 %v1082_v54  ;;  %v1080_v60 = vmul.f32 1.442695, %v1056_v59  ;;  %v1059_v57 = vsub.f32 %v5917_v38, %v1035_v55 }
 0x580   :  { %v1032_v61 = vpop.xlane.xlu0 %1031  ;;  %v1105_v6 = vsel %vm570_vm2, %v5980_v56, 0.0  ;;  %v5985_v62 = vpop.eup %5300 }
 0x581   :  { %5310 = vpow2.f32 %v1080_v60  ;;  %v1086_v1 = vmul.f32 1.442695, %v1059_v57  ;;  %v1058_v3 = vsub.f32 %v5919_v43, %v1032_v61  ;;  %1106 = vadd.xlane.f32.xlu1 %v1105_v6  ;;  %v1111_v11 = vsel %vm570_vm2, %v5985_v62, 0.0 }
 0x582   :  { %v1041_v20 = vpop.xlane.xlu1 %1040 }
 0x583   :  { %v5988_v63 = vpop.eup %5302  ;;  %v1084_v5 = vmul.f32 1.442695, %v1058_v3  ;;  %v1061_v9 = vsub.f32 %v5926_v46, %v1041_v20  ;;  %5312 = vpow2.f32 %v1086_v1 }
 0x584   :  { %v1038_v0 = vpop.xlane.xlu0 %1037  ;;  %v1108_v38 = vsel %vm570_vm2, %v5988_v63, 0.0 }
 0x585   :  { %v5995_v16 = vpop.eup %5304  ;;  %5314 = vpow2.f32 %v1084_v5  ;;  %v1090_v18 = vmul.f32 1.442695, %v1061_v9  ;;  %v1060_v43 = vsub.f32 %v5930_v52, %v1038_v0  ;;  %1109 = vadd.xlane.f32.xlu0 %v1108_v38  ;;  %1112 = vadd.xlane.f32.xlu1 %v1111_v11 }
 0x586   :  { %v1117_v25 = vsel %vm570_vm2, %v5995_v16, 0.0  ;;  %v5031_v51 = vpop.permute.xlu1 %5030 }
 0x587   :  { %v5998_v22 = vpop.eup %5306  ;;  %v1088_v23 = vmul.f32 1.442695, %v1060_v43  ;;  %5316 = vpow2.f32 %v1090_v18  ;;  %v5033_v5 = vunpack.i.h.bf16 %v5031_v51  ;;  %v5032_v9 = vunpack.i.l.bf16 %v5031_v51 }
 0x588   :  { %v1044_v46 = vpop.xlane.xlu0 %1043  ;;  %v1114_v24 = vsel %vm570_vm2, %v5998_v22, 0.0 }
 0x589   :  { %v6004_v26 = vpop.eup %5308  ;;  %5318 = vpow2.f32 %v1088_v23  ;;  %v1062_v28 = vsub.f32 %v5939_v58, %v1044_v46  ;;  %1115 = vadd.xlane.f32.xlu0 %v1114_v24  ;;  %1118 = vadd.xlane.f32.xlu1 %v1117_v25  ;;  %v561_v18 = vpack.c.bf16 %v5033_v5, %v5032_v9 }
 0x58a   :  { %v1123_v33 = vsel %vm570_vm2, %v6004_v26, 0.0 }
 0x58b   :  { %v6007_v52 = vpop.eup %5310  ;;  %v1092_v31 = vmul.f32 1.442695, %v1062_v28 }
 0x58c   :  { %v5026_v32 = vpop.permute.xlu0 %5025  ;;  %v1120_v15 = vsel %vm570_vm2, %v6007_v52, 0.0 }
 0x58d   :  { %5320 = vpow2.f32 %v1092_v31  ;;  %v5028_v34 = vunpack.i.h.bf16 %v5026_v32  ;;  %v5027_v35 = vunpack.i.l.bf16 %v5026_v32  ;;  %1121 = vadd.xlane.f32.xlu0 %v1120_v15  ;;  %1124 = vadd.xlane.f32.xlu1 %v1123_v33  ;;  %v6013_v37 = vpop.eup %5312 }
 0x58e   :  { %v1129_v36 = vsel %vm570_vm2, %v6013_v37, 0.0 }
 0x58f   :  { %v6015_v58 = vpop.eup %5314  ;;  %v560_v44 = vpack.c.bf16 %v5028_v34, %v5027_v35 }
 0x590   :  { %v1126_v45 = vsel %vm570_vm2, %v6015_v58, 0.0  ;;  %v5036_v61 = vpop.permute.xlu0 %5035 }
 0x591   :  { %1127 = vadd.xlane.f32.xlu0 %v1126_v45  ;;  %4822 = vmatpush3.bf16.msra.mxu1 %v560_v44  ;;  %v6021_v47 = vpop.eup %5316  ;;  %v5038_v28 = vunpack.i.h.bf16 %v5036_v61  ;;  %v5037_v31 = vunpack.i.l.bf16 %v5036_v61 }
 0x592   :  { %1130 = vadd.xlane.f32.xlu1 %v1129_v36  ;;  %4833 = vmatprep.subr.bf16.mxu1 %v5521_v2  ;;  %v1135_v42 = vsel %vm570_vm2, %v6021_v47, 0.0 }
 0x593   :  { %v6024_v40 = vpop.eup %5318  ;;  %v562_v45 = vpack.c.bf16 %v5038_v28, %v5037_v31 }
 0x594   :  { %v1132_v48 = vsel %vm570_vm2, %v6024_v40, 0.0 }
 0x595   :  { %1133 = vadd.xlane.f32.xlu0 %v1132_v48 }
 0x596   :  { %1136 = vadd.xlane.f32.xlu1 %v1135_v42 }
 0x597   :  { %v6030_v50 = vpop.eup %5320 }
 0x598   :  { %v1138_v53 = vsel %vm570_vm2, %v6030_v50, 0.0 }
 0x59a   :  { %1139 = vadd.xlane.f32.xlu1 %v1138_v53 }
 0x5ab   :  { %5045 = vrot.lane.b32.xlu0 %v5775_v13, %s5519_s30 }
 0x5b7   :  { %v1047_v54 = vpop.xlane.xlu1 %1046 }
 0x5b8   :  { %v1063_v59 = vsub.f32 %v5953_v8, %v1047_v54 }
 0x5ba   :  { %v1094_v55 = vmul.f32 1.442695, %v1063_v59 }
 0x5bb   :  { %v6043_v6 = vpop.permute.xlu1 %5040 }
 0x5bc   :  { %5322 = vpow2.f32 %v1094_v55  ;;  %v5043_v59 = vunpack.i.h.bf16 %v6043_v6 }
 0x5c1   :  { %v1098_v1 = vpop.xlane.xlu0 %1097 }
 0x5c2   :  { %5324 = vrcp.f32 %v1098_v1 }
 0x5c6   :  { %v6037_v60 = vpop.eup %5322 }
 0x5c7   :  { %v1141_v57 = vsel %vm570_vm2, %v6037_v60, 0.0 }
 0x5c8   :  { %1142 = vadd.xlane.f32.xlu1 %v1141_v57 }
 0x5cc   :  { %v5325_v20 = vpop.eup %5324 }
 0x5cd   :  { %v1145_v0 = vmul.f32 %v5325_v20, %v5957_v12 }
 0x5d9   :  { %5050 = vrot.lane.b32.xlu1 %v5775_v13, %s5522_s13 }
 0x5ec   :  { %v1101_v3 = vpop.xlane.xlu1 %1100 }
 0x5ed   :  { %5326 = vrcp.f32 %v1101_v3 }
 0x5f7   :  { %v5327_v8 = vpop.eup %5326 }
 0x5f8   :  { %v1147_v38 = vmul.f32 %v5327_v8, %v5964_v19 }
 0x5fa   :  { %v1176_v11 = vpack.c.bf16 %v1147_v38, %v1145_v0 }
 0x5fc   :  { %4818 = vmatmul.mubr.msk.bf16.vlgmr.msra.gmra.mrb[20].mxu0 %vm570_vm2, %v1176_v11 }
 0x5fd   :  { %4828 = vmatpush3.bf16.msra.mxu0 %v561_v18  ;;  %4829 = vmatprep.mubr.msk.bf16.mxu0 %vm5523_vm1, %v5521_v2 }
 0x5fe   :  { %4839 = vmatprep.subr.bf16.mxu0 %v5521_v2 }
 0x60a   :  { %v1104_v13 = vpop.xlane.xlu0 %1103 }
 0x60b   :  { %5328 = vrcp.f32 %v1104_v13 }
 0x60e   :  { %v1107_v43 = vpop.xlane.xlu1 %1106 }
 0x60f   :  { %5330 = vrcp.f32 %v1107_v43 }
 0x612   :  { %v1110_v23 = vpop.xlane.xlu0 %1109  ;;  %v1113_v46 = vpop.xlane.xlu1 %1112 }
 0x613   :  { %5332 = vrcp.f32 %v1110_v23 }
 0x614   :  { %5334 = vrcp.f32 %v1113_v46 }
 0x615   :  { %v5329_v24 = vpop.eup %5328 }
 0x616   :  { %v1116_v12 = vpop.xlane.xlu0 %1115  ;;  %v1119_v19 = vpop.xlane.xlu1 %1118  ;;  %v1149_v32 = vmul.f32 %v5329_v24, %v5974_v49 }
 0x617   :  { %5336 = vrcp.f32 %v1116_v12 }
 0x618   :  { %5338 = vrcp.f32 %v1119_v19 }
 0x619   :  { %v5331_v25 = vpop.eup %5330 }
 0x61a   :  { %v1151_v15 = vmul.f32 %v5331_v25, %v5980_v56  ;;  %v1122_v33 = vpop.xlane.xlu0 %1121  ;;  %v1125_v34 = vpop.xlane.xlu1 %1124 }
 0x61b   :  { %5340 = vrcp.f32 %v1122_v33 }
 0x61c   :  { %5342 = vrcp.f32 %v1125_v34  ;;  %v1177_v35 = vpack.c.bf16 %v1151_v15, %v1149_v32 }
 0x61d   :  { %v5333_v44 = vpop.eup %5332 }
 0x61e   :  { %v5335_v36 = vpop.eup %5334  ;;  %v1153_v48 = vmul.f32 %v5333_v44, %v5988_v63  ;;  %v1128_v42 = vpop.xlane.xlu0 %1127  ;;  %4824 = vmatmul.mubr.msk.bf16.vlgmr.msra.gmra.mrb[28].mxu1 %vm570_vm2, %v1177_v35  ;;  %v5042_v63 = vunpack.i.l.bf16 %v6043_v6 }
 0x61f   :  { %v1155_v53 = vmul.f32 %v5335_v36, %v5985_v62  ;;  %5344 = vrcp.f32 %v1128_v42  ;;  %4834 = vmatpush3.bf16.msra.mxu1 %v562_v45  ;;  %v1131_v49 = vpop.xlane.xlu1 %1130  ;;  %4835 = vmatprep.mubr.msk.bf16.mxu1 %vm5523_vm1, %v5521_v2 }
 0x620   :  { %5346 = vrcp.f32 %v1131_v49  ;;  %4845 = vmatprep.subr.bf16.mxu1 %v5521_v2  ;;  %v564_v6 = vpack.c.bf16 %v5043_v59, %v5042_v63 }
 0x621   :  { %v5337_v56 = vpop.eup %5336  ;;  %v1178_v51 = vpack.c.bf16 %v1155_v53, %v1153_v48 }
 0x622   :  { %v5339_v54 = vpop.eup %5338  ;;  %v1157_v55 = vmul.f32 %v5337_v56, %v5998_v22  ;;  %v1134_v57 = vpop.xlane.xlu0 %1133 }
 0x623   :  { %v1159_v62 = vmul.f32 %v5339_v54, %v5995_v16  ;;  %5348 = vrcp.f32 %v1134_v57  ;;  %v1137_v61 = vpop.xlane.xlu1 %1136  ;;  %4830 = vmatmul.mubr.msk.bf16.vlgmr.msra.gmra.mrb[24].mxu0 %vm570_vm2, %v1178_v51 }
 0x624   :  { %5350 = vrcp.f32 %v1137_v61  ;;  %4840 = vmatpush3.bf16.msra.mxu0 %v563_v14  ;;  %4841 = vmatprep.mubr.msk.bf16.mxu0 %vm5523_vm1, %v5521_v2 }
 0x625   :  { %v5341_v1 = vpop.eup %5340  ;;  %v1179_v3 = vpack.c.bf16 %v1159_v62, %v1157_v55  ;;  %4851 = vmatprep.subr.bf16.mxu0 %v5521_v2 }
 0x626   :  { %v5343_v22 = vpop.eup %5342  ;;  %v1161_v16 = vmul.f32 %v5341_v1, %v6007_v52  ;;  %v5046_v20 = vpop.permute.xlu0 %5045  ;;  %v5208_v1 = vld [vmem:[%s7158_s8] sm:$0xff]  }
 0x627   :  { %v1163_v8 = vmul.f32 %v5343_v22, %v6004_v26  ;;  %v5048_v5 = vunpack.i.h.bf16 %v5046_v20  ;;  %v5047_v9 = vunpack.i.l.bf16 %v5046_v20  ;;  %4836 = vmatmul.mubr.msk.bf16.vlgmr.msra.gmra.mrb[32].mxu1 %vm570_vm2, %v1179_v3  ;;  %v5209_v22 = vld [vmem:[%s7158_s8 + $0x8] sm:$0xff]  }
 0x628   :  { %4846 = vmatpush3.bf16.msra.mxu1 %v564_v6  ;;  %4847 = vmatprep.mubr.msk.bf16.mxu1 %vm5523_vm1, %v5521_v2 }
 0x629   :  { %v5345_v4 = vpop.eup %5344  ;;  %v565_v10 = vpack.c.bf16 %v5048_v5, %v5047_v9  ;;  %v1180_v14 = vpack.c.bf16 %v1163_v8, %v1161_v16  ;;  %4857 = vmatprep.subr.bf16.mxu1 %v5521_v2  ;;  %v5210_v5 = vld [vmem:[%s7158_s8 + $0x10] sm:$0xff]  }
 0x62a   :  { %v5347_v0 = vpop.eup %5346  ;;  %v1165_v38 = vmul.f32 %v5345_v4, %v6015_v58 }
 0x62b   :  { %v1167_v52 = vmul.f32 %v5347_v0, %v6013_v37  ;;  %4842 = vmatmul.mubr.msk.bf16.vlgmr.msra.gmra.mrb[28].mxu0 %vm570_vm2, %v1180_v14  ;;  %v1140_v37 = vpop.xlane.xlu1 %1139 }
 0x62c   :  { %4852 = vmatpush3.bf16.msra.mxu0 %v565_v10  ;;  %4853 = vmatprep.mubr.msk.bf16.mxu0 %vm5523_vm1, %v5521_v2  ;;  %5352 = vrcp.f32 %v1140_v37 }
 0x62d   :  { %v5349_v26 = vpop.eup %5348  ;;  %v1181_v11 = vpack.c.bf16 %v1167_v52, %v1165_v38  ;;  %v5211_v38 = vld [vmem:[%s7158_s8 + $0x18] sm:$0xff]  }
 0x62e   :  { %v5351_v18 = vpop.eup %5350  ;;  %v1169_v13 = vmul.f32 %v5349_v26, %v6024_v40 }
 0x62f   :  { %v1171_v43 = vmul.f32 %v5351_v18, %v6021_v47  ;;  %4848 = vmatmul.mubr.msk.bf16.vlgmr.msra.gmra.mrb[36].mxu1 %vm570_vm2, %v1181_v11 }
 0x630   :  { %4859 = vmatprep.mubr.msk.bf16.mxu1 %vm5523_vm1, %v5521_v2 }
 0x631   :  { %v1182_v58 = vpack.c.bf16 %v1171_v43, %v1169_v13 }
 0x633   :  { %4854 = vmatmul.mubr.msk.bf16.vlgmr.msra.gmra.mrb[32].mxu0 %vm570_vm2, %v1182_v58 }
 0x636   :  { %v5353_v25 = vpop.eup %5352 }
 0x637   :  { %v1173_v47 = vmul.f32 %v5353_v25, %v6030_v50 }
 0x655   :  { %v1143_v23 = vpop.xlane.xlu1 %1142 }
 0x656   :  { %5354 = vrcp.f32 %v1143_v23 }
 0x659   :  { %v5051_v46 = vpop.permute.xlu1 %5050 }
 0x65a   :  { %v5053_v12 = vunpack.i.h.bf16 %v5051_v46  ;;  %v5052_v19 = vunpack.i.l.bf16 %v5051_v46 }
 0x65c   :  { %v566_v24 = vpack.c.bf16 %v5053_v12, %v5052_v19 }
 0x65e   :  { %4858 = vmatpush3.bf16.msra.mxu1 %v566_v24 }
 0x65f   :  { %4863 = vmatprep.subr.bf16.mxu1 %v5208_v1 }
 0x660   :  { %v5355_v40 = vpop.eup %5354 }
 0x661   :  { %v1175_v28 = vmul.f32 %v5355_v40, %v6037_v60 }
 0x663   :  { %v1183_v31 = vpack.c.bf16 %v1175_v28, %v1173_v47 }
 0x665   :  { %4860 = vmatmul.mubr.msk.bf16.vlgmr.msra.gmra.mrb[40].mxu1 %vm570_vm2, %v1183_v31 }
 0x666   :  { %4864 = vmatpush3.bf16.msra.mxu1 %v5208_v1 }
 0x667   :  { %4865 = vmatprep.subr.bf16.mxu1 %v5209_v22 }
 0x66a   :  { %4866 = vmatpush3.bf16.msra.mxu1 %v5209_v22 }
 0x66b   :  { %4867 = vmatprep.subr.bf16.mxu1 %v5210_v5 }
 0x66e   :  { %4868 = vmatpush3.bf16.msra.mxu1 %v5210_v5 }
 0x66f   :  { %4869 = vmatprep.subr.bf16.mxu1 %v5211_v38 }
 0x672   :  { %4870 = vmatpush3.bf16.msra.mxu1 %v5211_v38 }
 0x6cf   :  { %v6090_v32 = vpop.f32.mrb[20].mxu0 }
 0x6d0   :  { %v4819_v15 = vpop.f32.mrb[21].mxu0 }
 0x6d1   :  { %v6092_v33 = vpop.f32.mrb[22].mxu0 }
 0x6d2   :  { %v4820_v34 = vpop.f32.mrb[23].mxu0 }
 0x6f1   :  { %v1265_v35 = vpop.f32.mrb[28].mxu1 }
 0x6f2   :  { %v4825_v44 = vpop.f32.mrb[29].mxu1 }
 0x6f3   :  { %v1268_v45 = vpop.f32.mrb[30].mxu1 }
 0x6f4   :  { %v5054_v36 = vpack.i.bf16 %v1268_v45, %v1265_v35  ;;  %v4826_v48 = vpop.f32.mrb[31].mxu1 }
 0x6f6   :  { %v1309_v42 = vpop.f32.mrb[24].mxu0  ;;  %5055 = vrot.lane.b32.xlu0 %v5054_v36, %s5525_s28 }
 0x6f7   :  { %v4831_v50 = vpop.f32.mrb[25].mxu0 }
 0x6f8   :  { %v1312_v60 = vpop.f32.mrb[26].mxu0 }
 0x6f9   :  { %v5059_v53 = vpack.i.bf16 %v1312_v60, %v1309_v42  ;;  %v4832_v49 = vpop.f32.mrb[27].mxu0 }
 0x6fa   :  { %v1353_v56 = vpop.f32.mrb[32].mxu1 }
 0x6fb   :  { %v4837_v51 = vpop.f32.mrb[33].mxu1  ;;  %5060 = vrot.lane.b32.xlu1 %v5059_v53, %s5526_s29 }
 0x6fc   :  { %v1356_v54 = vpop.f32.mrb[34].mxu1 }
 0x6fd   :  { %v5064_v59 = vpack.i.bf16 %v1356_v54, %v1353_v56  ;;  %v4838_v63 = vpop.f32.mrb[35].mxu1 }
 0x6fe   :  { %v6096_v55 = vpop.f32.mrb[28].mxu0 }
 0x6ff   :  { %5065 = vrot.lane.b32.xlu1 %v5064_v59, %s5527_s15  ;;  %v4843_v57 = vpop.f32.mrb[29].mxu0 }
 0x700   :  { %v1400_v62 = vpop.f32.mrb[30].mxu0  ;;  %v1693_v57 = vsub.s32 2, %v5723_v17 }
 0x701   :  { %v4844_v61 = vpop.f32.mrb[31].mxu0 }
 0x702   :  { %v1441_v3 = vpop.f32.mrb[36].mxu1 }
 0x703   :  { %v4849_v6 = vpop.f32.mrb[37].mxu1 }
 0x704   :  { %v1444_v16 = vpop.f32.mrb[38].mxu1 }
 0x705   :  { %v5069_v20 = vpack.i.bf16 %v1444_v16, %v1441_v3  ;;  %v4850_v8 = vpop.f32.mrb[39].mxu1 }
 0x706   :  { %v1485_v9 = vpop.f32.mrb[32].mxu0 }
 0x707   :  { %5070 = vrot.lane.b32.xlu0 %v5069_v20, %s5525_s28  ;;  %v4855_v4 = vpop.f32.mrb[33].mxu0 }
 0x708   :  { %v1488_v10 = vpop.f32.mrb[34].mxu0 }
 0x709   :  { %v5074_v14 = vpack.i.bf16 %v1488_v10, %v1485_v9  ;;  %v4856_v0 = vpop.f32.mrb[35].mxu0 }
 0x70b   :  { %5075 = vrot.lane.b32.xlu0 %v5074_v14, %s5526_s29 }
 0x738   :  { %v1529_v52 = vpop.f32.mrb[40].mxu1 }
 0x739   :  { %v4861_v26 = vpop.f32.mrb[41].mxu1 }
 0x73a   :  { %v1532_v11 = vpop.f32.mrb[42].mxu1 }
 0x73b   :  { %v5079_v18 = vpack.i.bf16 %v1532_v11, %v1529_v52  ;;  %v4862_v13 = vpop.f32.mrb[43].mxu1 }
 0x73d   :  { %5080 = vrot.lane.b32.xlu1 %v5079_v18, %s5527_s15 }
 0x768   :  { %v5056_v43 = vpop.permute.xlu0 %5055 }
 0x769   :  { %v5058_v37 = vunpack.i.h.bf16 %v5056_v43  ;;  %v5057_v23 = vunpack.i.l.bf16 %v5056_v43 }
 0x76b   :  { %v1561_v24 = vsel %vm570_vm2, %v6092_v33, %v5058_v37  ;;  %v1560_v25 = vsel %vm570_vm2, %v6090_v32, %v5057_v23 }
 0x76d   :  { %v5061_v58 = vpop.permute.xlu1 %5060 }
 0x76e   :  { %v5063_v46 = vunpack.i.h.bf16 %v5061_v58  ;;  %v5062_v12 = vunpack.i.l.bf16 %v5061_v58 }
 0x770   :  { %v1564_v28 = vsel %vm1562_vm3, %v1561_v24, %v5063_v46  ;;  %v1563_v31 = vsel %vm1562_vm3, %v1560_v25, %v5062_v12 }
 0x771   :  { %v5066_v19 = vpop.permute.xlu1 %5065 }
 0x772   :  { %v5068_v40 = vunpack.i.h.bf16 %v5066_v19  ;;  %v5067_v47 = vunpack.i.l.bf16 %v5066_v19 }
 0x774   :  { %v1566_v15 = vsel %vm1565_vm4, %v1563_v31, %v5067_v47  ;;  %v1567_v34 = vsel %vm1565_vm4, %v1564_v28, %v5068_v40  ;;  %v5214_v31 = vld [vmem:[%s7159_s9 + $0x4] ss:$8 sps:$4 sm:$0xff]  }
 0x775   :  { %v1598_v35 = vpack.c.bf16 %v1567_v34, %v1566_v15  ;;  %v5212_v15 = vld [vmem:[%s7159_s9] ss:$8 sps:$4 sm:$0xff]   ;;  %1835 = vmatprep.subr.bf16.mxu1 %v5214_v31  ;;  %v5217_v34 = vld [vmem:[%s7159_s9 + $0x14] ss:$8 sps:$4 sm:$0xff]  }
 0x776   :  { %v5235_v31 = vld [vmem:[%s7160_s10 + $0x28] sm:$0xff]  }
 0x777   :  { %4871 = vmatprep.mubr.msk.bf16.mxu1 %vm280_vm0, %v1598_v35  ;;  %v5215_v35 = vld [vmem:[%s7159_s9 + $0x10] ss:$8 sps:$4 sm:$0xff]  }
 0x779   :  { %v5071_v44 = vpop.permute.xlu0 %5070 }
 0x77a   :  { %v5073_v36 = vunpack.i.h.bf16 %v5071_v44  ;;  %v5072_v33 = vunpack.i.l.bf16 %v5071_v44  ;;  %v5220_v44 = vld [vmem:[%s7159_s9 + $0x24] ss:$8 sps:$4 sm:$0xff]  }
 0x77c   :  { %v1592_v50 = vsel %vm570_vm2, %v6096_v55, %v5072_v33  ;;  %v1593_v60 = vsel %vm570_vm2, %v1400_v62, %v5073_v36  ;;  %v6136_v62 = vld [vmem:[%s7155_s4] sm:$0x3f]  ;;  %v5223_v36 = vld [vmem:[%s7159_s9 + $0x34] ss:$8 sps:$4 sm:$0xff]   ;;  %v5221_v33 = vld [vmem:[%s7159_s9 + $0x30] ss:$8 sps:$4 sm:$0xff]  }
 0x77d   :  { %v5076_v45 = vpop.permute.xlu0 %5075  ;;  %v1694_v61 = vrot.slane %v6136_v62, %v1693_v57 }
 0x77e   :  { %v5078_v48 = vunpack.i.h.bf16 %v5076_v45  ;;  %v5077_v42 = vunpack.i.l.bf16 %v5076_v45  ;;  %v5218_v45 = vld [vmem:[%s7159_s9 + $0x20] ss:$8 sps:$4 sm:$0xff]  }
 0x780   :  { %v1595_v56 = vsel %vm1562_vm3, %v1593_v60, %v5078_v48  ;;  %v1594_v51 = vsel %vm1562_vm3, %v1592_v50, %v5077_v42 }
 0x7af   :  { %v5081_v32 = vpop.permute.xlu1 %5080 }
 0x7b0   :  { %v5083_v53 = vunpack.i.h.bf16 %v5081_v32  ;;  %v5082_v49 = vunpack.i.l.bf16 %v5081_v32 }
 0x7b2   :  { %v1596_v54 = vsel %vm1565_vm4, %v1594_v51, %v5082_v49  ;;  %v1597_v59 = vsel %vm1565_vm4, %v1595_v56, %v5083_v53 }
 0x7b3   :  { %v1599_v63 = vpack.c.bf16 %v1597_v59, %v1596_v54 }
 0x7b5   :  { %4872 = vmatmul.mubr.msk.bf16.vlgmr.msra.gmra.mrb[44].mxu1 %vm280_vm0, %v1599_v63  ;;  %v1753_v63 = vsub.s32 3, %v5723_v17 }
 0x7b6   :  { %1867 = vmatprep.mubr.bf16.mxu1 %v5518_v7  ;;  %1836 = vmatpush1.bf16.msra.mxu1 %v5212_v15  ;;  %v5236_v15 = vld [vmem:[%s7160_s10 + $0x70] sm:$0xff]  }
 0x7b7   :  { %1837 = vmatprep.subr.bf16.mxu1 %v5217_v34  ;;  %v5237_v34 = vld [vmem:[%s7160_s10 + $0x30] sm:$0xff]  }
 0x7ba   :  { %1838 = vmatpush1.bf16.msra.mxu1 %v5215_v35  ;;  %v5238_v35 = vld [vmem:[%s7160_s10 + $0x78] sm:$0xff]  }
 0x7bb   :  { %1839 = vmatprep.subr.bf16.mxu1 %v5220_v44  ;;  %v5239_v44 = vld [vmem:[%s7160_s10 + $0x38] sm:$0xff]  }
 0x7be   :  { %1840 = vmatpush1.bf16.msra.mxu1 %v5218_v45  ;;  %v1777_v45 = vld [vmem:[%s7161_s6] sm:$0x3] }
 0x7bf   :  { %1841 = vmatprep.subr.bf16.mxu1 %v5223_v36  ;;  %v1782_v36 = vrot.slane %v1777_v45, %v5726_v21 }
 0x7c2   :  { %1842 = vmatpush1.bf16.msra.mxu1 %v5221_v33  ;;  %v6259_v33 = vrot.slane %v1777_v45, %v5733_v30 }
 0x888   :  { %v4873_v55 = vpop.f32.mrb[44].mxu1 }
 0x889   :  { %v1672_v1 = vpop.f32.mrb[45].mxu1  ;;  %v1689_v3 = vadd.f32 %v4873_v55, %v5674_v39 }
 0x88a   :  { %v1687_v22 = vadd.f32 %v1672_v1, %v5660_v27  ;;  %v4874_v6 = vpop.f32.mrb[46].mxu1  ;;  %v1761_v1 = vsub.s32 4, %v5723_v17 }
 0x88b   :  { %v1675_v16 = vpop.f32.mrb[47].mxu1  ;;  %v6146_v5 = vadd.f32 %v1694_v61, %v1689_v3  ;;  %v1690_v9 = vadd.f32 %v4874_v6, %v5676_v41 }
 0x88c   :  { %v6143_v20 = vadd.f32 %v1694_v61, %v1687_v22  ;;  %v1688_v8 = vadd.f32 %v1675_v16, %v5662_v29 }
 0x88d   :  { %v6155_v27 = vadd.f32 %v1694_v61, %v1690_v9  ;;  %v1705_v14 = vsel %vm280_vm0, %v6146_v5, 0.0  ;;  %v1762_v9 = vrot.slane %v6136_v62, %v1761_v1 }
 0x88e   :  { %v6149_v4 = vadd.f32 %v1694_v61, %v1688_v8  ;;  %v1699_v10 = vsel %vm280_vm0, %v6143_v20, 0.0  ;;  %v1754_v61 = vrot.slane %v6136_v62, %v1753_v63 }
 0x88f   :  { %1700 = vadd.xlane.f32.xlu0 %v1699_v10  ;;  %v1708_v29 = vsel %vm280_vm0, %v6155_v27, 0.0 }
 0x890   :  { %v1702_v39 = vsel %vm280_vm0, %v6149_v4, 0.0 }
 0x891   :  { %1703 = vadd.xlane.f32.xlu1 %v1702_v39 }
 0x893   :  { %1706 = vadd.xlane.f32.xlu0 %v1705_v14 }
 0x897   :  { %1709 = vadd.xlane.f32.xlu0 %v1708_v29 }
 0x91c   :  { %v1701_v41 = vpop.xlane.xlu0 %1700 }
 0x91d   :  { %v1711_v0 = vmul.f32 0.015625, %v1701_v41 }
 0x91e   :  { %v1704_v38 = vpop.xlane.xlu1 %1703 }
 0x91f   :  { %v1715_v52 = vsub.f32 %v6143_v20, %v1711_v0  ;;  %v1712_v26 = vmul.f32 0.015625, %v1704_v38 }
 0x920   :  { %v1707_v11 = vpop.xlane.xlu0 %1706 }
 0x921   :  { %v1716_v18 = vsub.f32 %v6149_v4, %v1712_v26  ;;  %v1713_v13 = vmul.f32 0.015625, %v1707_v11  ;;  %v1719_v43 = vmul.f32 %v1715_v52, %v1715_v52 }
 0x923   :  { %v1717_v58 = vsub.f32 %v6146_v5, %v1713_v13  ;;  %v1723_v37 = vsel %vm280_vm0, %v1719_v43, 0.0  ;;  %v1720_v23 = vmul.f32 %v1716_v18, %v1716_v18 }
 0x924   :  { %1724 = vadd.xlane.f32.xlu0 %v1723_v37  ;;  %v1710_v46 = vpop.xlane.xlu0 %1709  ;;  %v5225_v37 = vld [vmem:[%s7160_s10] sm:$0xff]  }
 0x925   :  { %v1714_v12 = vmul.f32 0.015625, %v1710_v46  ;;  %v1726_v19 = vsel %vm280_vm0, %v1720_v23, 0.0  ;;  %v1721_v24 = vmul.f32 %v1717_v58, %v1717_v58  ;;  %v5226_v23 = vld [vmem:[%s7160_s10 + $0x48] sm:$0xff]  }
 0x926   :  { %1727 = vadd.xlane.f32.xlu1 %v1726_v19  ;;  %v5227_v46 = vld [vmem:[%s7160_s10 + $0x8] sm:$0xff]   ;;  %v5229_v19 = vld [vmem:[%s7160_s10 + $0x10] sm:$0xff]  }
 0x927   :  { %v1718_v25 = vsub.f32 %v6155_v27, %v1714_v12  ;;  %v1729_v40 = vsel %vm280_vm0, %v1721_v24, 0.0  ;;  %v5228_v12 = vld [vmem:[%s7160_s10 + $0x50] sm:$0xff]   ;;  %v5230_v24 = vld [vmem:[%s7160_s10 + $0x58] sm:$0xff]  }
 0x928   :  { %1730 = vadd.xlane.f32.xlu0 %v1729_v40  ;;  %v5232_v40 = vld [vmem:[%s7160_s10 + $0x60] sm:$0xff]  }
 0x929   :  { %v1722_v47 = vmul.f32 %v1718_v25, %v1718_v25 }
 0x92b   :  { %v1732_v28 = vsel %vm280_vm0, %v1722_v47, 0.0  ;;  %v5233_v47 = vld [vmem:[%s7160_s10 + $0x20] sm:$0xff]  }
 0x92c   :  { %1733 = vadd.xlane.f32.xlu1 %v1732_v28  ;;  %v5234_v28 = vld [vmem:[%s7160_s10 + $0x68] sm:$0xff]  }
 0x9b1   :  { %v1725_v48 = vpop.xlane.xlu0 %1724 }
 0x9b2   :  { %v1735_v42 = vmul.f32 0.015625, %v1725_v48 }
 0x9b3   :  { %v1728_v32 = vpop.xlane.xlu1 %1727 }
 0x9b4   :  { %v1739_v50 = vadd.f32 1e-05, %v1735_v42  ;;  %v1736_v60 = vmul.f32 0.015625, %v1728_v32 }
 0x9b5   :  { %v1731_v53 = vpop.xlane.xlu0 %1730 }
 0x9b6   :  { %5356 = vrsqrt.f32 %v1739_v50  ;;  %v1740_v49 = vadd.f32 1e-05, %v1736_v60  ;;  %v1737_v56 = vmul.f32 0.015625, %v1731_v53 }
 0x9b8   :  { %5358 = vrsqrt.f32 %v1740_v49  ;;  %v1741_v51 = vadd.f32 1e-05, %v1737_v56 }
 0x9b9   :  { %v1734_v54 = vpop.xlane.xlu1 %1733 }
 0x9ba   :  { %5360 = vrsqrt.f32 %v1741_v51  ;;  %v1738_v59 = vmul.f32 0.015625, %v1734_v54 }
 0x9bc   :  { %v1742_v55 = vadd.f32 1e-05, %v1738_v59 }
 0x9be   :  { %5362 = vrsqrt.f32 %v1742_v55 }
 0x9c0   :  { %v5357_v3 = vpop.eup %5356 }
 0x9c1   :  { %v1747_v22 = vmul.f32 %v5357_v3, %v1715_v52 }
 0x9c2   :  { %v5359_v6 = vpop.eup %5358 }
 0x9c3   :  { %v1755_v16 = vmul.f32 %v1754_v61, %v1747_v22  ;;  %v1748_v8 = vmul.f32 %v5359_v6, %v1716_v18 }
 0x9c4   :  { %v5361_v10 = vpop.eup %5360 }
 0x9c5   :  { %v1756_v39 = vmul.f32 %v1754_v61, %v1748_v8  ;;  %v1749_v14 = vmul.f32 %v5361_v10, %v1717_v58  ;;  %v1763_v29 = vadd.f32 %v1762_v9, %v1755_v16  ;;  %v5224_v58 = vld [vmem:[%s7160_s10 + $0x40] sm:$0xff]  }
 0x9c6   :  { %4673 = vmatprep.subr.bf16.mxu0 %v5224_v58 }
 0x9c7   :  { %v1764_v41 = vadd.f32 %v1762_v9, %v1756_v39  ;;  %v1757_v11 = vmul.f32 %v1754_v61, %v1749_v14  ;;  %4674 = vmatpush3.bf16.msra.mxu0 %v5225_v37 }
 0x9c8   :  { %v5363_v0 = vpop.eup %5362  ;;  %4675 = vmatprep.subr.bf16.mxu0 %v5226_v23 }
 0x9c9   :  { %v1750_v38 = vmul.f32 %v5363_v0, %v1718_v25  ;;  %v1767_v26 = vpack.c.bf16 %v1764_v41, %v1763_v29  ;;  %v1765_v18 = vadd.f32 %v1762_v9, %v1757_v11  ;;  %v5231_v25 = vld [vmem:[%s7160_s10 + $0x18] sm:$0xff]  }
 0x9cb   :  { %4464 = vmatmul.mubr.msk.bf16.vlgmr.msra.gmra.mrb[48].mxu1 %vm280_vm0, %v1767_v26  ;;  %v1758_v13 = vmul.f32 %v1754_v61, %v1750_v38  ;;  %4676 = vmatpush3.bf16.msra.mxu0 %v5227_v46 }
 0x9cc   :  { %1877 = vmatprep.mubr.bf16.mxu1 %v5518_v7  ;;  %4677 = vmatprep.subr.bf16.mxu0 %v5228_v12 }
 0x9cd   :  { %v1766_v52 = vadd.f32 %v1762_v9, %v1758_v13 }
 0x9cf   :  { %v1768_v43 = vpack.c.bf16 %v1766_v52, %v1765_v18  ;;  %4678 = vmatpush3.bf16.msra.mxu0 %v5229_v19 }
 0x9d0   :  { %4679 = vmatprep.subr.bf16.mxu0 %v5230_v24 }
 0x9d3   :  { %4465 = vmatmul.mubr.msk.bf16.gmra.mrb[52].mxu1 %vm280_vm0, %v1768_v43  ;;  %4680 = vmatpush3.bf16.msra.mxu0 %v5231_v25 }
 0x9d4   :  { %2466 = vmatprep.mubr.bf16.mxu1 %v5518_v7  ;;  %4681 = vmatprep.subr.bf16.mxu0 %v5232_v40 }
 0x9d7   :  { %4682 = vmatpush3.bf16.msra.mxu0 %v5233_v47 }
 0x9d8   :  { %4683 = vmatprep.subr.bf16.mxu0 %v5234_v28  ;;  %v5528_v28 = vmov -1.0  }
 0x9db   :  { %4684 = vmatpush3.bf16.msra.mxu0 %v5235_v31 }
 0x9dc   :  { %4685 = vmatprep.subr.bf16.mxu0 %v5236_v15 }
 0x9df   :  { %4686 = vmatpush3.bf16.msra.mxu0 %v5237_v34 }
 0x9e0   :  { %4687 = vmatprep.subr.bf16.mxu0 %v5238_v35 }
 0x9e3   :  { %4688 = vmatpush3.bf16.msra.mxu0 %v5239_v44 }
 0x9e4   :  { %4887 = vmatprep.subr.bf16.mxu0 %v5521_v2 }
 0xa9e   :  { %v1869_v48 = vpop.f32.mrb[48].mxu1 }
 0xa9f   :  { %v1870_v42 = vadd.f32 %v1869_v48, %v1782_v36  ;;  %v1871_v32 = vpop.f32.mrb[49].mxu1 }
 0xaa0   :  { %v1872_v50 = vadd.f32 %v1871_v32, %v6259_v33  ;;  %v1873_v60 = vpop.f32.mrb[50].mxu1 }
 0xaa1   :  { %v1897_v53 = vmul.f32 0.70710677, %v1870_v42  ;;  %v1874_v49 = vadd.f32 %v1873_v60, %v1782_v36  ;;  %v1875_v56 = vpop.f32.mrb[51].mxu1  ;;  %v6292_v25 = vmul.f32 0.5, %v1870_v42 }
 0xaa2   :  { %v6262_v51 = vmul.f32 0.70710677, %v1872_v50  ;;  %v6267_v55 = vadd.f32 %v1875_v56, %v6259_v33  ;;  %v6294_v40 = vmul.f32 0.5, %v1872_v50 }
 0xaa3   :  { %v1921_v54 = vand.u32 2147483647, %v1897_v53  ;;  %v6264_v59 = vmul.f32 0.70710677, %v1874_v49  ;;  %vm1905_vm5 = vcmp.ge.f32.partialorder %v1897_v53, 0.0  ;;  %v6300_v34 = vmul.f32 0.5, %v1874_v49 }
 0xaa4   :  { %v1922_v61 = vand.u32 2147483647, %v6262_v51  ;;  %v6272_v8 = vmul.f32 0.70710677, %v6267_v55  ;;  %v6298_v31 = vsel %vm1905_vm5, 1.0, %v5528_v28  ;;  %vm1906_vm6 = vcmp.ge.f32.partialorder %v6262_v51, 0.0 }
 0xaa5   :  { %v1929_v3 = vmul.f32 0.3275911, %v1921_v54  ;;  %v1923_v6 = vand.u32 2147483647, %v6264_v59  ;;  %v2033_v11 = vsub.f32 0.0, %v1921_v54  ;;  %vm1907_vm7 = vcmp.ge.f32.partialorder %v6264_v59, 0.0 }
 0xaa6   :  { %v1930_v22 = vmul.f32 0.3275911, %v1922_v61  ;;  %v1879_v9 = vpop.f32.mrb[52].mxu1  ;;  %v1924_v29 = vand.u32 2147483647, %v6272_v8  ;;  %v2034_v58 = vsub.f32 0.0, %v1922_v61 }
 0xaa7   :  { %v1937_v16 = vadd.f32 1.0, %v1929_v3  ;;  %v1931_v39 = vmul.f32 0.3275911, %v1923_v6  ;;  %v1881_v14 = vpop.f32.mrb[53].mxu1  ;;  %v6275_v13 = vadd.f32 %v1879_v9, %v1782_v36  ;;  %v2041_v46 = vmul.f32 %v2033_v11, %v1921_v54 }
 0xaa8   :  { %v1938_v10 = vadd.f32 1.0, %v1930_v22  ;;  %v1883_v41 = vpop.f32.mrb[54].mxu1  ;;  %v1932_v26 = vmul.f32 0.3275911, %v1924_v29  ;;  %v6278_v52 = vadd.f32 %v1881_v14, %v6259_v33  ;;  %v2035_v12 = vsub.f32 0.0, %v1923_v6 }
 0xaa9   :  { %5364 = vrcp.f32 %v1937_v16  ;;  %v1939_v0 = vadd.f32 1.0, %v1931_v39  ;;  %v1885_v38 = vpop.f32.mrb[55].mxu1  ;;  %v6280_v43 = vadd.f32 %v1883_v41, %v1782_v36  ;;  %v6283_v37 = vmul.f32 0.70710677, %v6275_v13 }
 0xaaa   :  { %5366 = vrcp.f32 %v1938_v10  ;;  %v1940_v18 = vadd.f32 1.0, %v1932_v26  ;;  %v6286_v23 = vmul.f32 0.70710677, %v6278_v52  ;;  %v2042_v15 = vmul.f32 %v2034_v58, %v1922_v61 }
 0xaab   :  { %5368 = vrcp.f32 %v1939_v0  ;;  %v1925_v19 = vand.u32 2147483647, %v6283_v37  ;;  %v6290_v24 = vmul.f32 0.70710677, %v6280_v43  ;;  %v2036_v45 = vsub.f32 0.0, %v1924_v29 }
 0xaac   :  { %5370 = vrcp.f32 %v1940_v18  ;;  %v1926_v47 = vand.u32 2147483647, %v6286_v23  ;;  %v2049_v50 = vmul.f32 1.442695, %v2041_v46  ;;  %v2043_v60 = vmul.f32 %v2035_v12, %v1923_v6 }
 0xaad   :  { %v1933_v35 = vmul.f32 0.3275911, %v1925_v19  ;;  %v6306_v48 = vand.u32 2147483647, %v6290_v24  ;;  %v6314_v61 = vadd.f32 %v1885_v38, %v6259_v33  ;;  %v2051_v22 = vmul.f32 1.442695, %v2042_v15 }
 0xaae   :  { %v1934_v36 = vmul.f32 0.3275911, %v1926_v47  ;;  %v2044_v10 = vmul.f32 %v2036_v45, %v1924_v29  ;;  %v2037_v41 = vsub.f32 0.0, %v1925_v19  ;;  %v2053_v38 = vmul.f32 1.442695, %v2043_v60 }
 0xaaf   :  { %v1941_v53 = vadd.f32 1.0, %v1933_v35  ;;  %v1935_v54 = vmul.f32 0.3275911, %v6306_v48  ;;  %v2038_v26 = vsub.f32 0.0, %v1926_v47  ;;  %v6325_v11 = vmul.f32 0.70710677, %v6314_v61 }
 0xab0   :  { %v1942_v56 = vadd.f32 1.0, %v1934_v36  ;;  %v6331_v46 = vsel %vm1906_vm6, 1.0, %v5528_v28  ;;  %v2055_v15 = vmul.f32 1.442695, %v2044_v10  ;;  %v6339_v60 = vsel %vm1907_vm7, 1.0, %v5528_v28 }
 0xab1   :  { %5372 = vrcp.f32 %v1941_v53  ;;  %v1943_v6 = vadd.f32 1.0, %v1935_v54  ;;  %v2046_v53 = vmul.f32 %v2038_v26, %v1926_v47  ;;  %v6342_v51 = vand.u32 2147483647, %v6325_v11 }
 0xab2   :  { %5374 = vrcp.f32 %v1942_v56  ;;  %vm1908_vm8 = vcmp.ge.f32.partialorder %v6272_v8, 0.0  ;;  %vm1909_vm9 = vcmp.ge.f32.partialorder %v6283_v37, 0.0  ;;  %vm1911_vm10 = vcmp.ge.f32.partialorder %v6290_v24, 0.0 }
 0xab3   :  { %v6302_v44 = vpop.eup %5364  ;;  %5376 = vpow2.f32 %v2049_v50  ;;  %vm1910_vm11 = vcmp.ge.f32.partialorder %v6286_v23, 0.0  ;;  %vm1912_vm12 = vcmp.ge.f32.partialorder %v6325_v11, 0.0  ;;  %v1893_v23 = vmul.f32 0.5, %v6278_v52 }
 0xab4   :  { %v6308_v42 = vpop.eup %5366  ;;  %v1961_v32 = vmul.f32 1.0614054, %v6302_v44  ;;  %5378 = vrcp.f32 %v1943_v6  ;;  %v2143_v11 = vsub.s32 5, %v5723_v17 }
 0xab5   :  { %v1962_v49 = vmul.f32 1.0614054, %v6308_v42  ;;  %v6317_v16 = vpop.eup %5368  ;;  %5380 = vpow2.f32 %v2051_v22  ;;  %v1936_v22 = vmul.f32 0.3275911, %v6342_v51 }
 0xab6   :  { %v1969_v3 = vadd.f32 -1.4531521, %v1961_v32  ;;  %v1963_v14 = vmul.f32 1.0614054, %v6317_v16  ;;  %v6321_v0 = vpop.eup %5370  ;;  %v2045_v32 = vmul.f32 %v2037_v41, %v1925_v19  ;;  %5382 = vpow2.f32 %v2053_v38 }
 0xab7   :  { %v1970_v9 = vadd.f32 -1.4531521, %v1962_v49  ;;  %v1964_v29 = vmul.f32 1.0614054, %v6321_v0  ;;  %5384 = vpow2.f32 %v2055_v15  ;;  %v2039_v19 = vsub.f32 0.0, %v6306_v48 }
 0xab8   :  { %v1977_v39 = vmul.f32 %v6302_v44, %v1969_v3  ;;  %v1971_v58 = vadd.f32 -1.4531521, %v1963_v14  ;;  %v2057_v6 = vmul.f32 1.442695, %v2045_v32  ;;  %v1944_v38 = vadd.f32 1.0, %v1936_v22 }
 0xab9   :  { %v1978_v33 = vmul.f32 %v6308_v42, %v1970_v9  ;;  %v1972_v36 = vadd.f32 -1.4531521, %v1964_v29 }
 0xaba   :  { %v1985_v18 = vadd.f32 1.4214138, %v1977_v39  ;;  %v1979_v45 = vmul.f32 %v6317_v16, %v1971_v58  ;;  %5386 = vrcp.f32 %v1944_v38 }
 0xabb   :  { %v1986_v12 = vadd.f32 1.4214138, %v1978_v33  ;;  %v1980_v54 = vmul.f32 %v6321_v0, %v1972_v36  ;;  %v6347_v9 = vpop.eup %5372  ;;  %v2059_v33 = vmul.f32 1.442695, %v2046_v53  ;;  %5388 = vpow2.f32 %v2057_v6 }
 0xabc   :  { %v1993_v35 = vmul.f32 %v6302_v44, %v1985_v18  ;;  %v1987_v56 = vadd.f32 1.4214138, %v1979_v45  ;;  %v6352_v39 = vpop.eup %5374  ;;  %v1965_v41 = vmul.f32 1.0614054, %v6347_v9  ;;  %v2047_v45 = vmul.f32 %v2039_v19, %v6306_v48 }
 0xabd   :  { %v1994_v50 = vmul.f32 %v6308_v42, %v1986_v12  ;;  %v1988_v10 = vadd.f32 1.4214138, %v1980_v54  ;;  %v5377_v26 = vpop.eup %5376  ;;  %v1966_v12 = vmul.f32 1.0614054, %v6352_v39 }
 0xabe   :  { %v2001_v49 = vadd.f32 -0.28449672, %v1993_v35  ;;  %v1995_v47 = vmul.f32 %v6317_v16, %v1987_v56  ;;  %v1973_v35 = vadd.f32 -1.4531521, %v1965_v41  ;;  %v6359_v36 = vpop.eup %5378  ;;  %v2061_v41 = vmul.f32 1.442695, %v2047_v45 }
 0xabf   :  { %v2002_v3 = vadd.f32 -0.28449672, %v1994_v50  ;;  %v1996_v29 = vmul.f32 %v6321_v0, %v1988_v10  ;;  %v5381_v56 = vpop.eup %5380  ;;  %v1967_v22 = vmul.f32 1.0614054, %v6359_v36 }
 0xac0   :  { %v2009_v59 = vmul.f32 %v6302_v44, %v2001_v49  ;;  %v2003_v58 = vadd.f32 -0.28449672, %v1995_v47  ;;  %v1974_v49 = vadd.f32 -1.4531521, %v1966_v12  ;;  %v5383_v38 = vpop.eup %5382  ;;  %5390 = vpow2.f32 %v2061_v41 }
 0xac1   :  { %v2010_v14 = vmul.f32 %v6308_v42, %v2002_v3  ;;  %v2004_v53 = vadd.f32 -0.28449672, %v1996_v29  ;;  %v1981_v3 = vmul.f32 %v6347_v9, %v1973_v35  ;;  %v5385_v12 = vpop.eup %5384  ;;  %v2040_v35 = vsub.f32 0.0, %v6342_v51 }
 0xac2   :  { %v2017_v18 = vadd.f32 0.2548296, %v2009_v59  ;;  %v2011_v50 = vmul.f32 %v6317_v16, %v2003_v58  ;;  %v1982_v19 = vmul.f32 %v6352_v39, %v1974_v49  ;;  %5392 = vpow2.f32 %v2059_v33 }
 0xac3   :  { %v2018_v15 = vadd.f32 0.2548296, %v2010_v14  ;;  %v2012_v48 = vmul.f32 %v6321_v0, %v2004_v53  ;;  %v1975_v14 = vadd.f32 -1.4531521, %v1967_v22 }
 0xac4   :  { %v2025_v32 = vmul.f32 %v6302_v44, %v2017_v18  ;;  %v2019_v47 = vadd.f32 0.2548296, %v2011_v50  ;;  %v1989_v44 = vadd.f32 1.4214138, %v1981_v3  ;;  %v1990_v29 = vadd.f32 1.4214138, %v1982_v19 }
 0xac5   :  { %v2026_v54 = vmul.f32 %v6308_v42, %v2018_v15  ;;  %v2020_v42 = vadd.f32 0.2548296, %v2012_v48  ;;  %v2048_v48 = vmul.f32 %v2040_v35, %v6342_v51 }
 0xac6   :  { %v2065_v59 = vmul.f32 %v5377_v26, %v2025_v32  ;;  %v2027_v58 = vmul.f32 %v6317_v16, %v2019_v47  ;;  %v1997_v15 = vmul.f32 %v6347_v9, %v1989_v44  ;;  %v1983_v26 = vmul.f32 %v6359_v36, %v1975_v14  ;;  %v5387_v47 = vpop.eup %5386 }
 0xac7   :  { %v2066_v10 = vmul.f32 %v5381_v56, %v2026_v54  ;;  %v2028_v53 = vmul.f32 %v6321_v0, %v2020_v42  ;;  %v1998_v45 = vmul.f32 %v6352_v39, %v1990_v29  ;;  %v1916_v16 = vsel %vm1908_vm8, 1.0, %v5528_v28  ;;  %v5389_v14 = vpop.eup %5388 }
 0xac8   :  { %v2073_v18 = vsub.f32 1.0, %v2065_v59  ;;  %v2067_v50 = vmul.f32 %v5383_v38, %v2027_v58  ;;  %v2005_v49 = vadd.f32 -0.28449672, %v1997_v15  ;;  %v1991_v56 = vadd.f32 1.4214138, %v1983_v26 }
 0xac9   :  { %v2074_v6 = vsub.f32 1.0, %v2066_v10  ;;  %v2068_v22 = vmul.f32 %v5385_v12, %v2028_v53  ;;  %v2006_v59 = vadd.f32 -0.28449672, %v1998_v45  ;;  %v1968_v38 = vmul.f32 1.0614054, %v5387_v47 }
 0xaca   :  { %v2081_v32 = vmul.f32 %v2073_v18, %v6298_v31  ;;  %v2075_v3 = vsub.f32 1.0, %v2067_v50  ;;  %v2013_v31 = vmul.f32 %v6347_v9, %v2005_v49  ;;  %v1999_v0 = vmul.f32 %v6359_v36, %v1991_v56 }
 0xacb   :  { %v2082_v54 = vmul.f32 %v2074_v6, %v6331_v46  ;;  %v2076_v10 = vsub.f32 1.0, %v2068_v22  ;;  %v2014_v44 = vmul.f32 %v6352_v39, %v2006_v59  ;;  %v1891_v42 = vmul.f32 0.5, %v6267_v55 }
 0xacc   :  { %v2089_v19 = vadd.f32 1.0, %v2081_v32  ;;  %v2083_v8 = vmul.f32 %v2075_v3, %v6339_v60  ;;  %v2021_v41 = vadd.f32 0.2548296, %v2013_v31  ;;  %v2007_v46 = vadd.f32 -0.28449672, %v1999_v0 }
 0xacd   :  { %v2090_v18 = vadd.f32 1.0, %v2082_v54  ;;  %v2084_v29 = vmul.f32 %v2076_v10, %v1916_v16  ;;  %v2022_v12 = vadd.f32 0.2548296, %v2014_v44  ;;  %v1976_v6 = vadd.f32 -1.4531521, %v1968_v38 }
 0xace   :  { %v2091_v58 = vadd.f32 1.0, %v2083_v8  ;;  %v2029_v33 = vmul.f32 %v6347_v9, %v2021_v41  ;;  %v2015_v51 = vmul.f32 %v6359_v36, %v2007_v46  ;;  %v2097_v60 = vmul.f32 %v2089_v19, %v6292_v25  ;;  %v5391_v9 = vpop.eup %5390 }
 0xacf   :  { %v2092_v26 = vadd.f32 1.0, %v2084_v29  ;;  %v2063_v35 = vmul.f32 1.442695, %v2048_v48  ;;  %v1984_v53 = vmul.f32 %v5387_v47, %v1976_v6  ;;  %v2098_v55 = vmul.f32 %v2090_v18, %v6294_v40  ;;  %v5393_v22 = vpop.eup %5392 }
 0xad0   :  { %v2099_v15 = vmul.f32 %v2091_v58, %v6300_v34  ;;  %v2069_v32 = vmul.f32 %v5389_v14, %v2029_v33  ;;  %v2023_v50 = vadd.f32 0.2548296, %v2015_v51  ;;  %v2030_v56 = vmul.f32 %v6352_v39, %v2022_v12 }
 0xad1   :  { %v2100_v16 = vmul.f32 %v2092_v26, %v1891_v42  ;;  %v1992_v25 = vadd.f32 1.4214138, %v1984_v53  ;;  %v1917_v34 = vsel %vm1909_vm9, 1.0, %v5528_v28  ;;  %5394 = vpow2.f32 %v2063_v35 }
 0xad2   :  { %v2105_v45 = vpack.c.bf16 %v2099_v15, %v2097_v60  ;;  %v2077_v49 = vsub.f32 1.0, %v2069_v32  ;;  %v2031_v54 = vmul.f32 %v6359_v36, %v2023_v50  ;;  %v2070_v40 = vmul.f32 %v5393_v22, %v2030_v56 }
 0xad3   :  { %v2106_v3 = vpack.c.bf16 %v2100_v16, %v2098_v55  ;;  %v2000_v31 = vmul.f32 %v5387_v47, %v1992_v25  ;;  %v1919_v39 = vsel %vm1911_vm10, 1.0, %v5528_v28  ;;  %v1892_v10 = vmul.f32 0.5, %v6275_v13 }
 0xad4   :  { %v2085_v37 = vmul.f32 %v2077_v49, %v1917_v34  ;;  %v2071_v59 = vmul.f32 %v5391_v9, %v2031_v54  ;;  %v1894_v44 = vmul.f32 0.5, %v6280_v43  ;;  %v2078_v14 = vsub.f32 1.0, %v2070_v40 }
 0xad5   :  { %2273 = vmatprep.mubr.bf16.mxu0 %v2106_v3  ;;  %v2008_v48 = vadd.f32 -0.28449672, %v2000_v31  ;;  %v1918_v42 = vsel %vm1910_vm11, 1.0, %v5528_v28  ;;  %v1920_v13 = vsel %vm1912_vm12, 1.0, %v5528_v28  ;;  %v1895_v60 = vmul.f32 0.5, %v6314_v61 }
 0xad6   :  { %v2079_v0 = vsub.f32 1.0, %v2071_v59  ;;  %2274 = vmatmul.mubr.bf16.vlgmr.msra.gmra.mrb[36].mxu0 %v2105_v45  ;;  %v2093_v19 = vadd.f32 1.0, %v2085_v37  ;;  %v2086_v29 = vmul.f32 %v2078_v14, %v1918_v42  ;;  %v2144_v50 = vrot.slane %v6136_v62, %v2143_v11 }
 0xad7   :  { %v2016_v8 = vmul.f32 %v5387_v47, %v2008_v48 }
 0xad8   :  { %v2087_v36 = vmul.f32 %v2079_v0, %v1919_v39  ;;  %v2101_v46 = vmul.f32 %v2093_v19, %v1892_v10  ;;  %v2094_v43 = vadd.f32 1.0, %v2086_v29 }
 0xad9   :  { %v2024_v41 = vadd.f32 0.2548296, %v2016_v8 }
 0xada   :  { %v2095_v24 = vadd.f32 1.0, %v2087_v36  ;;  %v2102_v26 = vmul.f32 %v2094_v43, %v1893_v23  ;;  %v5240_v43 = vld [vmem:[%s7154_s7 + $0x40] ss:$8 sps:$4 sm:$0xff]   ;;  %v5243_v23 = vld [vmem:[%s7154_s7 + $0x50] ss:$8 sps:$4 sm:$0xff]  }
 0xadb   :  { %v2032_v18 = vmul.f32 %v5387_v47, %v2024_v41  ;;  %v5395_v58 = vpop.eup %5394 }
 0xadc   :  { %v2103_v38 = vmul.f32 %v2095_v24, %v1894_v44 }
 0xadd   :  { %v2072_v33 = vmul.f32 %v5395_v58, %v2032_v18 }
 0xade   :  { %v2107_v12 = vpack.c.bf16 %v2103_v38, %v2101_v46 }
 0xadf   :  { %v2080_v51 = vsub.f32 1.0, %v2072_v33 }
 0xae1   :  { %v2088_v6 = vmul.f32 %v2080_v51, %v1920_v13  ;;  %v5242_v13 = vld [vmem:[%s7154_s7 + $0x44] ss:$8 sps:$4 sm:$0xff]  }
 0xae2   :  { %2434 = vmatprep.subr.bf16.mxu1 %v5242_v13 }
 0xae3   :  { %v2096_v15 = vadd.f32 1.0, %v2088_v6  ;;  %2435 = vmatpush1.bf16.msra.mxu1 %v5240_v43  ;;  %v5245_v6 = vld [vmem:[%s7154_s7 + $0x54] ss:$8 sps:$4 sm:$0xff]  }
 0xae4   :  { %2436 = vmatprep.subr.bf16.mxu1 %v5245_v6 }
 0xae5   :  { %v2104_v47 = vmul.f32 %v2096_v15, %v1895_v60  ;;  %v5248_v60 = vld [vmem:[%s7154_s7 + $0x64] ss:$8 sps:$4 sm:$0xff]   ;;  %v5246_v15 = vld [vmem:[%s7154_s7 + $0x60] ss:$8 sps:$4 sm:$0xff]  }
 0xae7   :  { %v2108_v35 = vpack.c.bf16 %v2104_v47, %v2102_v26  ;;  %2437 = vmatpush1.bf16.msra.mxu1 %v5243_v23  ;;  %v5251_v26 = vld [vmem:[%s7154_s7 + $0x74] ss:$8 sps:$4 sm:$0xff]   ;;  %v5249_v47 = vld [vmem:[%s7154_s7 + $0x70] ss:$8 sps:$4 sm:$0xff]  }
 0xae8   :  { %2438 = vmatprep.subr.bf16.mxu1 %v5248_v60 }
 0xae9   :  { %2281 = vmatprep.mubr.bf16.mxu0 %v2108_v35 }
 0xaea   :  { %2282 = vmatmul.mubr.bf16.gmra.mrb[40].mxu0 %v2107_v12 }
 0xaeb   :  { %4889 = vmatprep.mubr.msk.bf16.mxu0 %vm5523_vm1, %v5521_v2  ;;  %2439 = vmatpush1.bf16.msra.mxu1 %v5246_v15 }
 0xaec   :  { %2440 = vmatprep.subr.bf16.mxu1 %v5251_v26 }
 0xaef   :  { %2441 = vmatpush1.bf16.msra.mxu1 %v5249_v47 }
 0xaf0   :  { %4875 = vmatprep.subr.bf16.mxu1 %v5521_v2 }
 0xba9   :  { %v4689_v32 = vpop.f32.mrb[36].mxu0 }
 0xbaa   :  { %v4690_v53 = vpop.f32.mrb[37].mxu0 }
 0xbab   :  { %v4691_v52 = vadd.f32 %v4690_v53, %v4689_v32  ;;  %v4692_v55 = vpop.f32.mrb[38].mxu0 }
 0xbac   :  { %v4693_v61 = vpop.f32.mrb[39].mxu0 }
 0xbad   :  { %v2276_v45 = vadd.f32 %v4691_v52, %v2144_v50  ;;  %v4694_v16 = vadd.f32 %v4693_v61, %v4692_v55  ;;  %v4482_v61 = vld [vmem:[%s7155_s4 + $0x8] sm:$0x3f] }
 0xbaf   :  { %v6411_v9 = vadd.f32 %v2276_v45, %v6143_v20  ;;  %v2279_v49 = vadd.f32 %v4694_v16, %v2144_v50  ;;  %v2351_v45 = vrot.slane %v4482_v61, %v5726_v21 }
 0xbb1   :  { %v6414_v56 = vadd.f32 %v2279_v49, %v6149_v4  ;;  %v2296_v54 = vsel %vm280_vm0, %v6411_v9, 0.0 }
 0xbb2   :  { %2297 = vadd.xlane.f32.xlu0 %v2296_v54 }
 0xbb3   :  { %v2299_v62 = vsel %vm280_vm0, %v6414_v56, 0.0 }
 0xbb4   :  { %2300 = vadd.xlane.f32.xlu1 %v2299_v62  ;;  %v2359_v62 = vrot.slane %v4482_v61, %v5733_v30 }
 0xbbd   :  { %v4695_v25 = vpop.f32.mrb[40].mxu0 }
 0xbbe   :  { %v4696_v34 = vpop.f32.mrb[41].mxu0 }
 0xbbf   :  { %v4697_v3 = vadd.f32 %v4696_v34, %v4695_v25  ;;  %v4698_v22 = vpop.f32.mrb[42].mxu0 }
 0xbc0   :  { %v4699_v37 = vpop.f32.mrb[43].mxu0 }
 0xbc1   :  { %v2284_v59 = vadd.f32 %v4697_v3, %v2144_v50  ;;  %v4700_v20 = vadd.f32 %v4699_v37, %v4698_v22 }
 0xbc3   :  { %v6421_v31 = vadd.f32 %v2284_v59, %v6146_v5  ;;  %v2287_v4 = vadd.f32 %v4700_v20, %v2144_v50 }
 0xbc5   :  { %v6424_v40 = vadd.f32 %v2287_v4, %v6155_v27  ;;  %v2302_v0 = vsel %vm280_vm0, %v6421_v31, 0.0 }
 0xbc6   :  { %2303 = vadd.xlane.f32.xlu0 %v2302_v0 }
 0xbc7   :  { %v2305_v48 = vsel %vm280_vm0, %v6424_v40, 0.0 }
 0xbc8   :  { %2306 = vadd.xlane.f32.xlu1 %v2305_v48 }
 0xc3f   :  { %v2298_v39 = vpop.xlane.xlu0 %2297 }
 0xc40   :  { %v2308_v19 = vmul.f32 0.015625, %v2298_v39 }
 0xc41   :  { %v2301_v36 = vpop.xlane.xlu1 %2300 }
 0xc42   :  { %v2312_v8 = vsub.f32 %v6411_v9, %v2308_v19  ;;  %v2309_v10 = vmul.f32 0.015625, %v2301_v36 }
 0xc44   :  { %v2313_v5 = vsub.f32 %v6414_v56, %v2309_v10  ;;  %v2316_v44 = vmul.f32 %v2312_v8, %v2312_v8 }
 0xc46   :  { %v2320_v27 = vsel %vm280_vm0, %v2316_v44, 0.0  ;;  %v2317_v14 = vmul.f32 %v2313_v5, %v2313_v5 }
 0xc47   :  { %2321 = vadd.xlane.f32.xlu0 %v2320_v27 }
 0xc48   :  { %v2323_v24 = vsel %vm280_vm0, %v2317_v14, 0.0 }
 0xc49   :  { %2324 = vadd.xlane.f32.xlu1 %v2323_v24 }
 0xc53   :  { %v2304_v41 = vpop.xlane.xlu0 %2303 }
 0xc54   :  { %v2310_v46 = vmul.f32 0.015625, %v2304_v41 }
 0xc55   :  { %v2307_v38 = vpop.xlane.xlu1 %2306 }
 0xc56   :  { %v2314_v18 = vsub.f32 %v6421_v31, %v2310_v46  ;;  %v2311_v58 = vmul.f32 0.015625, %v2307_v38  ;;  %v4491_v46 = vld [vmem:[%s7156_s5 + $0x2] sm:$0x3] }
 0xc57   :  { %v2381_v38 = vrot.slane %v4491_v46, %v5726_v21 }
 0xc58   :  { %v2315_v42 = vsub.f32 %v6424_v40, %v2311_v58  ;;  %v2318_v29 = vmul.f32 %v2314_v18, %v2314_v18 }
 0xc5a   :  { %v2326_v33 = vsel %vm280_vm0, %v2318_v29, 0.0  ;;  %v2319_v12 = vmul.f32 %v2315_v42, %v2315_v42 }
 0xc5b   :  { %2327 = vadd.xlane.f32.xlu0 %v2326_v33 }
 0xc5c   :  { %v2329_v51 = vsel %vm280_vm0, %v2319_v12, 0.0 }
 0xc5d   :  { %2330 = vadd.xlane.f32.xlu1 %v2329_v51 }
 0xcd4   :  { %v2322_v35 = vpop.xlane.xlu0 %2321 }
 0xcd5   :  { %v2332_v32 = vmul.f32 0.015625, %v2322_v35 }
 0xcd6   :  { %v2325_v50 = vpop.xlane.xlu1 %2324 }
 0xcd7   :  { %v2336_v53 = vadd.f32 1e-05, %v2332_v32  ;;  %v2333_v52 = vmul.f32 0.015625, %v2325_v50 }
 0xcd9   :  { %5396 = vrsqrt.f32 %v2336_v53  ;;  %v2337_v55 = vadd.f32 1e-05, %v2333_v52 }
 0xcdb   :  { %5398 = vrsqrt.f32 %v2337_v55 }
 0xce3   :  { %v5397_v16 = vpop.eup %5396 }
 0xce4   :  { %v2344_v49 = vmul.f32 %v5397_v16, %v2312_v8 }
 0xce5   :  { %v5399_v54 = vpop.eup %5398 }
 0xce6   :  { %v2352_v25 = vmul.f32 %v2351_v45, %v2344_v49  ;;  %v2345_v34 = vmul.f32 %v5399_v54, %v2313_v5 }
 0xce8   :  { %v2353_v3 = vmul.f32 %v2351_v45, %v2345_v34  ;;  %v2328_v22 = vpop.xlane.xlu0 %2327  ;;  %v2360_v37 = vadd.f32 %v2359_v62, %v2352_v25 }
 0xce9   :  { %v2334_v20 = vmul.f32 0.015625, %v2328_v22 }
 0xcea   :  { %v2361_v59 = vadd.f32 %v2359_v62, %v2353_v3  ;;  %v2331_v4 = vpop.xlane.xlu1 %2330 }
 0xceb   :  { %v2338_v0 = vadd.f32 1e-05, %v2334_v20  ;;  %v2335_v48 = vmul.f32 0.015625, %v2331_v4 }
 0xcec   :  { %v2364_v39 = vpack.c.bf16 %v2361_v59, %v2360_v37 }
 0xced   :  { %5400 = vrsqrt.f32 %v2338_v0  ;;  %v2339_v19 = vadd.f32 1e-05, %v2335_v48 }
 0xcee   :  { %4500 = vmatmul.mubr.msk.bf16.vlgmr.msra.gmra.mrb[56].mxu1 %vm280_vm0, %v2364_v39 }
 0xcef   :  { %2476 = vmatprep.mubr.bf16.mxu1 %v5518_v7  ;;  %5402 = vrsqrt.f32 %v2339_v19 }
 0xcf7   :  { %v5401_v36 = vpop.eup %5400 }
 0xcf8   :  { %v2346_v8 = vmul.f32 %v5401_v36, %v2314_v18  ;;  %v2385_v18 = vrot.slane %v4491_v46, %v5733_v30 }
 0xcf9   :  { %v5403_v10 = vpop.eup %5402 }
 0xcfa   :  { %v2347_v5 = vmul.f32 %v5403_v10, %v2315_v42  ;;  %v2354_v44 = vmul.f32 %v2351_v45, %v2346_v8 }
 0xcfc   :  { %v2355_v27 = vmul.f32 %v2351_v45, %v2347_v5  ;;  %v2362_v14 = vadd.f32 %v2359_v62, %v2354_v44 }
 0xcfe   :  { %v2363_v24 = vadd.f32 %v2359_v62, %v2355_v27 }
 0xd00   :  { %v2365_v41 = vpack.c.bf16 %v2363_v24, %v2362_v14 }
 0xd02   :  { %4501 = vmatmul.mubr.msk.bf16.gmra.mrb[60].mxu1 %vm280_vm0, %v2365_v41 }
 0xd03   :  { %4877 = vmatprep.mubr.msk.bf16.mxu1 %vm5523_vm1, %v5521_v2 }
 0xdc1   :  { %v2468_v58 = vpop.f32.mrb[56].mxu1 }
 0xdc2   :  { %v2470_v42 = vpop.f32.mrb[57].mxu1  ;;  %v2469_v33 = vadd.f32 %v2468_v58, %v2381_v38 }
 0xdc3   :  { %v2472_v29 = vpop.f32.mrb[58].mxu1  ;;  %v6478_v13 = vadd.f32 %v2470_v42, %v2385_v18 }
 0xdc4   :  { %v2473_v12 = vadd.f32 %v2472_v29, %v2381_v38  ;;  %v2474_v51 = vpop.f32.mrb[59].mxu1 }
 0xdc5   :  { %v6480_v43 = vadd.f32 %v2474_v51, %v2385_v18 }
 0xdc6   :  { %v5089_v6 = vpack.i.bf16 %v2473_v12, %v2469_v33  ;;  %v2527_v23 = vpack.c.bf16 %v2473_v12, %v2469_v33 }
 0xdc7   :  { %v2575_v60 = vpack.c.bf16 %v6480_v43, %v6478_v13  ;;  %v6486_v15 = vpack.i.bf16 %v6480_v43, %v6478_v13  ;;  %v263_v13 = vld [vmem:[%s7157_s11 + $0x80] sm:$0xff] }
 0xdc8   :  { %5090 = vrot.lane.b32.xlu1 %v5089_v6, %s5519_s30  ;;  %5085 = vrot.lane.b32.xlu0 %v5089_v6, %s5520_s2 }
 0xdcc   :  { %5095 = vrot.lane.b32.xlu1 %v5089_v6, %s5522_s13 }
 0xdd5   :  { %v2478_v26 = vpop.f32.mrb[60].mxu1 }
 0xdd6   :  { %v2480_v47 = vpop.f32.mrb[61].mxu1  ;;  %v2479_v50 = vadd.f32 %v2478_v26, %v2381_v38 }
 0xdd7   :  { %v6491_v35 = vadd.f32 %v2480_v47, %v2385_v18  ;;  %v2482_v32 = vpop.f32.mrb[62].mxu1 }
 0xdd8   :  { %v2483_v53 = vadd.f32 %v2482_v32, %v2381_v38  ;;  %v2484_v52 = vpop.f32.mrb[63].mxu1 }
 0xdd9   :  { %v6493_v55 = vadd.f32 %v2484_v52, %v2385_v18 }
 0xdda   :  { %v5104_v61 = vpack.i.bf16 %v2483_v53, %v2479_v50  ;;  %v6495_v45 = vpack.c.bf16 %v2483_v53, %v2479_v50 }
 0xddb   :  { %v6499_v16 = vpack.i.bf16 %v6493_v55, %v6491_v35  ;;  %v2579_v49 = vpack.c.bf16 %v6493_v55, %v6491_v35 }
 0xddc   :  { %5105 = vrot.lane.b32.xlu0 %v5104_v61, %s5519_s30  ;;  %5100 = vrot.lane.b32.xlu1 %v5104_v61, %s5520_s2 }
 0xde0   :  { %2584 = vrot.lane.b32.xlu0 %v2527_v23, %s5524_s14  ;;  %5110 = vrot.lane.b32.xlu1 %v5104_v61, %s5522_s13 }
 0xe3a   :  { %v5091_v54 = vpop.permute.xlu1 %5090  ;;  %v5086_v62 = vpop.permute.xlu0 %5085 }
 0xe3b   :  { %v5093_v25 = vunpack.i.h.bf16 %v5091_v54  ;;  %v5092_v34 = vunpack.i.l.bf16 %v5091_v54  ;;  %v5088_v3 = vunpack.i.h.bf16 %v5086_v62  ;;  %v5087_v22 = vunpack.i.l.bf16 %v5086_v62 }
 0xe3d   :  { %v2529_v37 = vpack.c.bf16 %v5093_v25, %v5092_v34  ;;  %v2528_v59 = vpack.c.bf16 %v5088_v3, %v5087_v22 }
 0xe3e   :  { %v5096_v20 = vpop.permute.xlu1 %5095 }
 0xe3f   :  { %v5098_v4 = vunpack.i.h.bf16 %v5096_v20  ;;  %v5097_v0 = vunpack.i.l.bf16 %v5096_v20  ;;  %2684 = vrot.lane.b32.xlu0 %v2529_v37, %s5524_s14  ;;  %2634 = vrot.lane.b32.xlu1 %v2528_v59, %s5524_s14 }
 0xe41   :  { %v2530_v48 = vpack.c.bf16 %v5098_v4, %v5097_v0  ;;  %v265_v4 = vld [vmem:[%s7157_s11 + $0x90] sm:$0xff] }
 0xe43   :  { %2784 = vrot.lane.b32.xlu0 %v6495_v45, %s5524_s14  ;;  %2734 = vrot.lane.b32.xlu1 %v2530_v48, %s5524_s14 }
 0xe4e   :  { %v5101_v39 = vpop.permute.xlu1 %5100  ;;  %v5106_v19 = vpop.permute.xlu0 %5105 }
 0xe4f   :  { %v5103_v36 = vunpack.i.h.bf16 %v5101_v39  ;;  %v5102_v8 = vunpack.i.l.bf16 %v5101_v39  ;;  %v5108_v10 = vunpack.i.h.bf16 %v5106_v19  ;;  %v5107_v5 = vunpack.i.l.bf16 %v5106_v19  ;;  %v266_v19 = vld [vmem:[%s7157_s11 + $0x98] sm:$0xff] }
 0xe51   :  { %v2532_v44 = vpack.c.bf16 %v5103_v36, %v5102_v8  ;;  %v2533_v27 = vpack.c.bf16 %v5108_v10, %v5107_v5  ;;  %v268_v8 = vld [vmem:[%s7157_s11 + $0xa8] sm:$0xff] }
 0xe52   :  { %v5111_v14 = vpop.permute.xlu1 %5110  ;;  %v2585_v24 = vpop.permute.xlu0 %2584 }
 0xe53   :  { %v5113_v41 = vunpack.i.h.bf16 %v5111_v14  ;;  %v5112_v46 = vunpack.i.l.bf16 %v5111_v14  ;;  %v2590_v38 = vsel %vm570_vm2, %v2585_v24, 0  ;;  %2884 = vrot.lane.b32.xlu0 %v2533_v27, %s5524_s14  ;;  %2834 = vrot.lane.b32.xlu1 %v2532_v44, %s5524_s14 }
 0xe54   :  { %4876 = vmatpush3.bf16.xpose.msra.mxu1 %v2590_v38 }
 0xe55   :  { %v2534_v58 = vpack.c.bf16 %v5113_v41, %v5112_v46  ;;  %4881 = vmatprep.subr.bf16.mxu1 %v5521_v2 }
 0xe57   :  { %2934 = vrot.lane.b32.xlu1 %v2534_v58, %s5524_s14 }
 0xe5b   :  { %4878 = vmatmul.mubr.msk.bf16.vlgmr.msra.gmra.mrb[64].mxu1 %vm570_vm2, %v2527_v23 }
 0xe5c   :  { %4883 = vmatprep.mubr.msk.bf16.mxu1 %vm5523_vm1, %v5521_v2 }
 0xeb1   :  { %v2685_v18 = vpop.permute.xlu0 %2684  ;;  %v2635_v42 = vpop.permute.xlu1 %2634 }
 0xeb2   :  { %v2690_v29 = vsel %vm570_vm2, %v2685_v18, 0  ;;  %v2640_v33 = vsel %vm570_vm2, %v2635_v42, 0  ;;  %v267_v18 = vld [vmem:[%s7157_s11 + $0xa0] sm:$0xff] }
 0xeb3   :  { %4882 = vmatpush3.bf16.xpose.msra.mxu1 %v2640_v33  ;;  %4888 = vmatpush3.bf16.xpose.msra.mxu0 %v2690_v29 }
 0xeb4   :  { %4893 = vmatprep.subr.bf16.mxu1 %v5521_v2  ;;  %4899 = vmatprep.subr.bf16.mxu0 %v5521_v2 }
 0xeb5   :  { %v2785_v12 = vpop.permute.xlu0 %2784  ;;  %v2735_v51 = vpop.permute.xlu1 %2734 }
 0xeb6   :  { %v2790_v6 = vsel %vm570_vm2, %v2785_v12, 0  ;;  %v2740_v23 = vsel %vm570_vm2, %v2735_v51, 0 }
 0xeba   :  { %4884 = vmatmul.mubr.msk.bf16.vlgmr.msra.gmra.mrb[68].mxu1 %vm570_vm2, %v2528_v59  ;;  %4890 = vmatmul.mubr.msk.bf16.vlgmr.msra.gmra.mrb[44].mxu0 %vm570_vm2, %v2529_v37 }
 0xebb   :  { %4894 = vmatpush3.bf16.xpose.msra.mxu1 %v2740_v23  ;;  %4900 = vmatpush3.bf16.xpose.msra.mxu0 %v2790_v6 }
 0xebc   :  { %4895 = vmatprep.mubr.msk.bf16.mxu1 %vm5523_vm1, %v5521_v2  ;;  %4901 = vmatprep.mubr.msk.bf16.mxu0 %vm5523_vm1, %v5521_v2 }
 0xebd   :  { %4905 = vmatprep.subr.bf16.mxu1 %v5521_v2  ;;  %4911 = vmatprep.subr.bf16.mxu0 %v5521_v2 }
 0xec2   :  { %4896 = vmatmul.mubr.msk.bf16.vlgmr.msra.gmra.mrb[72].mxu1 %vm570_vm2, %v2530_v48  ;;  %4902 = vmatmul.mubr.msk.bf16.vlgmr.msra.gmra.mrb[48].mxu0 %vm570_vm2, %v6495_v45  ;;  %v264_v45 = vld [vmem:[%s7157_s11 + $0x88] sm:$0xff] }
 0xec3   :  { %4907 = vmatprep.mubr.msk.bf16.mxu1 %vm5523_vm1, %v5521_v2  ;;  %4913 = vmatprep.mubr.msk.bf16.mxu0 %vm5523_vm1, %v5521_v2 }
 0xec5   :  { %v2885_v26 = vpop.permute.xlu0 %2884  ;;  %v2835_v47 = vpop.permute.xlu1 %2834 }
 0xec6   :  { %v2890_v32 = vsel %vm570_vm2, %v2885_v26, 0  ;;  %v2840_v50 = vsel %vm570_vm2, %v2835_v47, 0  ;;  %v269_v47 = vld [vmem:[%s7157_s11 + $0xb0] sm:$0xff] }
 0xec7   :  { %4906 = vmatpush3.bf16.xpose.msra.mxu1 %v2840_v50  ;;  %4912 = vmatpush3.bf16.xpose.msra.mxu0 %v2890_v32  ;;  %v270_v50 = vld [vmem:[%s7157_s11 + $0xb8] sm:$0xff] }
 0xec8   :  { %4917 = vmatprep.subr.bf16.mxu1 %v5521_v2  ;;  %4923 = vmatprep.subr.bf16.mxu0 %v5521_v2 }
 0xec9   :  { %v2935_v53 = vpop.permute.xlu1 %2934 }
 0xeca   :  { %v2940_v52 = vsel %vm570_vm2, %v2935_v53, 0 }
 0xece   :  { %4908 = vmatmul.mubr.msk.bf16.vlgmr.msra.gmra.mrb[76].mxu1 %vm570_vm2, %v2532_v44  ;;  %4914 = vmatmul.mubr.msk.bf16.vlgmr.msra.gmra.mrb[52].mxu0 %vm570_vm2, %v2533_v27 }
 0xecf   :  { %4918 = vmatpush3.bf16.xpose.msra.mxu1 %v2940_v52  ;;  %4924 = vmatpush3.bf16.msra.mxu0 %v2575_v60 }
 0xed0   :  { %4919 = vmatprep.mubr.msk.bf16.mxu1 %vm5523_vm1, %v5521_v2  ;;  %4929 = vmatprep.subr.bf16.mxu1 %v5521_v2 }
 0xed1   :  { %4925 = vmatprep.mubr.msk.bf16.mxu0 %vm5523_vm1, %v5521_v2  ;;  %4935 = vmatprep.subr.bf16.mxu0 %v5521_v2 }
 0xed6   :  { %4920 = vmatmul.mubr.msk.bf16.vlgmr.msra.gmra.mrb[80].mxu1 %vm570_vm2, %v2534_v58 }
 0xed7   :  { %4931 = vmatprep.mubr.msk.bf16.mxu1 %vm5523_vm1, %v5521_v2 }
 0xf2e   :  { %v2626_v61 = vpop.f32.mrb[64].mxu1 }
 0xf2f   :  { %v2983_v43 = vmul.f32 0.25, %v2626_v61  ;;  %v4879_v60 = vpop.f32.mrb[65].mxu1 }
 0xf30   :  { %v2629_v54 = vpop.f32.mrb[66].mxu1  ;;  %v272_v60 = vld [vmem:[%s7157_s11 + $0xc8] sm:$0xff] }
 0xf31   :  { %v2984_v62 = vmul.f32 0.25, %v2629_v54  ;;  %v4880_v25 = vpop.f32.mrb[67].mxu1  ;;  %v6566_v34 = vadd.f32 %v2983_v43, %v263_v13 }
 0xf33   :  { %v6568_v3 = vadd.f32 %v2984_v62, %v264_v45  ;;  %v3015_v22 = vsel %vm570_vm2, %v6566_v34, -inf }
 0xf34   :  { %3016 = vmax.xlane.f32.xlu0 %v3015_v22  ;;  %v271_v22 = vld [vmem:[%s7157_s11 + $0xc0] sm:$0xff] }
 0xf35   :  { %v3018_v37 = vsel %vm570_vm2, %v6568_v3, -inf }
 0xf36   :  { %3019 = vmax.xlane.f32.xlu1 %v3018_v37 }
 0xf8d   :  { %v2676_v59 = vpop.f32.mrb[68].mxu1  ;;  %v2726_v20 = vpop.f32.mrb[44].mxu0 }
 0xf8e   :  { %v2985_v0 = vmul.f32 0.25, %v2676_v59  ;;  %v4885_v48 = vpop.f32.mrb[69].mxu1  ;;  %v4891_v39 = vpop.f32.mrb[45].mxu0  ;;  %v2987_v41 = vmul.f32 0.25, %v2726_v20 }
 0xf8f   :  { %v2679_v36 = vpop.f32.mrb[70].mxu1  ;;  %v2729_v10 = vpop.f32.mrb[46].mxu0  ;;  %v273_v39 = vld [vmem:[%s7157_s11 + $0xd0] sm:$0xff] }
 0xf90   :  { %v2986_v5 = vmul.f32 0.25, %v2679_v36  ;;  %v2988_v44 = vmul.f32 0.25, %v2729_v10  ;;  %v4886_v27 = vpop.f32.mrb[71].mxu1  ;;  %v4892_v14 = vpop.f32.mrb[47].mxu0  ;;  %v6583_v24 = vadd.f32 %v2985_v0, %v265_v4  ;;  %v6596_v12 = vadd.f32 %v2987_v41, %v267_v18  ;;  %v274_v41 = vld [vmem:[%s7157_s11 + $0xd8] sm:$0xff] }
 0xf91   :  { %v275_v27 = vld [vmem:[%s7157_s11 + $0xe0] sm:$0xff] }
 0xf92   :  { %v6585_v46 = vadd.f32 %v2986_v5, %v266_v19  ;;  %v6587_v38 = vadd.f32 %v2988_v44, %v268_v8  ;;  %v3021_v58 = vsel %vm570_vm2, %v6583_v24, -inf  ;;  %v3027_v25 = vsel %vm570_vm2, %v6596_v12, -inf }
 0xf93   :  { %3022 = vmax.xlane.f32.xlu0 %v3021_v58 }
 0xf94   :  { %v3030_v42 = vsel %vm570_vm2, %v6587_v38, -inf  ;;  %v3024_v26 = vsel %vm570_vm2, %v6585_v46, -inf }
 0xf95   :  { %v2826_v29 = vpop.f32.mrb[48].mxu0  ;;  %3031 = vmax.xlane.f32.xlu1 %v3030_v42  ;;  %v2776_v33 = vpop.f32.mrb[72].mxu1 }
 0xf96   :  { %v2989_v51 = vmul.f32 0.25, %v2776_v33  ;;  %v4897_v6 = vpop.f32.mrb[73].mxu1  ;;  %v4903_v23 = vpop.f32.mrb[49].mxu0  ;;  %v2991_v45 = vmul.f32 0.25, %v2826_v29 }
 0xf97   :  { %v2829_v32 = vpop.f32.mrb[50].mxu0  ;;  %3025 = vmax.xlane.f32.xlu0 %v3024_v26  ;;  %v2779_v53 = vpop.f32.mrb[74].mxu1  ;;  %v276_v6 = vld [vmem:[%s7157_s11 + $0xe8] sm:$0xff] }
 0xf98   :  { %v2992_v52 = vmul.f32 0.25, %v2829_v32  ;;  %v2990_v61 = vmul.f32 0.25, %v2779_v53  ;;  %v4898_v13 = vpop.f32.mrb[75].mxu1  ;;  %v4904_v43 = vpop.f32.mrb[51].mxu0  ;;  %v6609_v54 = vadd.f32 %v2989_v51, %v269_v47  ;;  %v6622_v20 = vadd.f32 %v2991_v45, %v271_v22  ;;  %v277_v53 = vld [vmem:[%s7157_s11 + $0xf0] sm:$0xff] }
 0xf9a   :  { %v6611_v62 = vadd.f32 %v2990_v61, %v270_v50  ;;  %v6618_v37 = vadd.f32 %v2992_v52, %v272_v60  ;;  %v3033_v4 = vsel %vm570_vm2, %v6609_v54, -inf  ;;  %v3039_v36 = vsel %vm570_vm2, %v6622_v20, -inf }
 0xf9b   :  { %3028 = vmax.xlane.f32.xlu0 %v3027_v25 }
 0xf9c   :  { %v3036_v59 = vsel %vm570_vm2, %v6611_v62, -inf  ;;  %v3042_v0 = vsel %vm570_vm2, %v6618_v37, -inf }
 0xf9d   :  { %3037 = vmax.xlane.f32.xlu1 %v3036_v59 }
 0xf9f   :  { %3034 = vmax.xlane.f32.xlu0 %v3033_v4 }
 0xfa1   :  { %3043 = vmax.xlane.f32.xlu1 %v3042_v0  ;;  %v2926_v48 = vpop.f32.mrb[52].mxu0  ;;  %v2876_v19 = vpop.f32.mrb[76].mxu1 }
 0xfa2   :  { %v2995_v8 = vmul.f32 0.25, %v2926_v48  ;;  %v2993_v10 = vmul.f32 0.25, %v2876_v19  ;;  %v4909_v5 = vpop.f32.mrb[77].mxu1  ;;  %v4915_v44 = vpop.f32.mrb[53].mxu0  ;;  %v278_v19 = vld [vmem:[%s7157_s11 + $0xf8] sm:$0xff] }
 0xfa3   :  { %3040 = vmax.xlane.f32.xlu0 %v3039_v36  ;;  %v2929_v14 = vpop.f32.mrb[54].mxu0  ;;  %v2879_v58 = vpop.f32.mrb[78].mxu1 }
 0xfa4   :  { %v6639_v18 = vadd.f32 %v2993_v10, %v273_v39  ;;  %v2996_v42 = vmul.f32 0.25, %v2929_v14  ;;  %v2994_v29 = vmul.f32 0.25, %v2879_v58  ;;  %v4910_v33 = vpop.f32.mrb[79].mxu1  ;;  %v4916_v51 = vpop.f32.mrb[55].mxu0  ;;  %v6644_v23 = vadd.f32 %v2995_v8, %v275_v27 }
 0xfa6   :  { %v6646_v26 = vadd.f32 %v2994_v29, %v274_v41  ;;  %v3045_v47 = vsel %vm570_vm2, %v6639_v18, -inf  ;;  %v6650_v32 = vadd.f32 %v2996_v42, %v276_v6  ;;  %v3051_v43 = vsel %vm570_vm2, %v6644_v23, -inf }
 0xfa7   :  { %3046 = vmax.xlane.f32.xlu0 %v3045_v47 }
 0xfa8   :  { %v3048_v50 = vsel %vm570_vm2, %v6646_v26, -inf  ;;  %v3054_v22 = vsel %vm570_vm2, %v6650_v32, -inf }
 0xfa9   :  { %3049 = vmax.xlane.f32.xlu1 %v3048_v50  ;;  %v2976_v52 = vpop.f32.mrb[80].mxu1 }
 0xfaa   :  { %v2997_v61 = vmul.f32 0.25, %v2976_v52  ;;  %v4921_v13 = vpop.f32.mrb[81].mxu1 }
 0xfab   :  { %v2979_v60 = vpop.f32.mrb[82].mxu1  ;;  %3052 = vmax.xlane.f32.xlu0 %v3051_v43 }
 0xfac   :  { %v6659_v45 = vadd.f32 %v2997_v61, %v277_v53  ;;  %v4922_v25 = vpop.f32.mrb[83].mxu1  ;;  %v2998_v39 = vmul.f32 0.25, %v2979_v60 }
 0xfad   :  { %3055 = vmax.xlane.f32.xlu1 %v3054_v22 }
 0xfae   :  { %v3057_v59 = vsel %vm570_vm2, %v6659_v45, -inf  ;;  %v6675_v36 = vadd.f32 %v2998_v39, %v278_v19 }
 0xfaf   :  { %3058 = vmax.xlane.f32.xlu0 %v3057_v59 }
 0xfb0   :  { %v3060_v8 = vsel %vm570_vm2, %v6675_v36, -inf }
 0xfbe   :  { %5120 = vrot.lane.b32.xlu1 %v6486_v15, %s5519_s30 }
 0xfc1   :  { %v3017_v4 = vpop.xlane.xlu0 %3016 }
 0xfc2   :  { %v3063_v0 = vsub.f32 %v6566_v34, %v3017_v4 }
 0xfc3   :  { %v3020_v34 = vpop.xlane.xlu1 %3019 }
 0xfc4   :  { %v3079_v48 = vmul.f32 1.442695, %v3063_v0  ;;  %v3064_v5 = vsub.f32 %v6568_v3, %v3020_v34 }
 0xfc5   :  { %5115 = vrot.lane.b32.xlu0 %v6486_v15, %s5520_s2 }
 0xfc6   :  { %5404 = vpow2.f32 %v3079_v48  ;;  %v3081_v44 = vmul.f32 1.442695, %v3064_v5 }
 0xfc8   :  { %5406 = vpow2.f32 %v3081_v44 }
 0xfc9   :  { %5125 = vrot.lane.b32.xlu0 %v6486_v15, %s5522_s13 }
 0xfd0   :  { %v6679_v10 = vpop.eup %5404 }
 0xfd1   :  { %v3111_v15 = vsel %vm570_vm2, %v6679_v10, 0.0 }
 0xfd2   :  { %v6686_v27 = vpop.eup %5406 }
 0xfd3   :  { %v3114_v14 = vsel %vm570_vm2, %v6686_v27, 0.0 }
 0xfe2   :  { %3061 = vmax.xlane.f32.xlu1 %v3060_v8 }
 0xfe8   :  { %3112 = vadd.xlane.f32.xlu0 %v3111_v15 }
 0xff3   :  { %5130 = vrot.lane.b32.xlu1 %v6499_v16, %s5520_s2 }
0x1017   :  { %3115 = vadd.xlane.f32.xlu1 %v3114_v14 }
0x1020   :  { %v3023_v41 = vpop.xlane.xlu0 %3022 }
0x1021   :  { %v3065_v58 = vsub.f32 %v6583_v24, %v3023_v41 }
0x1022   :  { %v3032_v42 = vpop.xlane.xlu1 %3031 }
0x1023   :  { %v3083_v29 = vmul.f32 1.442695, %v3065_v58  ;;  %v3068_v33 = vsub.f32 %v6587_v38, %v3032_v42 }
0x1024   :  { %v3026_v51 = vpop.xlane.xlu0 %3025 }
0x1025   :  { %5408 = vpow2.f32 %v3083_v29  ;;  %v3066_v6 = vsub.f32 %v6585_v46, %v3026_v51  ;;  %v3089_v3 = vmul.f32 1.442695, %v3068_v33 }
0x1027   :  { %v3085_v47 = vmul.f32 1.442695, %v3066_v6 }
0x1028   :  { %v3029_v50 = vpop.xlane.xlu0 %3028 }
0x1029   :  { %5410 = vpow2.f32 %v3085_v47  ;;  %v3067_v53 = vsub.f32 %v6596_v12, %v3029_v50 }
0x102a   :  { %v3038_v52 = vpop.xlane.xlu1 %3037  ;;  %5412 = vpow2.f32 %v3089_v3 }
0x102b   :  { %v3087_v61 = vmul.f32 1.442695, %v3067_v53  ;;  %v3070_v13 = vsub.f32 %v6611_v62, %v3038_v52 }
0x102c   :  { %v3035_v24 = vpop.xlane.xlu0 %3034 }
0x102d   :  { %5414 = vpow2.f32 %v3087_v61  ;;  %v3093_v43 = vmul.f32 1.442695, %v3070_v13  ;;  %v3069_v38 = vsub.f32 %v6609_v54, %v3035_v24 }
0x102e   :  { %v3044_v60 = vpop.xlane.xlu1 %3043 }
0x102f   :  { %v6696_v25 = vpop.eup %5408  ;;  %5416 = vpow2.f32 %v3093_v43  ;;  %v3091_v46 = vmul.f32 1.442695, %v3069_v38  ;;  %v3072_v22 = vsub.f32 %v6618_v37, %v3044_v60 }
0x1030   :  { %v3041_v59 = vpop.xlane.xlu0 %3040  ;;  %v3117_v12 = vsel %vm570_vm2, %v6696_v25, 0.0 }
0x1031   :  { %5418 = vpow2.f32 %v3091_v46  ;;  %v3097_v4 = vmul.f32 1.442695, %v3072_v22  ;;  %v3071_v62 = vsub.f32 %v6622_v20, %v3041_v59  ;;  %3118 = vadd.xlane.f32.xlu0 %v3117_v12 }
0x1033   :  { %v6702_v0 = vpop.eup %5410  ;;  %5420 = vpow2.f32 %v3097_v4  ;;  %v3095_v54 = vmul.f32 1.442695, %v3071_v62 }
0x1034   :  { %v3120_v48 = vsel %vm570_vm2, %v6702_v0, 0.0  ;;  %v6706_v39 = vpop.eup %5412  ;;  %v3047_v37 = vpop.xlane.xlu0 %3046 }
0x1035   :  { %5422 = vpow2.f32 %v3095_v54  ;;  %3121 = vadd.xlane.f32.xlu1 %v3120_v48  ;;  %v3073_v19 = vsub.f32 %v6639_v18, %v3047_v37  ;;  %v3126_v44 = vsel %vm570_vm2, %v6706_v39, 0.0 }
0x1036   :  { %v3050_v15 = vpop.xlane.xlu1 %3049 }
0x1037   :  { %v6709_v8 = vpop.eup %5414  ;;  %v3074_v20 = vsub.f32 %v6646_v26, %v3050_v15  ;;  %v3099_v34 = vmul.f32 1.442695, %v3073_v19 }
0x1038   :  { %v3123_v5 = vsel %vm570_vm2, %v6709_v8, 0.0  ;;  %v3053_v41 = vpop.xlane.xlu0 %3052 }
0x1039   :  { %v6716_v14 = vpop.eup %5416  ;;  %3124 = vadd.xlane.f32.xlu0 %v3123_v5  ;;  %3127 = vadd.xlane.f32.xlu1 %v3126_v44  ;;  %v3101_v58 = vmul.f32 1.442695, %v3074_v20  ;;  %5424 = vpow2.f32 %v3099_v34  ;;  %v3075_v18 = vsub.f32 %v6644_v23, %v3053_v41 }
0x103a   :  { %v3056_v29 = vpop.xlane.xlu1 %3055  ;;  %v3132_v26 = vsel %vm570_vm2, %v6716_v14, 0.0 }
0x103b   :  { %v6719_v42 = vpop.eup %5418  ;;  %5426 = vpow2.f32 %v3101_v58  ;;  %v3076_v33 = vsub.f32 %v6650_v32, %v3056_v29  ;;  %v3103_v51 = vmul.f32 1.442695, %v3075_v18 }
0x103c   :  { %v3129_v6 = vsel %vm570_vm2, %v6719_v42, 0.0  ;;  %v3059_v47 = vpop.xlane.xlu0 %3058 }
0x103d   :  { %v6726_v3 = vpop.eup %5420  ;;  %3130 = vadd.xlane.f32.xlu0 %v3129_v6  ;;  %3133 = vadd.xlane.f32.xlu1 %v3132_v26  ;;  %v3105_v50 = vmul.f32 1.442695, %v3076_v33  ;;  %5428 = vpow2.f32 %v3103_v51  ;;  %v3077_v23 = vsub.f32 %v6659_v45, %v3059_v47 }
0x103e   :  { %v3138_v32 = vsel %vm570_vm2, %v6726_v3, 0.0  ;;  %v5121_v37 = vpop.permute.xlu1 %5120 }
0x103f   :  { %v6729_v53 = vpop.eup %5422  ;;  %5430 = vpow2.f32 %v3105_v50  ;;  %v3107_v52 = vmul.f32 1.442695, %v3077_v23  ;;  %v5123_v26 = vunpack.i.h.bf16 %v5121_v37  ;;  %v5122_v33 = vunpack.i.l.bf16 %v5121_v37 }
0x1040   :  { %v5116_v61 = vpop.permute.xlu0 %5115  ;;  %v3135_v13 = vsel %vm570_vm2, %v6729_v53, 0.0 }
0x1041   :  { %3139 = vadd.xlane.f32.xlu1 %v3138_v32  ;;  %5432 = vpow2.f32 %v3107_v52  ;;  %v5118_v24 = vunpack.i.h.bf16 %v5116_v61  ;;  %v5117_v43 = vunpack.i.l.bf16 %v5116_v61  ;;  %3136 = vadd.xlane.f32.xlu0 %v3135_v13  ;;  %v2577_v50 = vpack.c.bf16 %v5123_v26, %v5122_v33 }
0x1043   :  { %v6735_v38 = vpop.eup %5424  ;;  %v2576_v60 = vpack.c.bf16 %v5118_v24, %v5117_v43 }
0x1044   :  { %v3141_v45 = vsel %vm570_vm2, %v6735_v38, 0.0  ;;  %v5126_v44 = vpop.permute.xlu0 %5125 }
0x1045   :  { %v6739_v46 = vpop.eup %5426  ;;  %3142 = vadd.xlane.f32.xlu0 %v3141_v45  ;;  %4930 = vmatpush3.bf16.msra.mxu1 %v2576_v60  ;;  %v5128_v24 = vunpack.i.h.bf16 %v5126_v44  ;;  %v5127_v43 = vunpack.i.l.bf16 %v5126_v44 }
0x1046   :  { %v3144_v22 = vsel %vm570_vm2, %v6739_v46, 0.0  ;;  %4941 = vmatprep.subr.bf16.mxu1 %v5521_v2 }
0x1047   :  { %v6744_v59 = vpop.eup %5428  ;;  %3145 = vadd.xlane.f32.xlu1 %v3144_v22  ;;  %v2578_v37 = vpack.c.bf16 %v5128_v24, %v5127_v43 }
0x1048   :  { %v3147_v12 = vsel %vm570_vm2, %v6744_v59, 0.0 }
0x1049   :  { %v6748_v4 = vpop.eup %5430  ;;  %3148 = vadd.xlane.f32.xlu0 %v3147_v12 }
0x104a   :  { %v3150_v62 = vsel %vm570_vm2, %v6748_v4, 0.0 }
0x104b   :  { %v6752_v54 = vpop.eup %5432  ;;  %3151 = vadd.xlane.f32.xlu1 %v3150_v62 }
0x104c   :  { %v3153_v48 = vsel %vm570_vm2, %v6752_v54, 0.0 }
0x104f   :  { %3154 = vadd.xlane.f32.xlu1 %v3153_v48 }
0x105f   :  { %5135 = vrot.lane.b32.xlu0 %v6499_v16, %s5519_s30 }
0x106f   :  { %v3062_v19 = vpop.xlane.xlu1 %3061 }
0x1070   :  { %v3078_v15 = vsub.f32 %v6675_v36, %v3062_v19 }
0x1072   :  { %v3109_v20 = vmul.f32 1.442695, %v3078_v15 }
0x1073   :  { %v6765_v41 = vpop.permute.xlu1 %5130 }
0x1074   :  { %5434 = vpow2.f32 %v3109_v20 }
0x1075   :  { %v3113_v58 = vpop.xlane.xlu0 %3112 }
0x1076   :  { %5436 = vrcp.f32 %v3113_v58 }
0x107e   :  { %v6759_v34 = vpop.eup %5434 }
0x107f   :  { %v3156_v5 = vsel %vm570_vm2, %v6759_v34, 0.0 }
0x1080   :  { %3157 = vadd.xlane.f32.xlu1 %v3156_v5  ;;  %v5437_v29 = vpop.eup %5436 }
0x1081   :  { %v3160_v51 = vmul.f32 %v5437_v29, %v6679_v10 }
0x1091   :  { %5140 = vrot.lane.b32.xlu1 %v6499_v16, %s5522_s13 }
0x10a4   :  { %v3116_v18 = vpop.xlane.xlu1 %3115 }
0x10a5   :  { %5438 = vrcp.f32 %v3116_v18  ;;  %v5133_v18 = vunpack.i.h.bf16 %v6765_v41 }
0x10af   :  { %v5439_v36 = vpop.eup %5438 }
0x10b0   :  { %v3162_v6 = vmul.f32 %v5439_v36, %v6686_v27 }
0x10b2   :  { %v3191_v47 = vpack.c.bf16 %v3162_v6, %v3160_v51 }
0x10b4   :  { %4926 = vmatmul.mubr.msk.bf16.vlgmr.msra.gmra.mrb[56].mxu0 %vm570_vm2, %v3191_v47 }
0x10b5   :  { %4936 = vmatpush3.bf16.msra.mxu0 %v2577_v50  ;;  %4937 = vmatprep.mubr.msk.bf16.mxu0 %vm5523_vm1, %v5521_v2 }
0x10b6   :  { %4947 = vmatprep.subr.bf16.mxu0 %v5521_v2 }
0x10be   :  { %v3119_v16 = vpop.xlane.xlu0 %3118 }
0x10bf   :  { %5440 = vrcp.f32 %v3119_v16 }
0x10c2   :  { %v3122_v23 = vpop.xlane.xlu1 %3121 }
0x10c3   :  { %5442 = vrcp.f32 %v3122_v23 }
0x10c6   :  { %v3125_v52 = vpop.xlane.xlu0 %3124  ;;  %v3128_v32 = vpop.xlane.xlu1 %3127 }
0x10c7   :  { %5444 = vrcp.f32 %v3125_v52 }
0x10c8   :  { %5446 = vrcp.f32 %v3128_v32 }
0x10c9   :  { %v5441_v61 = vpop.eup %5440 }
0x10ca   :  { %v3131_v10 = vpop.xlane.xlu0 %3130  ;;  %v3134_v27 = vpop.xlane.xlu1 %3133  ;;  %v3164_v60 = vmul.f32 %v5441_v61, %v6696_v25 }
0x10cb   :  { %5448 = vrcp.f32 %v3131_v10 }
0x10cc   :  { %5450 = vrcp.f32 %v3134_v27 }
0x10cd   :  { %v5443_v13 = vpop.eup %5442 }
0x10ce   :  { %v3166_v45 = vmul.f32 %v5443_v13, %v6702_v0  ;;  %v3140_v22 = vpop.xlane.xlu1 %3139  ;;  %v3137_v12 = vpop.xlane.xlu0 %3136 }
0x10cf   :  { %5452 = vrcp.f32 %v3140_v22 }
0x10d0   :  { %5454 = vrcp.f32 %v3137_v12  ;;  %v3192_v62 = vpack.c.bf16 %v3166_v45, %v3164_v60 }
0x10d1   :  { %v5445_v48 = vpop.eup %5444 }
0x10d2   :  { %v5447_v19 = vpop.eup %5446  ;;  %v3168_v15 = vmul.f32 %v5445_v48, %v6709_v8  ;;  %4932 = vmatmul.mubr.msk.bf16.vlgmr.msra.gmra.mrb[84].mxu1 %vm570_vm2, %v3192_v62  ;;  %v3143_v5 = vpop.xlane.xlu0 %3142  ;;  %v5132_v8 = vunpack.i.l.bf16 %v6765_v41 }
0x10d3   :  { %v3170_v20 = vmul.f32 %v5447_v19, %v6706_v39  ;;  %4942 = vmatpush3.bf16.msra.mxu1 %v2578_v37  ;;  %4943 = vmatprep.mubr.msk.bf16.mxu1 %vm5523_vm1, %v5521_v2  ;;  %5456 = vrcp.f32 %v3143_v5 }
0x10d4   :  { %4953 = vmatprep.subr.bf16.mxu1 %v5521_v2  ;;  %v3146_v0 = vpop.xlane.xlu1 %3145  ;;  %v2580_v41 = vpack.c.bf16 %v5133_v18, %v5132_v8 }
0x10d5   :  { %v5449_v25 = vpop.eup %5448  ;;  %v3193_v44 = vpack.c.bf16 %v3170_v20, %v3168_v15  ;;  %5458 = vrcp.f32 %v3146_v0 }
0x10d6   :  { %v5451_v58 = vpop.eup %5450  ;;  %v3172_v29 = vmul.f32 %v5449_v25, %v6719_v42  ;;  %v3149_v36 = vpop.xlane.xlu0 %3148 }
0x10d7   :  { %v3174_v39 = vmul.f32 %v5451_v58, %v6716_v14  ;;  %4938 = vmatmul.mubr.msk.bf16.vlgmr.msra.gmra.mrb[60].mxu0 %vm570_vm2, %v3193_v44  ;;  %5460 = vrcp.f32 %v3149_v36 }
0x10d8   :  { %4948 = vmatpush3.bf16.msra.mxu0 %v2579_v49  ;;  %4949 = vmatprep.mubr.msk.bf16.mxu0 %vm5523_vm1, %v5521_v2  ;;  %v3152_v33 = vpop.xlane.xlu1 %3151 }
0x10d9   :  { %v5453_v26 = vpop.eup %5452  ;;  %v3194_v51 = vpack.c.bf16 %v3174_v39, %v3172_v29  ;;  %4959 = vmatprep.subr.bf16.mxu0 %v5521_v2  ;;  %5462 = vrcp.f32 %v3152_v33 }
0x10da   :  { %v5455_v42 = vpop.eup %5454  ;;  %v3178_v14 = vmul.f32 %v5453_v26, %v6726_v3  ;;  %v5136_v47 = vpop.permute.xlu0 %5135 }
0x10db   :  { %v3176_v6 = vmul.f32 %v5455_v42, %v6729_v53  ;;  %4944 = vmatmul.mubr.msk.bf16.vlgmr.msra.gmra.mrb[88].mxu1 %vm570_vm2, %v3194_v51  ;;  %v5138_v35 = vunpack.i.h.bf16 %v5136_v47  ;;  %v5137_v55 = vunpack.i.l.bf16 %v5136_v47 }
0x10dc   :  { %4954 = vmatpush3.bf16.msra.mxu1 %v2580_v41  ;;  %4955 = vmatprep.mubr.msk.bf16.mxu1 %vm5523_vm1, %v5521_v2  ;;  %v3155_v13 = vpop.xlane.xlu1 %3154 }
0x10dd   :  { %v3195_v49 = vpack.c.bf16 %v3178_v14, %v3176_v6  ;;  %4965 = vmatprep.subr.bf16.mxu1 %v5521_v2  ;;  %v5457_v50 = vpop.eup %5456  ;;  %v2581_v16 = vpack.c.bf16 %v5138_v35, %v5137_v55  ;;  %5464 = vrcp.f32 %v3155_v13  ;;  %v5252_v14 = vld [vmem:[%s7158_s8 + $0x20] sm:$0xff]   ;;  %v5253_v6 = vld [vmem:[%s7158_s8 + $0x28] sm:$0xff]  }
0x10de   :  { %v3180_v23 = vmul.f32 %v5457_v50, %v6735_v38 }
0x10df   :  { %4950 = vmatmul.mubr.msk.bf16.vlgmr.msra.gmra.mrb[64].mxu0 %vm570_vm2, %v3195_v49  ;;  %v5459_v3 = vpop.eup %5458  ;;  %v5254_v49 = vld [vmem:[%s7158_s8 + $0x30] sm:$0xff]  }
0x10e0   :  { %4960 = vmatpush3.bf16.msra.mxu0 %v2581_v16  ;;  %4961 = vmatprep.mubr.msk.bf16.mxu0 %vm5523_vm1, %v5521_v2  ;;  %v3182_v53 = vmul.f32 %v5459_v3, %v6739_v46 }
0x10e1   :  { %v5461_v52 = vpop.eup %5460  ;;  %4971 = vmatprep.subr.bf16.mxu0 %v5252_v14 }
0x10e2   :  { %v3184_v32 = vmul.f32 %v5461_v52, %v6744_v59  ;;  %v3196_v10 = vpack.c.bf16 %v3182_v53, %v3180_v23 }
0x10e3   :  { %v5463_v27 = vpop.eup %5462 }
0x10e4   :  { %v3186_v61 = vmul.f32 %v5463_v27, %v6748_v4  ;;  %4956 = vmatmul.mubr.msk.bf16.vlgmr.msra.gmra.mrb[92].mxu1 %vm570_vm2, %v3196_v10  ;;  %v5255_v10 = vld [vmem:[%s7158_s8 + $0x38] sm:$0xff]  }
0x10e5   :  { %4967 = vmatprep.mubr.msk.bf16.mxu1 %vm5523_vm1, %v5521_v2 }
0x10e6   :  { %v3197_v38 = vpack.c.bf16 %v3186_v61, %v3184_v32 }
0x10e7   :  { %v5465_v45 = vpop.eup %5464 }
0x10e8   :  { %4962 = vmatmul.mubr.msk.bf16.vlgmr.msra.gmra.mrb[68].mxu0 %vm570_vm2, %v3197_v38  ;;  %v3188_v4 = vmul.f32 %v5465_v45, %v6752_v54 }
0x10e9   :  { %4972 = vmatpush3.bf16.msra.mxu0 %v5252_v14 }
0x10ea   :  { %4973 = vmatprep.subr.bf16.mxu0 %v5253_v6 }
0x10ed   :  { %4974 = vmatpush3.bf16.msra.mxu0 %v5253_v6 }
0x10ee   :  { %4975 = vmatprep.subr.bf16.mxu0 %v5254_v49 }
0x10f1   :  { %4976 = vmatpush3.bf16.msra.mxu0 %v5254_v49 }
0x10f2   :  { %4977 = vmatprep.subr.bf16.mxu0 %v5255_v10 }
0x10f5   :  { %4978 = vmatpush3.bf16.msra.mxu0 %v5255_v10 }
0x110d   :  { %v3158_v24 = vpop.xlane.xlu1 %3157 }
0x110e   :  { %5466 = vrcp.f32 %v3158_v24 }
0x1111   :  { %v5141_v46 = vpop.permute.xlu1 %5140 }
0x1112   :  { %v5143_v43 = vunpack.i.h.bf16 %v5141_v46  ;;  %v5142_v60 = vunpack.i.l.bf16 %v5141_v46 }
0x1114   :  { %v2582_v59 = vpack.c.bf16 %v5143_v43, %v5142_v60 }
0x1116   :  { %4966 = vmatpush3.bf16.msra.mxu1 %v2582_v59 }
0x1118   :  { %v5467_v22 = vpop.eup %5466 }
0x1119   :  { %v3190_v12 = vmul.f32 %v5467_v22, %v6759_v34 }
0x111b   :  { %v3198_v62 = vpack.c.bf16 %v3190_v12, %v3188_v4 }
0x111d   :  { %4968 = vmatmul.mubr.msk.bf16.vlgmr.msra.gmra.mrb[96].mxu1 %vm570_vm2, %v3198_v62 }
0x111e   :  { %3883 = vmatprep.mubr.bf16.mxu1 %v5518_v7 }
0x1187   :  { %v6813_v2 = vpop.f32.mrb[56].mxu0 }
0x1188   :  { %v4927_v48 = vpop.f32.mrb[57].mxu0 }
0x1189   :  { %v3239_v37 = vpop.f32.mrb[58].mxu0 }
0x118a   :  { %v4928_v19 = vpop.f32.mrb[59].mxu0 }
0x11a5   :  { %v3280_v15 = vpop.f32.mrb[84].mxu1 }
0x11a6   :  { %v4933_v20 = vpop.f32.mrb[85].mxu1 }
0x11a7   :  { %v3283_v5 = vpop.f32.mrb[86].mxu1 }
0x11a8   :  { %v5144_v25 = vpack.i.bf16 %v3283_v5, %v3280_v15  ;;  %v4934_v0 = vpop.f32.mrb[87].mxu1 }
0x11aa   :  { %v3324_v44 = vpop.f32.mrb[60].mxu0  ;;  %5145 = vrot.lane.b32.xlu0 %v5144_v25, %s5525_s28 }
0x11ab   :  { %v4939_v54 = vpop.f32.mrb[61].mxu0 }
0x11ac   :  { %v3327_v34 = vpop.f32.mrb[62].mxu0 }
0x11ad   :  { %v5149_v58 = vpack.i.bf16 %v3327_v34, %v3324_v44  ;;  %v4940_v18 = vpop.f32.mrb[63].mxu0 }
0x11ae   :  { %v3368_v8 = vpop.f32.mrb[88].mxu1 }
0x11af   :  { %v4945_v29 = vpop.f32.mrb[89].mxu1  ;;  %5150 = vrot.lane.b32.xlu1 %v5149_v58, %s5526_s29 }
0x11b0   :  { %v3371_v39 = vpop.f32.mrb[90].mxu1 }
0x11b1   :  { %v5154_v36 = vpack.i.bf16 %v3371_v39, %v3368_v8  ;;  %v4946_v26 = vpop.f32.mrb[91].mxu1 }
0x11b2   :  { %v3412_v33 = vpop.f32.mrb[64].mxu0 }
0x11b3   :  { %5155 = vrot.lane.b32.xlu1 %v5154_v36, %s5527_s15  ;;  %v4951_v51 = vpop.f32.mrb[65].mxu0 }
0x11b4   :  { %v3415_v42 = vpop.f32.mrb[66].mxu0 }
0x11b5   :  { %v4952_v41 = vpop.f32.mrb[67].mxu0 }
0x11b7   :  { %v3456_v47 = vpop.f32.mrb[92].mxu1 }
0x11b8   :  { %v4957_v35 = vpop.f32.mrb[93].mxu1 }
0x11b9   :  { %v3459_v55 = vpop.f32.mrb[94].mxu1 }
0x11ba   :  { %v5159_v50 = vpack.i.bf16 %v3459_v55, %v3456_v47  ;;  %v4958_v16 = vpop.f32.mrb[95].mxu1 }
0x11bb   :  { %v3500_v23 = vpop.f32.mrb[68].mxu0 }
0x11bc   :  { %5160 = vrot.lane.b32.xlu0 %v5159_v50, %s5525_s28  ;;  %v4963_v3 = vpop.f32.mrb[69].mxu0 }
0x11bd   :  { %v3503_v53 = vpop.f32.mrb[70].mxu0 }
0x11be   :  { %v5164_v52 = vpack.i.bf16 %v3503_v53, %v3500_v23  ;;  %v4964_v32 = vpop.f32.mrb[71].mxu0 }
0x11c0   :  { %5165 = vrot.lane.b32.xlu0 %v5164_v52, %s5526_s29 }
0x11f0   :  { %v3544_v27 = vpop.f32.mrb[96].mxu1 }
0x11f1   :  { %v4969_v61 = vpop.f32.mrb[97].mxu1 }
0x11f2   :  { %v3547_v38 = vpop.f32.mrb[98].mxu1 }
0x11f3   :  { %v5169_v13 = vpack.i.bf16 %v3547_v38, %v3544_v27  ;;  %v4970_v24 = vpop.f32.mrb[99].mxu1 }
0x11f5   :  { %5170 = vrot.lane.b32.xlu1 %v5169_v13, %s5527_s15 }
0x121c   :  { %v5146_v46 = vpop.permute.xlu0 %5145 }
0x121d   :  { %v5148_v60 = vunpack.i.h.bf16 %v5146_v46  ;;  %v5147_v59 = vunpack.i.l.bf16 %v5146_v46 }
0x121f   :  { %v3576_v12 = vsel %vm570_vm2, %v3239_v37, %v5148_v60  ;;  %v3575_v62 = vsel %vm570_vm2, %v6813_v2, %v5147_v59 }
0x1221   :  { %v5151_v43 = vpop.permute.xlu1 %5150 }
0x1222   :  { %v5153_v45 = vunpack.i.h.bf16 %v5151_v43  ;;  %v5152_v22 = vunpack.i.l.bf16 %v5151_v43 }
0x1224   :  { %v3578_v15 = vsel %vm1562_vm3, %v3576_v12, %v5153_v45  ;;  %v3577_v20 = vsel %vm1562_vm3, %v3575_v62, %v5152_v22 }
0x1225   :  { %v5156_v4 = vpop.permute.xlu1 %5155 }
0x1226   :  { %v5158_v48 = vunpack.i.h.bf16 %v5156_v4  ;;  %v5157_v19 = vunpack.i.l.bf16 %v5156_v4 }
0x1228   :  { %v3579_v5 = vsel %vm1565_vm4, %v3577_v20, %v5157_v19  ;;  %v3580_v25 = vsel %vm1565_vm4, %v3578_v15, %v5158_v48 }
0x1229   :  { %v3611_v0 = vpack.c.bf16 %v3580_v25, %v3579_v5  ;;  %v5258_v25 = vld [vmem:[%s7159_s9 + $0x44] ss:$8 sps:$4 sm:$0xff]  }
0x122a   :  { %3851 = vmatprep.subr.bf16.mxu1 %v5258_v25  ;;  %v5282_v25 = vld [vmem:[%s7160_s10 + $0xf8] sm:$0xff]  }
0x122b   :  { %4979 = vmatprep.mubr.msk.bf16.mxu0 %vm280_vm0, %v3611_v0  ;;  %v5256_v0 = vld [vmem:[%s7159_s9 + $0x40] ss:$8 sps:$4 sm:$0xff]  }
0x122c   :  { %3852 = vmatpush1.bf16.msra.mxu1 %v5256_v0  ;;  %v5283_v0 = vld [vmem:[%s7160_s10 + $0xb8] sm:$0xff]  }
0x122e   :  { %v5161_v44 = vpop.permute.xlu0 %5160 }
0x122f   :  { %v5163_v34 = vunpack.i.h.bf16 %v5161_v44  ;;  %v5162_v37 = vunpack.i.l.bf16 %v5161_v44  ;;  %v5261_v44 = vld [vmem:[%s7159_s9 + $0x54] ss:$8 sps:$4 sm:$0xff]  }
0x1230   :  { %3853 = vmatprep.subr.bf16.mxu1 %v5261_v44  ;;  %v4540_v44 = vld [vmem:[%s7161_s6 + $0x2] sm:$0x3] }
0x1231   :  { %v3605_v8 = vsel %vm570_vm2, %v3412_v33, %v5162_v37  ;;  %v3606_v29 = vsel %vm570_vm2, %v3415_v42, %v5163_v34  ;;  %v6851_v33 = vld [vmem:[%s7155_s4 + $0x8] sm:$0x3f] }
0x1232   :  { %v5166_v54 = vpop.permute.xlu0 %5165  ;;  %v3708_v42 = vrot.slane %v6851_v33, %v1693_v57  ;;  %v5262_v34 = vld [vmem:[%s7159_s9 + $0x60] ss:$8 sps:$4 sm:$0xff]   ;;  %v5264_v37 = vld [vmem:[%s7159_s9 + $0x64] ss:$8 sps:$4 sm:$0xff]  }
0x1233   :  { %v5168_v58 = vunpack.i.h.bf16 %v5166_v54  ;;  %v5167_v18 = vunpack.i.l.bf16 %v5166_v54  ;;  %v5259_v54 = vld [vmem:[%s7159_s9 + $0x50] ss:$8 sps:$4 sm:$0xff]  }
0x1234   :  { %3854 = vmatpush1.bf16.msra.mxu1 %v5259_v54  ;;  %v3798_v54 = vrot.slane %v4540_v44, %v5726_v21 }
0x1235   :  { %v3608_v26 = vsel %vm1562_vm3, %v3606_v29, %v5168_v58  ;;  %v3607_v51 = vsel %vm1562_vm3, %v3605_v8, %v5167_v18  ;;  %v5267_v58 = vld [vmem:[%s7159_s9 + $0x74] ss:$8 sps:$4 sm:$0xff]   ;;  %3855 = vmatprep.subr.bf16.mxu1 %v5264_v37  ;;  %v5265_v18 = vld [vmem:[%s7159_s9 + $0x70] ss:$8 sps:$4 sm:$0xff]  }
0x1238   :  { %3856 = vmatpush1.bf16.msra.mxu1 %v5262_v34  ;;  %v6970_v34 = vrot.slane %v4540_v44, %v5733_v30 }
0x1239   :  { %3857 = vmatprep.subr.bf16.mxu1 %v5267_v58 }
0x123c   :  { %3858 = vmatpush1.bf16.msra.mxu1 %v5265_v18 }
0x1267   :  { %v5171_v2 = vpop.permute.xlu1 %5170 }
0x1268   :  { %v5173_v39 = vunpack.i.h.bf16 %v5171_v2  ;;  %v5172_v36 = vunpack.i.l.bf16 %v5171_v2 }
0x126a   :  { %v3609_v41 = vsel %vm1565_vm4, %v3607_v51, %v5172_v36  ;;  %v3610_v14 = vsel %vm1565_vm4, %v3608_v26, %v5173_v39 }
0x126b   :  { %v3612_v6 = vpack.c.bf16 %v3610_v14, %v3609_v41 }
0x126d   :  { %4980 = vmatmul.mubr.msk.bf16.vlgmr.msra.gmra.mrb[72].mxu0 %vm280_vm0, %v3612_v6 }
0x1340   :  { %v4981_v47 = vpop.f32.mrb[72].mxu0 }
0x1341   :  { %v3686_v35 = vpop.f32.mrb[73].mxu0  ;;  %v3703_v55 = vadd.f32 %v4981_v47, %v6421_v31 }
0x1342   :  { %v3701_v49 = vadd.f32 %v3686_v35, %v6411_v9  ;;  %v4982_v50 = vpop.f32.mrb[74].mxu0  ;;  %v3768_v35 = vrot.slane %v6851_v33, %v1753_v63 }
0x1343   :  { %v3689_v16 = vpop.f32.mrb[75].mxu0  ;;  %v6861_v53 = vadd.f32 %v3708_v42, %v3703_v55  ;;  %v3704_v52 = vadd.f32 %v4982_v50, %v6424_v40 }
0x1344   :  { %v6858_v23 = vadd.f32 %v3708_v42, %v3701_v49  ;;  %v3702_v3 = vadd.f32 %v3689_v16, %v6414_v56 }
0x1345   :  { %v6870_v9 = vadd.f32 %v3708_v42, %v3704_v52  ;;  %v3719_v10 = vsel %vm280_vm0, %v6861_v53, 0.0  ;;  %v3776_v52 = vrot.slane %v6851_v33, %v1761_v1  ;;  %v5268_v1 = vld [vmem:[%s7160_s10 + $0xc0] sm:$0xff]  }
0x1346   :  { %v6864_v32 = vadd.f32 %v3708_v42, %v3702_v3  ;;  %v3713_v57 = vsel %vm280_vm0, %v6858_v23, 0.0  ;;  %4739 = vmatprep.subr.bf16.mxu0 %v5268_v1 }
0x1347   :  { %3714 = vadd.xlane.f32.xlu0 %v3713_v57  ;;  %v3722_v56 = vsel %vm280_vm0, %v6870_v9, 0.0 }
0x1348   :  { %v3716_v31 = vsel %vm280_vm0, %v6864_v32, 0.0 }
0x1349   :  { %3717 = vadd.xlane.f32.xlu1 %v3716_v31 }
0x134b   :  { %3720 = vadd.xlane.f32.xlu0 %v3719_v10 }
0x134f   :  { %3723 = vadd.xlane.f32.xlu0 %v3722_v56 }
0x13d4   :  { %v3715_v40 = vpop.xlane.xlu0 %3714 }
0x13d5   :  { %v3725_v27 = vmul.f32 0.015625, %v3715_v40 }
0x13d6   :  { %v3718_v61 = vpop.xlane.xlu1 %3717 }
0x13d7   :  { %v3729_v38 = vsub.f32 %v6858_v23, %v3725_v27  ;;  %v3726_v13 = vmul.f32 0.015625, %v3718_v61 }
0x13d8   :  { %v3721_v24 = vpop.xlane.xlu0 %3720 }
0x13d9   :  { %v3730_v46 = vsub.f32 %v6864_v32, %v3726_v13  ;;  %v3727_v43 = vmul.f32 0.015625, %v3721_v24  ;;  %v3733_v60 = vmul.f32 %v3729_v38, %v3729_v38 }
0x13db   :  { %v3731_v59 = vsub.f32 %v6861_v53, %v3727_v43  ;;  %v3737_v45 = vsel %vm280_vm0, %v3733_v60, 0.0  ;;  %v3734_v22 = vmul.f32 %v3730_v46, %v3730_v46  ;;  %v5269_v60 = vld [vmem:[%s7160_s10 + $0x80] sm:$0xff]  }
0x13dc   :  { %3738 = vadd.xlane.f32.xlu0 %v3737_v45  ;;  %v3724_v4 = vpop.xlane.xlu0 %3723  ;;  %4740 = vmatpush3.bf16.msra.mxu0 %v5269_v60  ;;  %v5272_v45 = vld [vmem:[%s7160_s10 + $0xd0] sm:$0xff]  }
0x13dd   :  { %v3728_v12 = vmul.f32 0.015625, %v3724_v4  ;;  %v3740_v62 = vsel %vm280_vm0, %v3734_v22, 0.0  ;;  %v3735_v48 = vmul.f32 %v3731_v59, %v3731_v59  ;;  %v5273_v22 = vld [vmem:[%s7160_s10 + $0x90] sm:$0xff]   ;;  %v5274_v4 = vld [vmem:[%s7160_s10 + $0xd8] sm:$0xff]  }
0x13de   :  { %3741 = vadd.xlane.f32.xlu1 %v3740_v62  ;;  %v5276_v62 = vld [vmem:[%s7160_s10 + $0xe0] sm:$0xff]  }
0x13df   :  { %v3732_v19 = vsub.f32 %v6870_v9, %v3728_v12  ;;  %v3743_v15 = vsel %vm280_vm0, %v3735_v48, 0.0  ;;  %v5275_v12 = vld [vmem:[%s7160_s10 + $0x98] sm:$0xff]   ;;  %v5277_v48 = vld [vmem:[%s7160_s10 + $0xa0] sm:$0xff]  }
0x13e0   :  { %3744 = vadd.xlane.f32.xlu0 %v3743_v15  ;;  %v5279_v15 = vld [vmem:[%s7160_s10 + $0xa8] sm:$0xff]  }
0x13e1   :  { %v3736_v20 = vmul.f32 %v3732_v19, %v3732_v19 }
0x13e3   :  { %v3746_v5 = vsel %vm280_vm0, %v3736_v20, 0.0  ;;  %v5280_v20 = vld [vmem:[%s7160_s10 + $0xf0] sm:$0xff]  }
0x13e4   :  { %3747 = vadd.xlane.f32.xlu1 %v3746_v5  ;;  %v5281_v5 = vld [vmem:[%s7160_s10 + $0xb0] sm:$0xff]  }
0x1469   :  { %v3739_v2 = vpop.xlane.xlu0 %3738 }
0x146a   :  { %v3749_v8 = vmul.f32 0.015625, %v3739_v2 }
0x146b   :  { %v3742_v29 = vpop.xlane.xlu1 %3741 }
0x146c   :  { %v3753_v39 = vadd.f32 1e-05, %v3749_v8  ;;  %v3750_v36 = vmul.f32 0.015625, %v3742_v29 }
0x146d   :  { %v3745_v26 = vpop.xlane.xlu0 %3744 }
0x146e   :  { %5468 = vrsqrt.f32 %v3753_v39  ;;  %v3754_v51 = vadd.f32 1e-05, %v3750_v36  ;;  %v3751_v41 = vmul.f32 0.015625, %v3745_v26 }
0x1470   :  { %5470 = vrsqrt.f32 %v3754_v51  ;;  %v3755_v14 = vadd.f32 1e-05, %v3751_v41 }
0x1471   :  { %v3748_v6 = vpop.xlane.xlu1 %3747 }
0x1472   :  { %5472 = vrsqrt.f32 %v3755_v14  ;;  %v3752_v47 = vmul.f32 0.015625, %v3748_v6 }
0x1474   :  { %v3756_v42 = vadd.f32 1e-05, %v3752_v47 }
0x1476   :  { %5474 = vrsqrt.f32 %v3756_v42 }
0x1478   :  { %v5469_v55 = vpop.eup %5468 }
0x1479   :  { %v3761_v49 = vmul.f32 %v5469_v55, %v3729_v38 }
0x147a   :  { %v5471_v50 = vpop.eup %5470 }
0x147b   :  { %v3769_v16 = vmul.f32 %v3768_v35, %v3761_v49  ;;  %v3762_v3 = vmul.f32 %v5471_v50, %v3730_v46 }
0x147c   :  { %v5473_v57 = vpop.eup %5472 }
0x147d   :  { %v3770_v31 = vmul.f32 %v3768_v35, %v3762_v3  ;;  %v3763_v10 = vmul.f32 %v5473_v57, %v3731_v59  ;;  %v3777_v56 = vadd.f32 %v3776_v52, %v3769_v16  ;;  %v5270_v59 = vld [vmem:[%s7160_s10 + $0xc8] sm:$0xff]  }
0x147e   :  { %4741 = vmatprep.subr.bf16.mxu0 %v5270_v59 }
0x147f   :  { %v3778_v40 = vadd.f32 %v3776_v52, %v3770_v31  ;;  %v3771_v63 = vmul.f32 %v3768_v35, %v3763_v10 }
0x1480   :  { %v5475_v27 = vpop.eup %5474 }
0x1481   :  { %v3764_v61 = vmul.f32 %v5475_v27, %v3732_v19  ;;  %v3781_v13 = vpack.c.bf16 %v3778_v40, %v3777_v56  ;;  %v3779_v46 = vadd.f32 %v3776_v52, %v3771_v63  ;;  %v5278_v19 = vld [vmem:[%s7160_s10 + $0xe8] sm:$0xff]  }
0x1483   :  { %4549 = vmatmul.mubr.msk.bf16.vlgmr.msra.gmra.mrb[100].mxu1 %vm280_vm0, %v3781_v13  ;;  %v3772_v24 = vmul.f32 %v3768_v35, %v3764_v61 }
0x1484   :  { %3893 = vmatprep.mubr.bf16.mxu1 %v5518_v7  ;;  %v5271_v7 = vld [vmem:[%s7160_s10 + $0x88] sm:$0xff]  }
0x1485   :  { %v3780_v38 = vadd.f32 %v3776_v52, %v3772_v24  ;;  %4742 = vmatpush3.bf16.msra.mxu0 %v5271_v7 }
0x1486   :  { %4743 = vmatprep.subr.bf16.mxu0 %v5272_v45 }
0x1487   :  { %v3782_v43 = vpack.c.bf16 %v3780_v38, %v3779_v46 }
0x1489   :  { %4744 = vmatpush3.bf16.msra.mxu0 %v5273_v22 }
0x148a   :  { %4745 = vmatprep.subr.bf16.mxu0 %v5274_v4 }
0x148b   :  { %4550 = vmatmul.mubr.msk.bf16.gmra.mrb[104].mxu1 %vm280_vm0, %v3782_v43 }
0x148d   :  { %4746 = vmatpush3.bf16.msra.mxu0 %v5275_v12 }
0x148e   :  { %4747 = vmatprep.subr.bf16.mxu0 %v5276_v62 }
0x1491   :  { %4748 = vmatpush3.bf16.msra.mxu0 %v5277_v48 }
0x1492   :  { %4749 = vmatprep.subr.bf16.mxu0 %v5278_v19 }
0x1495   :  { %4750 = vmatpush3.bf16.msra.mxu0 %v5279_v15 }
0x1496   :  { %4751 = vmatprep.subr.bf16.mxu0 %v5280_v20 }
0x1499   :  { %4752 = vmatpush3.bf16.msra.mxu0 %v5281_v5 }
0x149a   :  { %4753 = vmatprep.subr.bf16.mxu0 %v5282_v25 }
0x149d   :  { %4754 = vmatpush3.bf16.msra.mxu0 %v5283_v0 }
0x1556   :  { %v3885_v37 = vpop.f32.mrb[100].mxu1 }
0x1557   :  { %v3886_v58 = vadd.f32 %v3885_v37, %v3798_v54  ;;  %v3887_v18 = vpop.f32.mrb[101].mxu1 }
0x1558   :  { %v3888_v2 = vadd.f32 %v3887_v18, %v6970_v34  ;;  %v3889_v8 = vpop.f32.mrb[102].mxu1 }
0x1559   :  { %v3912_v29 = vmul.f32 0.70710677, %v3886_v58  ;;  %v3890_v39 = vadd.f32 %v3889_v8, %v3798_v54  ;;  %v3891_v36 = vpop.f32.mrb[103].mxu1  ;;  %v7003_v45 = vmul.f32 0.5, %v3886_v58 }
0x155a   :  { %v6973_v26 = vmul.f32 0.70710677, %v3888_v2  ;;  %v6978_v14 = vadd.f32 %v3891_v36, %v6970_v34  ;;  %v7005_v22 = vmul.f32 0.5, %v3888_v2 }
0x155b   :  { %v3936_v51 = vand.u32 2147483647, %v3912_v29  ;;  %v6975_v41 = vmul.f32 0.70710677, %v3890_v39  ;;  %vm3920_vm13 = vcmp.ge.f32.partialorder %v3912_v29, 0.0  ;;  %v7011_v48 = vmul.f32 0.5, %v3890_v39 }
0x155c   :  { %v3937_v6 = vand.u32 2147483647, %v6973_v26  ;;  %v6983_v49 = vmul.f32 0.70710677, %v6978_v14  ;;  %v7009_v12 = vsel %vm3920_vm13, 1.0, %v5528_v28  ;;  %vm3921_vm14 = vcmp.ge.f32.partialorder %v6973_v26, 0.0 }
0x155d   :  { %v3944_v47 = vmul.f32 0.3275911, %v3936_v51  ;;  %v3938_v35 = vand.u32 2147483647, %v6975_v41  ;;  %v4048_v27 = vsub.f32 0.0, %v3936_v51  ;;  %vm3922_vm15 = vcmp.ge.f32.partialorder %v6975_v41, 0.0 }
0x155e   :  { %v3945_v42 = vmul.f32 0.3275911, %v3937_v6  ;;  %v3895_v50 = vpop.f32.mrb[104].mxu1  ;;  %v3939_v57 = vand.u32 2147483647, %v6983_v49  ;;  %v4049_v38 = vsub.f32 0.0, %v3937_v6 }
0x155f   :  { %v3952_v55 = vadd.f32 1.0, %v3944_v47  ;;  %v3946_v3 = vmul.f32 0.3275911, %v3938_v35  ;;  %v3897_v52 = vpop.f32.mrb[105].mxu1  ;;  %v6986_v61 = vadd.f32 %v3895_v50, %v3798_v54  ;;  %v4056_v1 = vmul.f32 %v4048_v27, %v3936_v51 }
0x1560   :  { %v3953_v16 = vadd.f32 1.0, %v3945_v42  ;;  %v3899_v31 = vpop.f32.mrb[106].mxu1  ;;  %v3947_v40 = vmul.f32 0.3275911, %v3939_v57  ;;  %v6989_v13 = vadd.f32 %v3897_v52, %v6970_v34  ;;  %v4050_v60 = vsub.f32 0.0, %v3938_v35 }
0x1561   :  { %5476 = vrcp.f32 %v3952_v55  ;;  %v3954_v10 = vadd.f32 1.0, %v3946_v3  ;;  %v3901_v56 = vpop.f32.mrb[107].mxu1  ;;  %v6991_v24 = vadd.f32 %v3899_v31, %v3798_v54  ;;  %v6994_v46 = vmul.f32 0.70710677, %v6986_v61 }
0x1562   :  { %5478 = vrcp.f32 %v3953_v16  ;;  %v3955_v63 = vadd.f32 1.0, %v3947_v40  ;;  %v6997_v43 = vmul.f32 0.70710677, %v6989_v13  ;;  %v4057_v62 = vmul.f32 %v4049_v38, %v3937_v6 }
0x1563   :  { %5480 = vrcp.f32 %v3954_v10  ;;  %v3940_v59 = vand.u32 2147483647, %v6994_v46  ;;  %v7001_v7 = vmul.f32 0.70710677, %v6991_v24  ;;  %v4051_v20 = vsub.f32 0.0, %v3939_v57 }
0x1564   :  { %5482 = vrcp.f32 %v3955_v63  ;;  %v3941_v4 = vand.u32 2147483647, %v6997_v43  ;;  %v4064_v54 = vmul.f32 1.442695, %v4056_v1  ;;  %v4058_v37 = vmul.f32 %v4050_v60, %v3938_v35 }
0x1565   :  { %v3948_v19 = vmul.f32 0.3275911, %v3940_v59  ;;  %v7017_v25 = vand.u32 2147483647, %v7001_v7  ;;  %v7025_v29 = vadd.f32 %v3901_v56, %v6970_v34  ;;  %v4066_v36 = vmul.f32 1.442695, %v4057_v62 }
0x1566   :  { %v3949_v5 = vmul.f32 0.3275911, %v3941_v4  ;;  %v4059_v47 = vmul.f32 %v4051_v20, %v3939_v57  ;;  %v4052_v50 = vsub.f32 0.0, %v3940_v59  ;;  %v4068_v3 = vmul.f32 1.442695, %v4058_v37 }
0x1567   :  { %v3956_v58 = vadd.f32 1.0, %v3948_v19  ;;  %v3950_v8 = vmul.f32 0.3275911, %v7017_v25  ;;  %v4053_v52 = vsub.f32 0.0, %v3941_v4  ;;  %v7036_v31 = vmul.f32 0.70710677, %v7025_v29 }
0x1568   :  { %v3957_v2 = vadd.f32 1.0, %v3949_v5  ;;  %v7042_v40 = vsel %vm3921_vm14, 1.0, %v5528_v28  ;;  %v4070_v63 = vmul.f32 1.442695, %v4059_v47  ;;  %v4060_v62 = vmul.f32 %v4052_v50, %v3940_v59 }
0x1569   :  { %5484 = vrcp.f32 %v3956_v58  ;;  %v3958_v42 = vadd.f32 1.0, %v3950_v8  ;;  %v7050_v20 = vsel %vm3922_vm15, 1.0, %v5528_v28  ;;  %v4061_v5 = vmul.f32 %v4053_v52, %v3941_v4 }
0x156a   :  { %5486 = vrcp.f32 %v3957_v2  ;;  %v7053_v26 = vand.u32 2147483647, %v7036_v31  ;;  %v4054_v59 = vsub.f32 0.0, %v7017_v25  ;;  %vm3923_vm1 = vcmp.ge.f32.partialorder %v6983_v49, 0.0 }
0x156b   :  { %v7013_v15 = vpop.eup %5476  ;;  %5488 = vpow2.f32 %v4064_v54  ;;  %vm3924_vm2 = vcmp.ge.f32.partialorder %v6994_v46, 0.0  ;;  %vm3926_vm3 = vcmp.ge.f32.partialorder %v7001_v7, 0.0  ;;  %vm3925_vm4 = vcmp.ge.f32.partialorder %v6997_v43, 0.0 }
0x156c   :  { %v7019_v0 = vpop.eup %5478  ;;  %v3976_v44 = vmul.f32 1.0614054, %v7013_v15  ;;  %5490 = vrcp.f32 %v3958_v42  ;;  %v4074_v42 = vmul.f32 1.442695, %v4061_v5  ;;  %vm3927_vm5 = vcmp.ge.f32.partialorder %v7036_v31, 0.0 }
0x156d   :  { %v3977_v18 = vmul.f32 1.0614054, %v7019_v0  ;;  %v7028_v51 = vpop.eup %5480  ;;  %5492 = vpow2.f32 %v4066_v36  ;;  %v3909_v43 = vmul.f32 0.5, %v6989_v13  ;;  %v4160_v31 = vrot.slane %v6851_v33, %v2143_v11 }
0x156e   :  { %v3984_v39 = vadd.f32 -1.4531521, %v3976_v44  ;;  %v3978_v55 = vmul.f32 1.0614054, %v7028_v51  ;;  %v7032_v16 = vpop.eup %5482  ;;  %5494 = vpow2.f32 %v4068_v3 }
0x156f   :  { %v3985_v6 = vadd.f32 -1.4531521, %v3977_v18  ;;  %v3979_v57 = vmul.f32 1.0614054, %v7032_v16  ;;  %5496 = vpow2.f32 %v4070_v63  ;;  %v3951_v18 = vmul.f32 0.3275911, %v7053_v26 }
0x1570   :  { %v3992_v35 = vmul.f32 %v7013_v15, %v3984_v39  ;;  %v3986_v56 = vadd.f32 -1.4531521, %v3978_v55  ;;  %v4072_v39 = vmul.f32 1.442695, %v4060_v62 }
0x1571   :  { %v3993_v34 = vmul.f32 %v7019_v0, %v3985_v6  ;;  %v3987_v60 = vadd.f32 -1.4531521, %v3979_v57  ;;  %v4062_v57 = vmul.f32 %v4054_v59, %v7017_v25 }
0x1572   :  { %v4000_v10 = vadd.f32 1.4214138, %v3992_v35  ;;  %v3994_v1 = vmul.f32 %v7028_v51, %v3986_v56  ;;  %v3959_v35 = vadd.f32 1.0, %v3951_v18 }
0x1573   :  { %v4001_v27 = vadd.f32 1.4214138, %v3993_v34  ;;  %v3995_v37 = vmul.f32 %v7032_v16, %v3987_v60  ;;  %v7058_v2 = vpop.eup %5484 }
0x1574   :  { %v4008_v38 = vmul.f32 %v7013_v15, %v4000_v10  ;;  %v4002_v54 = vadd.f32 1.4214138, %v3994_v1  ;;  %v7063_v36 = vpop.eup %5486  ;;  %v3980_v47 = vmul.f32 1.0614054, %v7058_v2  ;;  %5498 = vrcp.f32 %v3959_v35 }
0x1575   :  { %v4009_v19 = vmul.f32 %v7019_v0, %v4001_v27  ;;  %v4003_v8 = vadd.f32 1.4214138, %v3995_v37  ;;  %v5489_v55 = vpop.eup %5488  ;;  %v3981_v52 = vmul.f32 1.0614054, %v7063_v36  ;;  %5500 = vpow2.f32 %v4072_v39 }
0x1576   :  { %v4016_v44 = vadd.f32 -0.28449672, %v4008_v38  ;;  %v4010_v4 = vmul.f32 %v7028_v51, %v4002_v54  ;;  %v3988_v56 = vadd.f32 -1.4531521, %v3980_v47  ;;  %v7070_v27 = vpop.eup %5490 }
0x1577   :  { %v4017_v58 = vadd.f32 -0.28449672, %v4009_v19  ;;  %v4011_v3 = vmul.f32 %v7032_v16, %v4003_v8  ;;  %v3989_v60 = vadd.f32 -1.4531521, %v3981_v52  ;;  %v5493_v62 = vpop.eup %5492 }
0x1578   :  { %v4024_v41 = vmul.f32 %v7013_v15, %v4016_v44  ;;  %v4018_v34 = vadd.f32 -0.28449672, %v4010_v4  ;;  %v3996_v5 = vmul.f32 %v7058_v2, %v3988_v56  ;;  %v3982_v44 = vmul.f32 1.0614054, %v7070_v27  ;;  %v5495_v4 = vpop.eup %5494 }
0x1579   :  { %v4025_v6 = vmul.f32 %v7019_v0, %v4017_v58  ;;  %v4019_v1 = vadd.f32 -0.28449672, %v4011_v3  ;;  %v3997_v58 = vmul.f32 %v7063_v36, %v3989_v60  ;;  %v5497_v35 = vpop.eup %5496 }
0x157a   :  { %v4032_v50 = vadd.f32 0.2548296, %v4024_v41  ;;  %v4026_v38 = vmul.f32 %v7028_v51, %v4018_v34  ;;  %v3990_v18 = vadd.f32 -1.4531521, %v3982_v44  ;;  %v4076_v41 = vmul.f32 1.442695, %v4062_v57 }
0x157b   :  { %v4033_v10 = vadd.f32 0.2548296, %v4025_v6  ;;  %v4027_v25 = vmul.f32 %v7032_v16, %v4019_v1  ;;  %v4005_v47 = vadd.f32 1.4214138, %v3997_v58  ;;  %v4055_v34 = vsub.f32 0.0, %v7053_v26 }
0x157c   :  { %v4040_v63 = vmul.f32 %v7013_v15, %v4032_v50  ;;  %v4034_v37 = vadd.f32 0.2548296, %v4026_v38  ;;  %v4004_v15 = vadd.f32 1.4214138, %v3996_v5  ;;  %5502 = vpow2.f32 %v4076_v41 }
0x157d   :  { %v4041_v19 = vmul.f32 %v7019_v0, %v4033_v10  ;;  %v4035_v0 = vadd.f32 0.2548296, %v4027_v25  ;;  %v4013_v56 = vmul.f32 %v7063_v36, %v4005_v47  ;;  %5504 = vpow2.f32 %v4074_v42 }
0x157e   :  { %v4080_v54 = vmul.f32 %v5489_v55, %v4040_v63  ;;  %v4042_v6 = vmul.f32 %v7028_v51, %v4034_v37  ;;  %v4012_v50 = vmul.f32 %v7058_v2, %v4004_v15  ;;  %v3998_v55 = vmul.f32 %v7070_v27, %v3990_v18 }
0x157f   :  { %v4081_v59 = vmul.f32 %v5493_v62, %v4041_v19  ;;  %v4043_v10 = vmul.f32 %v7032_v16, %v4035_v0  ;;  %v3931_v51 = vsel %vm3923_vm1, 1.0, %v5528_v28  ;;  %v4021_v62 = vadd.f32 -0.28449672, %v4013_v56  ;;  %v5499_v19 = vpop.eup %5498 }
0x1580   :  { %v4088_v8 = vsub.f32 1.0, %v4080_v54  ;;  %v4082_v52 = vmul.f32 %v5495_v4, %v4042_v6  ;;  %v4020_v57 = vadd.f32 -0.28449672, %v4012_v50  ;;  %v4006_v63 = vadd.f32 1.4214138, %v3998_v55  ;;  %v5501_v25 = vpop.eup %5500 }
0x1581   :  { %v4089_v39 = vsub.f32 1.0, %v4081_v59  ;;  %v4083_v60 = vmul.f32 %v5497_v35, %v4043_v10  ;;  %v4063_v5 = vmul.f32 %v4055_v34, %v7053_v26  ;;  %v4029_v37 = vmul.f32 %v7063_v36, %v4021_v62 }
0x1582   :  { %v4096_v3 = vmul.f32 %v4088_v8, %v7009_v12  ;;  %v4090_v1 = vsub.f32 1.0, %v4082_v52  ;;  %v4028_v12 = vmul.f32 %v7058_v2, %v4020_v57  ;;  %v4014_v16 = vmul.f32 %v7070_v27, %v4006_v63 }
0x1583   :  { %v4097_v38 = vmul.f32 %v4089_v39, %v7042_v40  ;;  %v4091_v54 = vsub.f32 1.0, %v4083_v60  ;;  %v3983_v59 = vmul.f32 1.0614054, %v5499_v19  ;;  %v3907_v41 = vmul.f32 0.5, %v6978_v14 }
0x1584   :  { %v4104_v44 = vadd.f32 1.0, %v4096_v3  ;;  %v4098_v49 = vmul.f32 %v4090_v1, %v7050_v20  ;;  %v4036_v58 = vadd.f32 0.2548296, %v4028_v12  ;;  %v4022_v40 = vadd.f32 -0.28449672, %v4014_v16 }
0x1585   :  { %v4105_v15 = vadd.f32 1.0, %v4097_v38  ;;  %v4099_v4 = vmul.f32 %v4091_v54, %v3931_v51  ;;  %v4037_v8 = vadd.f32 0.2548296, %v4029_v37  ;;  %v3991_v6 = vadd.f32 -1.4531521, %v3983_v59 }
0x1586   :  { %v4106_v18 = vadd.f32 1.0, %v4098_v49  ;;  %v4044_v42 = vmul.f32 %v7058_v2, %v4036_v58  ;;  %v4030_v26 = vmul.f32 %v7070_v27, %v4022_v40  ;;  %v4112_v20 = vmul.f32 %v4104_v44, %v7003_v45  ;;  %v5503_v2 = vpop.eup %5502 }
0x1587   :  { %v4107_v47 = vadd.f32 1.0, %v4099_v4  ;;  %v4078_v35 = vmul.f32 1.442695, %v4063_v5  ;;  %v3999_v55 = vmul.f32 %v5499_v19, %v3991_v6  ;;  %v4113_v14 = vmul.f32 %v4105_v15, %v7005_v22  ;;  %v5505_v57 = vpop.eup %5504 }
0x1588   :  { %v4114_v0 = vmul.f32 %v4106_v18, %v7011_v48  ;;  %v4084_v39 = vmul.f32 %v5501_v25, %v4044_v42  ;;  %v4038_v50 = vadd.f32 0.2548296, %v4030_v26  ;;  %v4045_v10 = vmul.f32 %v7063_v36, %v4037_v8 }
0x1589   :  { %v4115_v3 = vmul.f32 %v4107_v47, %v3907_v41  ;;  %v4007_v45 = vadd.f32 1.4214138, %v3999_v55  ;;  %v3932_v48 = vsel %vm3924_vm2, 1.0, %v5528_v28  ;;  %5506 = vpow2.f32 %v4078_v35 }
0x158a   :  { %v4120_v34 = vpack.c.bf16 %v4114_v0, %v4112_v20  ;;  %v4092_v52 = vsub.f32 1.0, %v4084_v39  ;;  %v4046_v56 = vmul.f32 %v7070_v27, %v4038_v50  ;;  %v4085_v22 = vmul.f32 %v5505_v57, %v4045_v10 }
0x158b   :  { %v4121_v51 = vpack.c.bf16 %v4115_v3, %v4113_v14  ;;  %v4015_v38 = vmul.f32 %v5499_v19, %v4007_v45  ;;  %v3934_v36 = vsel %vm3926_vm3, 1.0, %v5528_v28  ;;  %v3908_v16 = vmul.f32 0.5, %v6986_v61 }
0x158c   :  { %v4100_v46 = vmul.f32 %v4092_v52, %v3932_v48  ;;  %v4086_v63 = vmul.f32 %v5503_v2, %v4046_v56  ;;  %v3910_v5 = vmul.f32 0.5, %v6991_v24  ;;  %v4093_v44 = vsub.f32 1.0, %v4085_v22 }
0x158d   :  { %4289 = vmatprep.mubr.bf16.mxu0 %v4121_v51  ;;  %v4023_v60 = vadd.f32 -0.28449672, %v4015_v38  ;;  %v3933_v40 = vsel %vm3925_vm4, 1.0, %v5528_v28  ;;  %v3935_v61 = vsel %vm3927_vm5, 1.0, %v5528_v28  ;;  %v3911_v42 = vmul.f32 0.5, %v7025_v29 }
0x158e   :  { %v4094_v1 = vsub.f32 1.0, %v4086_v63  ;;  %4290 = vmatmul.mubr.bf16.vlgmr.msra.gmra.mrb[76].mxu0 %v4120_v34  ;;  %v4108_v62 = vadd.f32 1.0, %v4100_v46  ;;  %v4101_v59 = vmul.f32 %v4093_v44, %v3933_v40 }
0x158f   :  { %v4031_v12 = vmul.f32 %v5499_v19, %v4023_v60 }
0x1590   :  { %v4102_v27 = vmul.f32 %v4094_v1, %v3934_v36  ;;  %v4116_v54 = vmul.f32 %v4108_v62, %v3908_v16  ;;  %v4109_v24 = vadd.f32 1.0, %v4101_v59 }
0x1591   :  { %v4039_v49 = vadd.f32 0.2548296, %v4031_v12 }
0x1592   :  { %v4110_v7 = vadd.f32 1.0, %v4102_v27  ;;  %v4117_v26 = vmul.f32 %v4109_v24, %v3909_v43 }
0x1593   :  { %v4047_v25 = vmul.f32 %v5499_v19, %v4039_v49  ;;  %v5507_v58 = vpop.eup %5506 }
0x1594   :  { %v4118_v37 = vmul.f32 %v4110_v7, %v3910_v5 }
0x1595   :  { %v4087_v15 = vmul.f32 %v5507_v58, %v4047_v25 }
0x1596   :  { %v4122_v18 = vpack.c.bf16 %v4118_v37, %v4116_v54 }
0x1597   :  { %v4095_v41 = vsub.f32 1.0, %v4087_v15 }
0x1599   :  { %v4103_v4 = vmul.f32 %v4095_v41, %v3935_v61 }
0x159b   :  { %v4111_v8 = vadd.f32 1.0, %v4103_v4 }
0x159d   :  { %v4119_v19 = vmul.f32 %v4111_v8, %v3911_v42 }
0x159f   :  { %v4123_v6 = vpack.c.bf16 %v4119_v19, %v4117_v26 }
0x15a1   :  { %4297 = vmatprep.mubr.bf16.mxu0 %v4123_v6 }
0x15a2   :  { %4298 = vmatmul.mubr.bf16.gmra.mrb[80].mxu0 %v4122_v18  ;;  %v4310_v18 = vld [vmem:[%s7162_s3] sm:$0x3] }
0x15a3   :  { %v4366_v41 = vrot.slane %v4310_v18, %v5726_v21  ;;  %v4374_v24 = vrot.slane %v4310_v18, %v5733_v30 }
0x1661   :  { %v4755_v20 = vpop.f32.mrb[76].mxu0 }
0x1662   :  { %v4756_v0 = vpop.f32.mrb[77].mxu0 }
0x1663   :  { %v4757_v47 = vadd.f32 %v4756_v0, %v4755_v20  ;;  %v4758_v28 = vpop.f32.mrb[78].mxu0 }
0x1664   :  { %v4759_v35 = vpop.f32.mrb[79].mxu0 }
0x1665   :  { %v4292_v39 = vadd.f32 %v4757_v47, %v4160_v31  ;;  %v4760_v50 = vadd.f32 %v4759_v35, %v4758_v28 }
0x1667   :  { %v4295_v13 = vadd.f32 %v4760_v50, %v4160_v31  ;;  %v4306_v29 = vadd.f32 %v4292_v39, %v6858_v23 }
0x1669   :  { %v4311_v55 = vsel %vm280_vm0, %v4306_v29, 0.0  ;;  %v4307_v14 = vadd.f32 %v4295_v13, %v6864_v32 }
0x166a   :  { %4312 = vadd.xlane.f32.xlu0 %v4311_v55 }
0x166b   :  { %v4314_v34 = vsel %vm280_vm0, %v4307_v14, 0.0 }
0x166c   :  { %4315 = vadd.xlane.f32.xlu1 %v4314_v34 }
0x1675   :  { %v4761_v17 = vpop.f32.mrb[80].mxu0 }
0x1676   :  { %v4762_v3 = vpop.f32.mrb[81].mxu0 }
0x1677   :  { %v4763_v11 = vadd.f32 %v4762_v3, %v4761_v17  ;;  %v4764_v33 = vpop.f32.mrb[82].mxu0 }
0x1678   :  { %v4765_v2 = vpop.f32.mrb[83].mxu0 }
0x1679   :  { %v4300_v52 = vadd.f32 %v4763_v11, %v4160_v31  ;;  %v4766_v10 = vadd.f32 %v4765_v2, %v4764_v33 }
0x167b   :  { %v4303_v56 = vadd.f32 %v4766_v10, %v4160_v31  ;;  %v4308_v45 = vadd.f32 %v4300_v52, %v6861_v53 }
0x167d   :  { %v4317_v23 = vsel %vm280_vm0, %v4308_v45, 0.0  ;;  %v4309_v48 = vadd.f32 %v4303_v56, %v6870_v9 }
0x167e   :  { %4318 = vadd.xlane.f32.xlu0 %v4317_v23 }
0x167f   :  { %v4320_v32 = vsel %vm280_vm0, %v4309_v48, 0.0 }
0x1680   :  { %4321 = vadd.xlane.f32.xlu1 %v4320_v32 }
0x16f7   :  { %v4313_v51 = vpop.xlane.xlu0 %4312 }
0x16f8   :  { %v4323_v57 = vmul.f32 0.015625, %v4313_v51 }
0x16f9   :  { %v4316_v46 = vpop.xlane.xlu1 %4315 }
0x16fa   :  { %v4327_v63 = vsub.f32 %v4306_v29, %v4323_v57  ;;  %v4324_v38 = vmul.f32 0.015625, %v4316_v46 }
0x16fc   :  { %v4328_v22 = vsub.f32 %v4307_v14, %v4324_v38  ;;  %v4331_v1 = vmul.f32 %v4327_v63, %v4327_v63 }
0x16fe   :  { %v4335_v60 = vsel %vm280_vm0, %v4331_v1, 0.0  ;;  %v4332_v36 = vmul.f32 %v4328_v22, %v4328_v22 }
0x16ff   :  { %4336 = vadd.xlane.f32.xlu0 %v4335_v60 }
0x1700   :  { %v4338_v53 = vsel %vm280_vm0, %v4332_v36, 0.0 }
0x1701   :  { %4339 = vadd.xlane.f32.xlu1 %v4338_v53 }
0x170b   :  { %v4319_v62 = vpop.xlane.xlu0 %4318 }
0x170c   :  { %v4325_v9 = vmul.f32 0.015625, %v4319_v62 }
0x170d   :  { %v4322_v27 = vpop.xlane.xlu1 %4321 }
0x170e   :  { %v4329_v12 = vsub.f32 %v4308_v45, %v4325_v9  ;;  %v4326_v16 = vmul.f32 0.015625, %v4322_v27 }
0x1710   :  { %v4330_v5 = vsub.f32 %v4309_v48, %v4326_v16  ;;  %v4333_v44 = vmul.f32 %v4329_v12, %v4329_v12 }
0x1712   :  { %v4341_v7 = vsel %vm280_vm0, %v4333_v44, 0.0  ;;  %v4334_v49 = vmul.f32 %v4330_v5, %v4330_v5 }
0x1713   :  { %4342 = vadd.xlane.f32.xlu0 %v4341_v7 }
0x1714   :  { %v4344_v54 = vsel %vm280_vm0, %v4334_v49, 0.0  ;;  %vm4395_vm0 = vcmask 519168  }
0x1715   :  { %4345 = vadd.xlane.f32.xlu1 %v4344_v54 }
0x178c   :  { %v4337_v37 = vpop.xlane.xlu0 %4336 }
0x178d   :  { %v4347_v25 = vmul.f32 0.015625, %v4337_v37 }
0x178e   :  { %v4340_v58 = vpop.xlane.xlu1 %4339 }
0x178f   :  { %v4351_v40 = vadd.f32 1e-05, %v4347_v25  ;;  %v4348_v59 = vmul.f32 0.015625, %v4340_v58 }
0x1791   :  { %5508 = vrsqrt.f32 %v4351_v40  ;;  %v4352_v15 = vadd.f32 1e-05, %v4348_v59 }
0x1793   :  { %5510 = vrsqrt.f32 %v4352_v15 }
0x179b   :  { %v5509_v61 = vpop.eup %5508 }
0x179c   :  { %v4359_v4 = vmul.f32 %v5509_v61, %v4327_v63 }
0x179d   :  { %v5511_v43 = vpop.eup %5510 }
0x179e   :  { %v4367_v42 = vmul.f32 %v4366_v41, %v4359_v4  ;;  %v4360_v8 = vmul.f32 %v5511_v43, %v4328_v22 }
0x17a0   :  { %v4375_v26 = vadd.f32 %v4374_v24, %v4367_v42  ;;  %v4368_v19 = vmul.f32 %v4366_v41, %v4360_v8  ;;  %v4343_v6 = vpop.xlane.xlu0 %4342 }
0x17a1   :  { %v4349_v0 = vmul.f32 0.015625, %v4343_v6 }
0x17a2   :  { %v4603_v20 = vpack.c.bf16 %v4375_v26, %v4375_v26  ;;  %v4376_v31 = vadd.f32 %v4374_v24, %v4368_v19  ;;  %v4346_v47 = vpop.xlane.xlu1 %4345 }
0x17a3   :  { %v4353_v28 = vadd.f32 1e-05, %v4349_v0  ;;  %v4350_v30 = vmul.f32 0.015625, %v4346_v47 }
0x17a4   :  { %4396 = vst.msk [vmem:[%s7163_s12] sm:$0xf] %vm4395_vm0, %v4603_v20  ;;  %v4604_v21 = vpack.c.bf16 %v4376_v31, %v4376_v31 }
0x17a5   :  { %5512 = vrsqrt.f32 %v4353_v28  ;;  %v4354_v35 = vadd.f32 1e-05, %v4350_v30 }
0x17a6   :  { %4397 = vst.msk [vmem:[%s7163_s12 + $0x4] sm:$0xf] %vm4395_vm0, %v4604_v21 }
0x17a7   :  { %5514 = vrsqrt.f32 %v4354_v35 }
0x17af   :  { %v5513_v39 = vpop.eup %5512 }
0x17b0   :  { %v4361_v50 = vmul.f32 %v5513_v39, %v4329_v12 }
0x17b1   :  { %v5515_v13 = vpop.eup %5514 }
0x17b2   :  { %v4369_v29 = vmul.f32 %v4366_v41, %v4361_v50  ;;  %v4362_v55 = vmul.f32 %v5515_v13, %v4330_v5 }
0x17b4   :  { %v4377_v14 = vadd.f32 %v4374_v24, %v4369_v29  ;;  %v4370_v34 = vmul.f32 %v4366_v41, %v4362_v55 }
0x17b6   :  { %v4605_v17 = vpack.c.bf16 %v4377_v14, %v4377_v14  ;;  %v4378_v3 = vadd.f32 %v4374_v24, %v4370_v34 }
0x17b8   :  { %4398 = vst.msk [vmem:[%s7163_s12 + $0x8] sm:$0xf] %vm4395_vm0, %v4605_v17  ;;  %v4606_v11 = vpack.c.bf16 %v4378_v3, %v4378_v3 }
0x17ba   :  { %4399 = vst.msk [vmem:[%s7163_s12 + $0xc] sm:$0xf] %vm4395_vm0, %v4606_v11 }

</bundles_post_ra>
